<compile_context>
chip_gen: v5e
topology: v5e:2x2
jax: 0.10.0
libtpu: 0.0.40
codegen_flags: <defaults>
</compile_context>

<pallas_src>
import jax
import jax.numpy as jnp
from jax import lax
from jax.experimental import pallas as pl
from jax.experimental.pallas import tpu as pltpu

LN_EPS = 1e-5                      # torch.nn.LayerNorm default eps
HEAD_SIZES = (4, 4, 1, 1, 2, 3)    # recovery, enc_type, enc_prob, confidence, auth, perf
HEAD_TOTAL = sum(HEAD_SIZES)       # 15
HEAD_PAD = 128                     # lane-dense packed-head output width


# ----------------------------------------------------------------------------- kernel helpers
def _linear(x_f32, w_ref, b_ref):
    """x @ W + b with bf16 MXU inputs and f32 accumulation / bias."""
    return jnp.dot(x_f32.astype(jnp.bfloat16), w_ref[...],
                   preferred_element_type=jnp.float32) + b_ref[...]


def _linear_ln_relu(x_f32, w_ref, b_ref, g_ref, beta_ref):
    """Linear -> LayerNorm -> ReLU (Dropout is identity at inference). LN math kept in f32."""
    y = _linear(x_f32, w_ref, b_ref)
    mu = jnp.mean(y, axis=-1, keepdims=True)
    var = jnp.mean(jnp.square(y - mu), axis=-1, keepdims=True)   # biased var, as in torch LN
    yhat = (y - mu) * lax.rsqrt(var + LN_EPS)
    return jnp.maximum(yhat * g_ref[...] + beta_ref[...], 0.0)


# ----------------------------------------------------------------------------- kernel
def wallet_recovery_kernel(
    x_ref,
    # encoder: 192->256, 256->512   (W bf16, b f32, LN gamma f32, LN beta f32)
    we1, be1, ge1, bte1,
    we2, be2, ge2, bte2,
    # fused attention (seq_len == 1): W_attn = Wv @ Wo, b_attn = bv @ Wo + bo
    wattn, battn,
    # decoder: 512->512, 512->256, 256->128
    wd1, bd1, gd1, btd1,
    wd2, bd2, gd2, btd2,
    wd3, bd3, gd3, btd3,
    # packed output heads: (128, 128) zero-padded beyond column 15
    wheads, bheads,
    # single lane-dense output slab (TM, 128)
    out_ref,
):
    x = x_ref[...].astype(jnp.float32)

    # ---- encoder ----
    x = _linear_ln_relu(x, we1, be1, ge1, bte1)
    x = _linear_ln_relu(x, we2, be2, ge2, bte2)

    # ---- multi-head self-attention over a length-1 sequence (exactly out_proj(v_proj(x))) ----
    x = _linear(x, wattn, battn)

    # ---- decoder ----
    x = _linear_ln_relu(x, wd1, bd1, gd1, btd1)
    x = _linear_ln_relu(x, wd2, bd2, gd2, btd2)
    x = _linear_ln_relu(x, wd3, bd3, gd3, btd3)

    # ---- packed output heads: one matmul, one unmasked 128-lane store ----
    z = _linear(x, wheads, bheads)                          # (TM, 128) f32 logits
    col = lax.broadcasted_iota(jnp.int32, z.shape, 1)
    m_rt = col < 4                                          # recovery_type   -> softmax
    m_et = (col >= 4) & (col < 8)                           # encryption_type -> softmax
    # columns 8..14 -> sigmoid heads; columns 15..127 are zero padding (discarded in wrapper)

    def masked_softmax(mask):
        zc = jnp.where(mask, z, jnp.float32(-1e30))
        mx = jnp.max(zc, axis=-1, keepdims=True)
        e = jnp.exp(zc - mx)
        return e / jnp.sum(e, axis=-1, keepdims=True)

    sig = 1.0 / (1.0 + jnp.exp(-z))
    out = jnp.where(m_rt, masked_softmax(m_rt),
                    jnp.where(m_et, masked_softmax(m_et), sig))
    out_ref[...] = out


# ----------------------------------------------------------------------------- parameters
def init_params(seed=0):
    """Deterministic synthetic f32 parameters matching the PyTorch module's shapes."""
    keys = iter(jax.random.split(jax.random.PRNGKey(seed), 32))

    def linear(fi, fo):
        w = jax.random.normal(next(keys), (fi, fo), jnp.float32) / jnp.sqrt(jnp.float32(fi))
        b = jnp.zeros((1, fo), jnp.float32)
        return w, b

    def ln(h):
        return jnp.ones((1, h), jnp.float32), jnp.zeros((1, h), jnp.float32)

    p = []
    # encoder: 192 -> 256 -> 512
    for fi, fo in [(192, 256), (256, 512)]:
        w, b = linear(fi, fo); g, bt = ln(fo); p += [w, b, g, bt]
    # attention v_proj / out_proj (embed_dim = 512)
    wv, bv = linear(512, 512); wo, bo = linear(512, 512); p += [wv, bv, wo, bo]
    # decoder: 512 -> 512 -> 256 -> 128
    for fi, fo in [(512, 512), (512, 256), (256, 128)]:
        w, b = linear(fi, fo); g, bt = ln(fo); p += [w, b, g, bt]
    # heads: recovery(4), encryption_type(4), encryption_prob(1), confidence(1), auth(2), perf(3)
    for fo in HEAD_SIZES:
        w, b = linear(128, fo); p += [w, b]
    return p


def fuse_and_pack_params(p):
    """Fold attention projections, pack/pad the 6 heads, and cast weights to bf16."""
    (we1, be1, ge1, bte1,
     we2, be2, ge2, bte2,
     wv, bv, wo, bo,
     wd1, bd1, gd1, btd1,
     wd2, bd2, gd2, btd2,
     wd3, bd3, gd3, btd3,
     wrt, brt, wet, bet, wep, bep, wcf, bcf, wau, bau, wpf, bpf) = p

    # attention fusion (no nonlinearity between v_proj and out_proj)
    wattn = jnp.dot(wv, wo)                 # (512, 512)
    battn = jnp.dot(bv, wo) + bo            # (1, 512)

    # packed, lane-dense heads
    wheads = jnp.concatenate([wrt, wet, wep, wcf, wau, wpf], axis=1)   # (128, 15)
    bheads = jnp.concatenate([brt, bet, bep, bcf, bau, bpf], axis=1)   # (1, 15)
    wheads = jnp.pad(wheads, ((0, 0), (0, HEAD_PAD - HEAD_TOTAL)))
    bheads = jnp.pad(bheads, ((0, 0), (0, HEAD_PAD - HEAD_TOTAL)))

    bf = lambda w: w.astype(jnp.bfloat16)
    return [
        bf(we1), be1, ge1, bte1,
        bf(we2), be2, ge2, bte2,
        bf(wattn), battn,
        bf(wd1), bd1, gd1, btd1,
        bf(wd2), bd2, gd2, btd2,
        bf(wd3), bd3, gd3, btd3,
        bf(wheads), bheads,
    ]


# ----------------------------------------------------------------------------- wrapper
def _choose_batch_tile(b):
    # >=256 rows fills the v6e/v7x 256x256 MXU and amortizes per-step overhead;
    # for small B use a single tile rounded up to the 8-row sublane granule.
    if b >= 256:
        return 256
    return max(8, ((b + 7) // 8) * 8)


def wallet_recovery_forward(x, kernel_params):
    B, F = x.shape
    TM = _choose_batch_tile(B)
    B_pad = ((B + TM - 1) // TM) * TM
    if B_pad != B:
        x = jnp.pad(x, ((0, B_pad - B), (0, 0)))
    grid = (B_pad // TM,)

    def resident_spec(a):
        nd = a.ndim
        return pl.BlockSpec(a.shape, lambda i, nd=nd: (0,) * nd)   # same block every step

    in_specs = [pl.BlockSpec((TM, F), lambda i: (i, 0))] + [
        resident_spec(a) for a in kernel_params
    ]
    out_spec = pl.BlockSpec((TM, HEAD_PAD), lambda i: (i, 0))

    slab = pl.pallas_call(
        wallet_recovery_kernel,
        out_shape=jax.ShapeDtypeStruct((B_pad, HEAD_PAD), jnp.float32),
        grid=grid,
        in_specs=in_specs,
        out_specs=out_spec,
        compiler_params=pltpu.CompilerParams(
            dimension_semantics=("parallel",),       # batch tiles are independent (v7x 2-TC)
            vmem_limit_bytes=32 * 1024 * 1024,       # within v7x's 64 MiB physical VMEM
        ),
    )(x, *kernel_params)

    return {
        "recovery_type":            slab[:B, 0:4],
        "encryption_type":          slab[:B, 4:8],
        "encryption_prob":          slab[:B, 8:9],
        "confidence":               slab[:B, 9:10],
        "auth_requirements":        slab[:B, 10:12],
        "performance_requirements": slab[:B, 12:15],
    }


if __name__ == "__main__":
    B, INPUT_SIZE = 8, 192   # input_size fixed by the model config
    key = jax.random.PRNGKey(0)
    x = jax.random.normal(key, (B, INPUT_SIZE), jnp.float32)

    raw_params = init_params(seed=0)
    kparams = fuse_and_pack_params(raw_params)

    out = wallet_recovery_forward(x, kparams)
    jax.block_until_ready(out)

    # light sanity checks on shapes / normalization
    assert out["recovery_type"].shape == (B, 4)
    assert out["encryption_type"].shape == (B, 4)
    assert out["encryption_prob"].shape == (B, 1)
    assert out["confidence"].shape == (B, 1)
    assert out["auth_requirements"].shape == (B, 2)
    assert out["performance_requirements"].shape == (B, 3)
    assert jnp.allclose(jnp.sum(out["recovery_type"], axis=-1), 1.0, atol=1e-5)
    assert jnp.allclose(jnp.sum(out["encryption_type"], axis=-1), 1.0, atol=1e-5)
    assert bool(jnp.all((out["confidence"] > 0.0) & (out["confidence"] < 1.0)))

    print("KERNEL_OK")
</pallas_src>

<mosaic_0001>
module attributes {stable_mosaic.version = 11 : i64} {
  func.func @wallet_recovery_kernel(%arg0: i32, %arg1: memref<8x192xf32, #tpu.memory_space<vmem>>, %arg2: memref<192x256xbf16, #tpu.memory_space<vmem>>, %arg3: memref<1x256xf32, #tpu.memory_space<vmem>>, %arg4: memref<1x256xf32, #tpu.memory_space<vmem>>, %arg5: memref<1x256xf32, #tpu.memory_space<vmem>>, %arg6: memref<256x512xbf16, #tpu.memory_space<vmem>>, %arg7: memref<1x512xf32, #tpu.memory_space<vmem>>, %arg8: memref<1x512xf32, #tpu.memory_space<vmem>>, %arg9: memref<1x512xf32, #tpu.memory_space<vmem>>, %arg10: memref<512x512xbf16, #tpu.memory_space<vmem>>, %arg11: memref<1x512xf32, #tpu.memory_space<vmem>>, %arg12: memref<512x512xbf16, #tpu.memory_space<vmem>>, %arg13: memref<1x512xf32, #tpu.memory_space<vmem>>, %arg14: memref<1x512xf32, #tpu.memory_space<vmem>>, %arg15: memref<1x512xf32, #tpu.memory_space<vmem>>, %arg16: memref<512x256xbf16, #tpu.memory_space<vmem>>, %arg17: memref<1x256xf32, #tpu.memory_space<vmem>>, %arg18: memref<1x256xf32, #tpu.memory_space<vmem>>, %arg19: memref<1x256xf32, #tpu.memory_space<vmem>>, %arg20: memref<256x128xbf16, #tpu.memory_space<vmem>>, %arg21: memref<1x128xf32, #tpu.memory_space<vmem>>, %arg22: memref<1x128xf32, #tpu.memory_space<vmem>>, %arg23: memref<1x128xf32, #tpu.memory_space<vmem>>, %arg24: memref<128x128xbf16, #tpu.memory_space<vmem>>, %arg25: memref<1x128xf32, #tpu.memory_space<vmem>>, %arg26: memref<8x128xf32, #tpu.memory_space<vmem>>) attributes {dimension_semantics = [#tpu.dimension_semantics<parallel>], iteration_bounds = array<i64: 1>, scalar_prefetch = 0 : i64, scratch_operands = 0 : i64, tpu.core_type = #tpu.core_type<tc>, window_params = [{transform_indices = @transform_0, window_bounds = array<i64: 8, 192>}, {pipeline_mode = #tpu.pipeline_mode<synchronous>, transform_indices = @transform_1, window_bounds = array<i64: 192, 256>}, {pipeline_mode = #tpu.pipeline_mode<synchronous>, transform_indices = @transform_2, window_bounds = array<i64: 1, 256>}, {pipeline_mode = #tpu.pipeline_mode<synchronous>, transform_indices = @transform_3, window_bounds = array<i64: 1, 256>}, {pipeline_mode = #tpu.pipeline_mode<synchronous>, transform_indices = @transform_4, window_bounds = array<i64: 1, 256>}, {pipeline_mode = #tpu.pipeline_mode<synchronous>, transform_indices = @transform_5, window_bounds = array<i64: 256, 512>}, {pipeline_mode = #tpu.pipeline_mode<synchronous>, transform_indices = @transform_6, window_bounds = array<i64: 1, 512>}, {pipeline_mode = #tpu.pipeline_mode<synchronous>, transform_indices = @transform_7, window_bounds = array<i64: 1, 512>}, {pipeline_mode = #tpu.pipeline_mode<synchronous>, transform_indices = @transform_8, window_bounds = array<i64: 1, 512>}, {pipeline_mode = #tpu.pipeline_mode<synchronous>, transform_indices = @transform_9, window_bounds = array<i64: 512, 512>}, {pipeline_mode = #tpu.pipeline_mode<synchronous>, transform_indices = @transform_10, window_bounds = array<i64: 1, 512>}, {pipeline_mode = #tpu.pipeline_mode<synchronous>, transform_indices = @transform_11, window_bounds = array<i64: 512, 512>}, {pipeline_mode = #tpu.pipeline_mode<synchronous>, transform_indices = @transform_12, window_bounds = array<i64: 1, 512>}, {pipeline_mode = #tpu.pipeline_mode<synchronous>, transform_indices = @transform_13, window_bounds = array<i64: 1, 512>}, {pipeline_mode = #tpu.pipeline_mode<synchronous>, transform_indices = @transform_14, window_bounds = array<i64: 1, 512>}, {pipeline_mode = #tpu.pipeline_mode<synchronous>, transform_indices = @transform_15, window_bounds = array<i64: 512, 256>}, {pipeline_mode = #tpu.pipeline_mode<synchronous>, transform_indices = @transform_16, window_bounds = array<i64: 1, 256>}, {pipeline_mode = #tpu.pipeline_mode<synchronous>, transform_indices = @transform_17, window_bounds = array<i64: 1, 256>}, {pipeline_mode = #tpu.pipeline_mode<synchronous>, transform_indices = @transform_18, window_bounds = array<i64: 1, 256>}, {pipeline_mode = #tpu.pipeline_mode<synchronous>, transform_indices = @transform_19, window_bounds = array<i64: 256, 128>}, {pipeline_mode = #tpu.pipeline_mode<synchronous>, transform_indices = @transform_20, window_bounds = array<i64: 1, 128>}, {pipeline_mode = #tpu.pipeline_mode<synchronous>, transform_indices = @transform_21, window_bounds = array<i64: 1, 128>}, {pipeline_mode = #tpu.pipeline_mode<synchronous>, transform_indices = @transform_22, window_bounds = array<i64: 1, 128>}, {pipeline_mode = #tpu.pipeline_mode<synchronous>, transform_indices = @transform_23, window_bounds = array<i64: 128, 128>}, {pipeline_mode = #tpu.pipeline_mode<synchronous>, transform_indices = @transform_24, window_bounds = array<i64: 1, 128>}, {transform_indices = @transform_25, window_bounds = array<i64: 8, 128>}]} {
    %c0 = arith.constant 0 : index
    %c0_0 = arith.constant 0 : index
    %0 = vector.load %arg1[%c0, %c0_0] : memref<8x192xf32, #tpu.memory_space<vmem>>, vector<8x192xf32>
    %1 = arith.truncf %0 : vector<8x192xf32> to vector<8x192xbf16>
    %c0_1 = arith.constant 0 : index
    %c0_2 = arith.constant 0 : index
    %2 = vector.load %arg2[%c0_1, %c0_2] : memref<192x256xbf16, #tpu.memory_space<vmem>>, vector<192x256xbf16>
    %cst = arith.constant dense<0.000000e+00> : vector<8x256xf32>
    %3 = tpu.matmul %1, %2, %cst {dimension_numbers = #tpu.dot_dimension_numbers<[1], [0], [0], [1], [0, 0, 1, 1], [], []>} : vector<8x192xbf16>, vector<192x256xbf16>, vector<8x256xf32> -> vector<8x256xf32>
    %c0_3 = arith.constant 0 : index
    %c0_4 = arith.constant 0 : index
    %4 = vector.load %arg3[%c0_3, %c0_4] : memref<1x256xf32, #tpu.memory_space<vmem>>, vector<1x256xf32>
    %5 = vector.broadcast %4 : vector<1x256xf32> to vector<8x256xf32>
    %6 = arith.addf %3, %5 : vector<8x256xf32>
    %cst_5 = arith.constant dense<0.000000e+00> : vector<8xf32>
    %7 = vector.multi_reduction <add>, %6, %cst_5 [1] : vector<8x256xf32> to vector<8xf32>
    %8 = vector.shape_cast %7 : vector<8xf32> to vector<8x1xf32>
    %cst_6 = arith.constant 2.560000e+02 : f32
    %9 = vector.broadcast %cst_6 : f32 to vector<8x1xf32>
    %10 = arith.divf %8, %9 : vector<8x1xf32>
    %11 = vector.broadcast %10 : vector<8x1xf32> to vector<8x256xf32>
    %12 = arith.subf %6, %11 : vector<8x256xf32>
    %13 = arith.mulf %12, %12 : vector<8x256xf32>
    %cst_7 = arith.constant dense<0.000000e+00> : vector<8xf32>
    %14 = vector.multi_reduction <add>, %13, %cst_7 [1] : vector<8x256xf32> to vector<8xf32>
    %15 = vector.shape_cast %14 : vector<8xf32> to vector<8x1xf32>
    %cst_8 = arith.constant 2.560000e+02 : f32
    %16 = vector.broadcast %cst_8 : f32 to vector<8x1xf32>
    %17 = arith.divf %15, %16 : vector<8x1xf32>
    %18 = vector.broadcast %10 : vector<8x1xf32> to vector<8x256xf32>
    %19 = arith.subf %6, %18 : vector<8x256xf32>
    %cst_9 = arith.constant 9.99999974E-6 : f32
    %20 = vector.broadcast %cst_9 : f32 to vector<8x1xf32>
    %21 = arith.addf %17, %20 : vector<8x1xf32>
    %22 = math.rsqrt %21 : vector<8x1xf32>
    %23 = vector.broadcast %22 : vector<8x1xf32> to vector<8x256xf32>
    %24 = arith.mulf %19, %23 : vector<8x256xf32>
    %c0_10 = arith.constant 0 : index
    %c0_11 = arith.constant 0 : index
    %25 = vector.load %arg4[%c0_10, %c0_11] : memref<1x256xf32, #tpu.memory_space<vmem>>, vector<1x256xf32>
    %26 = vector.broadcast %25 : vector<1x256xf32> to vector<8x256xf32>
    %27 = arith.mulf %24, %26 : vector<8x256xf32>
    %c0_12 = arith.constant 0 : index
    %c0_13 = arith.constant 0 : index
    %28 = vector.load %arg5[%c0_12, %c0_13] : memref<1x256xf32, #tpu.memory_space<vmem>>, vector<1x256xf32>
    %29 = vector.broadcast %28 : vector<1x256xf32> to vector<8x256xf32>
    %30 = arith.addf %27, %29 : vector<8x256xf32>
    %cst_14 = arith.constant 0.000000e+00 : f32
    %31 = vector.broadcast %cst_14 : f32 to vector<8x256xf32>
    %32 = arith.maximumf %30, %31 : vector<8x256xf32>
    %33 = arith.truncf %32 : vector<8x256xf32> to vector<8x256xbf16>
    %c0_15 = arith.constant 0 : index
    %c0_16 = arith.constant 0 : index
    %34 = vector.load %arg6[%c0_15, %c0_16] : memref<256x512xbf16, #tpu.memory_space<vmem>>, vector<256x512xbf16>
    %cst_17 = arith.constant dense<0.000000e+00> : vector<8x512xf32>
    %35 = tpu.matmul %33, %34, %cst_17 {dimension_numbers = #tpu.dot_dimension_numbers<[1], [0], [0], [1], [0, 0, 1, 1], [], []>} : vector<8x256xbf16>, vector<256x512xbf16>, vector<8x512xf32> -> vector<8x512xf32>
    %c0_18 = arith.constant 0 : index
    %c0_19 = arith.constant 0 : index
    %36 = vector.load %arg7[%c0_18, %c0_19] : memref<1x512xf32, #tpu.memory_space<vmem>>, vector<1x512xf32>
    %37 = vector.broadcast %36 : vector<1x512xf32> to vector<8x512xf32>
    %38 = arith.addf %35, %37 : vector<8x512xf32>
    %cst_20 = arith.constant dense<0.000000e+00> : vector<8xf32>
    %39 = vector.multi_reduction <add>, %38, %cst_20 [1] : vector<8x512xf32> to vector<8xf32>
    %40 = vector.shape_cast %39 : vector<8xf32> to vector<8x1xf32>
    %cst_21 = arith.constant 5.120000e+02 : f32
    %41 = vector.broadcast %cst_21 : f32 to vector<8x1xf32>
    %42 = arith.divf %40, %41 : vector<8x1xf32>
    %43 = vector.broadcast %42 : vector<8x1xf32> to vector<8x512xf32>
    %44 = arith.subf %38, %43 : vector<8x512xf32>
    %45 = arith.mulf %44, %44 : vector<8x512xf32>
    %cst_22 = arith.constant dense<0.000000e+00> : vector<8xf32>
    %46 = vector.multi_reduction <add>, %45, %cst_22 [1] : vector<8x512xf32> to vector<8xf32>
    %47 = vector.shape_cast %46 : vector<8xf32> to vector<8x1xf32>
    %cst_23 = arith.constant 5.120000e+02 : f32
    %48 = vector.broadcast %cst_23 : f32 to vector<8x1xf32>
    %49 = arith.divf %47, %48 : vector<8x1xf32>
    %50 = vector.broadcast %42 : vector<8x1xf32> to vector<8x512xf32>
    %51 = arith.subf %38, %50 : vector<8x512xf32>
    %cst_24 = arith.constant 9.99999974E-6 : f32
    %52 = vector.broadcast %cst_24 : f32 to vector<8x1xf32>
    %53 = arith.addf %49, %52 : vector<8x1xf32>
    %54 = math.rsqrt %53 : vector<8x1xf32>
    %55 = vector.broadcast %54 : vector<8x1xf32> to vector<8x512xf32>
    %56 = arith.mulf %51, %55 : vector<8x512xf32>
    %c0_25 = arith.constant 0 : index
    %c0_26 = arith.constant 0 : index
    %57 = vector.load %arg8[%c0_25, %c0_26] : memref<1x512xf32, #tpu.memory_space<vmem>>, vector<1x512xf32>
    %58 = vector.broadcast %57 : vector<1x512xf32> to vector<8x512xf32>
    %59 = arith.mulf %56, %58 : vector<8x512xf32>
    %c0_27 = arith.constant 0 : index
    %c0_28 = arith.constant 0 : index
    %60 = vector.load %arg9[%c0_27, %c0_28] : memref<1x512xf32, #tpu.memory_space<vmem>>, vector<1x512xf32>
    %61 = vector.broadcast %60 : vector<1x512xf32> to vector<8x512xf32>
    %62 = arith.addf %59, %61 : vector<8x512xf32>
    %cst_29 = arith.constant 0.000000e+00 : f32
    %63 = vector.broadcast %cst_29 : f32 to vector<8x512xf32>
    %64 = arith.maximumf %62, %63 : vector<8x512xf32>
    %65 = arith.truncf %64 : vector<8x512xf32> to vector<8x512xbf16>
    %c0_30 = arith.constant 0 : index
    %c0_31 = arith.constant 0 : index
    %66 = vector.load %arg10[%c0_30, %c0_31] : memref<512x512xbf16, #tpu.memory_space<vmem>>, vector<512x512xbf16>
    %cst_32 = arith.constant dense<0.000000e+00> : vector<8x512xf32>
    %67 = tpu.matmul %65, %66, %cst_32 {dimension_numbers = #tpu.dot_dimension_numbers<[1], [0], [0], [1], [0, 0, 1, 1], [], []>} : vector<8x512xbf16>, vector<512x512xbf16>, vector<8x512xf32> -> vector<8x512xf32>
    %c0_33 = arith.constant 0 : index
    %c0_34 = arith.constant 0 : index
    %68 = vector.load %arg11[%c0_33, %c0_34] : memref<1x512xf32, #tpu.memory_space<vmem>>, vector<1x512xf32>
    %69 = vector.broadcast %68 : vector<1x512xf32> to vector<8x512xf32>
    %70 = arith.addf %67, %69 : vector<8x512xf32>
    %71 = arith.truncf %70 : vector<8x512xf32> to vector<8x512xbf16>
    %c0_35 = arith.constant 0 : index
    %c0_36 = arith.constant 0 : index
    %72 = vector.load %arg12[%c0_35, %c0_36] : memref<512x512xbf16, #tpu.memory_space<vmem>>, vector<512x512xbf16>
    %cst_37 = arith.constant dense<0.000000e+00> : vector<8x512xf32>
    %73 = tpu.matmul %71, %72, %cst_37 {dimension_numbers = #tpu.dot_dimension_numbers<[1], [0], [0], [1], [0, 0, 1, 1], [], []>} : vector<8x512xbf16>, vector<512x512xbf16>, vector<8x512xf32> -> vector<8x512xf32>
    %c0_38 = arith.constant 0 : index
    %c0_39 = arith.constant 0 : index
    %74 = vector.load %arg13[%c0_38, %c0_39] : memref<1x512xf32, #tpu.memory_space<vmem>>, vector<1x512xf32>
    %75 = vector.broadcast %74 : vector<1x512xf32> to vector<8x512xf32>
    %76 = arith.addf %73, %75 : vector<8x512xf32>
    %cst_40 = arith.constant dense<0.000000e+00> : vector<8xf32>
    %77 = vector.multi_reduction <add>, %76, %cst_40 [1] : vector<8x512xf32> to vector<8xf32>
    %78 = vector.shape_cast %77 : vector<8xf32> to vector<8x1xf32>
    %cst_41 = arith.constant 5.120000e+02 : f32
    %79 = vector.broadcast %cst_41 : f32 to vector<8x1xf32>
    %80 = arith.divf %78, %79 : vector<8x1xf32>
    %81 = vector.broadcast %80 : vector<8x1xf32> to vector<8x512xf32>
    %82 = arith.subf %76, %81 : vector<8x512xf32>
    %83 = arith.mulf %82, %82 : vector<8x512xf32>
    %cst_42 = arith.constant dense<0.000000e+00> : vector<8xf32>
    %84 = vector.multi_reduction <add>, %83, %cst_42 [1] : vector<8x512xf32> to vector<8xf32>
    %85 = vector.shape_cast %84 : vector<8xf32> to vector<8x1xf32>
    %cst_43 = arith.constant 5.120000e+02 : f32
    %86 = vector.broadcast %cst_43 : f32 to vector<8x1xf32>
    %87 = arith.divf %85, %86 : vector<8x1xf32>
    %88 = vector.broadcast %80 : vector<8x1xf32> to vector<8x512xf32>
    %89 = arith.subf %76, %88 : vector<8x512xf32>
    %cst_44 = arith.constant 9.99999974E-6 : f32
    %90 = vector.broadcast %cst_44 : f32 to vector<8x1xf32>
    %91 = arith.addf %87, %90 : vector<8x1xf32>
    %92 = math.rsqrt %91 : vector<8x1xf32>
    %93 = vector.broadcast %92 : vector<8x1xf32> to vector<8x512xf32>
    %94 = arith.mulf %89, %93 : vector<8x512xf32>
    %c0_45 = arith.constant 0 : index
    %c0_46 = arith.constant 0 : index
    %95 = vector.load %arg14[%c0_45, %c0_46] : memref<1x512xf32, #tpu.memory_space<vmem>>, vector<1x512xf32>
    %96 = vector.broadcast %95 : vector<1x512xf32> to vector<8x512xf32>
    %97 = arith.mulf %94, %96 : vector<8x512xf32>
    %c0_47 = arith.constant 0 : index
    %c0_48 = arith.constant 0 : index
    %98 = vector.load %arg15[%c0_47, %c0_48] : memref<1x512xf32, #tpu.memory_space<vmem>>, vector<1x512xf32>
    %99 = vector.broadcast %98 : vector<1x512xf32> to vector<8x512xf32>
    %100 = arith.addf %97, %99 : vector<8x512xf32>
    %cst_49 = arith.constant 0.000000e+00 : f32
    %101 = vector.broadcast %cst_49 : f32 to vector<8x512xf32>
    %102 = arith.maximumf %100, %101 : vector<8x512xf32>
    %103 = arith.truncf %102 : vector<8x512xf32> to vector<8x512xbf16>
    %c0_50 = arith.constant 0 : index
    %c0_51 = arith.constant 0 : index
    %104 = vector.load %arg16[%c0_50, %c0_51] : memref<512x256xbf16, #tpu.memory_space<vmem>>, vector<512x256xbf16>
    %cst_52 = arith.constant dense<0.000000e+00> : vector<8x256xf32>
    %105 = tpu.matmul %103, %104, %cst_52 {dimension_numbers = #tpu.dot_dimension_numbers<[1], [0], [0], [1], [0, 0, 1, 1], [], []>} : vector<8x512xbf16>, vector<512x256xbf16>, vector<8x256xf32> -> vector<8x256xf32>
    %c0_53 = arith.constant 0 : index
    %c0_54 = arith.constant 0 : index
    %106 = vector.load %arg17[%c0_53, %c0_54] : memref<1x256xf32, #tpu.memory_space<vmem>>, vector<1x256xf32>
    %107 = vector.broadcast %106 : vector<1x256xf32> to vector<8x256xf32>
    %108 = arith.addf %105, %107 : vector<8x256xf32>
    %cst_55 = arith.constant dense<0.000000e+00> : vector<8xf32>
    %109 = vector.multi_reduction <add>, %108, %cst_55 [1] : vector<8x256xf32> to vector<8xf32>
    %110 = vector.shape_cast %109 : vector<8xf32> to vector<8x1xf32>
    %cst_56 = arith.constant 2.560000e+02 : f32
    %111 = vector.broadcast %cst_56 : f32 to vector<8x1xf32>
    %112 = arith.divf %110, %111 : vector<8x1xf32>
    %113 = vector.broadcast %112 : vector<8x1xf32> to vector<8x256xf32>
    %114 = arith.subf %108, %113 : vector<8x256xf32>
    %115 = arith.mulf %114, %114 : vector<8x256xf32>
    %cst_57 = arith.constant dense<0.000000e+00> : vector<8xf32>
    %116 = vector.multi_reduction <add>, %115, %cst_57 [1] : vector<8x256xf32> to vector<8xf32>
    %117 = vector.shape_cast %116 : vector<8xf32> to vector<8x1xf32>
    %cst_58 = arith.constant 2.560000e+02 : f32
    %118 = vector.broadcast %cst_58 : f32 to vector<8x1xf32>
    %119 = arith.divf %117, %118 : vector<8x1xf32>
    %120 = vector.broadcast %112 : vector<8x1xf32> to vector<8x256xf32>
    %121 = arith.subf %108, %120 : vector<8x256xf32>
    %cst_59 = arith.constant 9.99999974E-6 : f32
    %122 = vector.broadcast %cst_59 : f32 to vector<8x1xf32>
    %123 = arith.addf %119, %122 : vector<8x1xf32>
    %124 = math.rsqrt %123 : vector<8x1xf32>
    %125 = vector.broadcast %124 : vector<8x1xf32> to vector<8x256xf32>
    %126 = arith.mulf %121, %125 : vector<8x256xf32>
    %c0_60 = arith.constant 0 : index
    %c0_61 = arith.constant 0 : index
    %127 = vector.load %arg18[%c0_60, %c0_61] : memref<1x256xf32, #tpu.memory_space<vmem>>, vector<1x256xf32>
    %128 = vector.broadcast %127 : vector<1x256xf32> to vector<8x256xf32>
    %129 = arith.mulf %126, %128 : vector<8x256xf32>
    %c0_62 = arith.constant 0 : index
    %c0_63 = arith.constant 0 : index
    %130 = vector.load %arg19[%c0_62, %c0_63] : memref<1x256xf32, #tpu.memory_space<vmem>>, vector<1x256xf32>
    %131 = vector.broadcast %130 : vector<1x256xf32> to vector<8x256xf32>
    %132 = arith.addf %129, %131 : vector<8x256xf32>
    %cst_64 = arith.constant 0.000000e+00 : f32
    %133 = vector.broadcast %cst_64 : f32 to vector<8x256xf32>
    %134 = arith.maximumf %132, %133 : vector<8x256xf32>
    %135 = arith.truncf %134 : vector<8x256xf32> to vector<8x256xbf16>
    %c0_65 = arith.constant 0 : index
    %c0_66 = arith.constant 0 : index
    %136 = vector.load %arg20[%c0_65, %c0_66] : memref<256x128xbf16, #tpu.memory_space<vmem>>, vector<256x128xbf16>
    %cst_67 = arith.constant dense<0.000000e+00> : vector<8x128xf32>
    %137 = tpu.matmul %135, %136, %cst_67 {dimension_numbers = #tpu.dot_dimension_numbers<[1], [0], [0], [1], [0, 0, 1, 1], [], []>} : vector<8x256xbf16>, vector<256x128xbf16>, vector<8x128xf32> -> vector<8x128xf32>
    %c0_68 = arith.constant 0 : index
    %c0_69 = arith.constant 0 : index
    %138 = vector.load %arg21[%c0_68, %c0_69] : memref<1x128xf32, #tpu.memory_space<vmem>>, vector<1x128xf32>
    %139 = vector.broadcast %138 : vector<1x128xf32> to vector<8x128xf32>
    %140 = arith.addf %137, %139 : vector<8x128xf32>
    %cst_70 = arith.constant dense<0.000000e+00> : vector<8xf32>
    %141 = vector.multi_reduction <add>, %140, %cst_70 [1] : vector<8x128xf32> to vector<8xf32>
    %142 = vector.shape_cast %141 : vector<8xf32> to vector<8x1xf32>
    %cst_71 = arith.constant 1.280000e+02 : f32
    %143 = vector.broadcast %cst_71 : f32 to vector<8x1xf32>
    %144 = arith.divf %142, %143 : vector<8x1xf32>
    %145 = vector.broadcast %144 : vector<8x1xf32> to vector<8x128xf32>
    %146 = arith.subf %140, %145 : vector<8x128xf32>
    %147 = arith.mulf %146, %146 : vector<8x128xf32>
    %cst_72 = arith.constant dense<0.000000e+00> : vector<8xf32>
    %148 = vector.multi_reduction <add>, %147, %cst_72 [1] : vector<8x128xf32> to vector<8xf32>
    %149 = vector.shape_cast %148 : vector<8xf32> to vector<8x1xf32>
    %cst_73 = arith.constant 1.280000e+02 : f32
    %150 = vector.broadcast %cst_73 : f32 to vector<8x1xf32>
    %151 = arith.divf %149, %150 : vector<8x1xf32>
    %152 = vector.broadcast %144 : vector<8x1xf32> to vector<8x128xf32>
    %153 = arith.subf %140, %152 : vector<8x128xf32>
    %cst_74 = arith.constant 9.99999974E-6 : f32
    %154 = vector.broadcast %cst_74 : f32 to vector<8x1xf32>
    %155 = arith.addf %151, %154 : vector<8x1xf32>
    %156 = math.rsqrt %155 : vector<8x1xf32>
    %157 = vector.broadcast %156 : vector<8x1xf32> to vector<8x128xf32>
    %158 = arith.mulf %153, %157 : vector<8x128xf32>
    %c0_75 = arith.constant 0 : index
    %c0_76 = arith.constant 0 : index
    %159 = vector.load %arg22[%c0_75, %c0_76] : memref<1x128xf32, #tpu.memory_space<vmem>>, vector<1x128xf32>
    %160 = vector.broadcast %159 : vector<1x128xf32> to vector<8x128xf32>
    %161 = arith.mulf %158, %160 : vector<8x128xf32>
    %c0_77 = arith.constant 0 : index
    %c0_78 = arith.constant 0 : index
    %162 = vector.load %arg23[%c0_77, %c0_78] : memref<1x128xf32, #tpu.memory_space<vmem>>, vector<1x128xf32>
    %163 = vector.broadcast %162 : vector<1x128xf32> to vector<8x128xf32>
    %164 = arith.addf %161, %163 : vector<8x128xf32>
    %cst_79 = arith.constant 0.000000e+00 : f32
    %165 = vector.broadcast %cst_79 : f32 to vector<8x128xf32>
    %166 = arith.maximumf %164, %165 : vector<8x128xf32>
    %167 = arith.truncf %166 : vector<8x128xf32> to vector<8x128xbf16>
    %c0_80 = arith.constant 0 : index
    %c0_81 = arith.constant 0 : index
    %168 = vector.load %arg24[%c0_80, %c0_81] : memref<128x128xbf16, #tpu.memory_space<vmem>>, vector<128x128xbf16>
    %cst_82 = arith.constant dense<0.000000e+00> : vector<8x128xf32>
    %169 = tpu.matmul %167, %168, %cst_82 {dimension_numbers = #tpu.dot_dimension_numbers<[1], [0], [0], [1], [0, 0, 1, 1], [], []>} : vector<8x128xbf16>, vector<128x128xbf16>, vector<8x128xf32> -> vector<8x128xf32>
    %c0_83 = arith.constant 0 : index
    %c0_84 = arith.constant 0 : index
    %170 = vector.load %arg25[%c0_83, %c0_84] : memref<1x128xf32, #tpu.memory_space<vmem>>, vector<1x128xf32>
    %171 = vector.broadcast %170 : vector<1x128xf32> to vector<8x128xf32>
    %172 = arith.addf %169, %171 : vector<8x128xf32>
    %173 = tpu.iota {dimensions = array<i32: 1>} : vector<8x128xi32>
    %c4_i32 = arith.constant 4 : i32
    %174 = vector.broadcast %c4_i32 : i32 to vector<8x128xi32>
    %175 = arith.cmpi slt, %173, %174 : vector<8x128xi32>
    %c4_i32_85 = arith.constant 4 : i32
    %176 = vector.broadcast %c4_i32_85 : i32 to vector<8x128xi32>
    %177 = arith.cmpi sge, %173, %176 : vector<8x128xi32>
    %c8_i32 = arith.constant 8 : i32
    %178 = vector.broadcast %c8_i32 : i32 to vector<8x128xi32>
    %179 = arith.cmpi slt, %173, %178 : vector<8x128xi32>
    %180 = arith.andi %177, %179 : vector<8x128xi1>
    %cst_86 = arith.constant 0.000000e+00 : f32
    %181 = vector.broadcast %cst_86 : f32 to vector<8x128xf32>
    %182 = arith.subf %181, %172 : vector<8x128xf32>
    %183 = math.exp %182 : vector<8x128xf32>
    %cst_87 = arith.constant 1.000000e+00 : f32
    %184 = vector.broadcast %cst_87 : f32 to vector<8x128xf32>
    %185 = arith.addf %184, %183 : vector<8x128xf32>
    %cst_88 = arith.constant 1.000000e+00 : f32
    %186 = vector.broadcast %cst_88 : f32 to vector<8x128xf32>
    %187 = arith.divf %186, %185 : vector<8x128xf32>
    %cst_89 = arith.constant -1.000000e+30 : f32
    %188 = vector.broadcast %cst_89 : f32 to vector<8x128xf32>
    %189 = arith.select %175, %172, %188 : vector<8x128xi1>, vector<8x128xf32>
    %cst_90 = arith.constant dense<0xFF800000> : vector<8xf32>
    %190 = vector.multi_reduction <maximumf>, %189, %cst_90 [1] : vector<8x128xf32> to vector<8xf32>
    %191 = vector.shape_cast %190 : vector<8xf32> to vector<8x1xf32>
    %192 = vector.broadcast %191 : vector<8x1xf32> to vector<8x128xf32>
    %193 = arith.subf %189, %192 : vector<8x128xf32>
    %194 = math.exp %193 : vector<8x128xf32>
    %cst_91 = arith.constant dense<0.000000e+00> : vector<8xf32>
    %195 = vector.multi_reduction <add>, %194, %cst_91 [1] : vector<8x128xf32> to vector<8xf32>
    %196 = vector.shape_cast %195 : vector<8xf32> to vector<8x1xf32>
    %197 = vector.broadcast %196 : vector<8x1xf32> to vector<8x128xf32>
    %198 = arith.divf %194, %197 : vector<8x128xf32>
    %cst_92 = arith.constant -1.000000e+30 : f32
    %199 = vector.broadcast %cst_92 : f32 to vector<8x128xf32>
    %200 = arith.select %180, %172, %199 : vector<8x128xi1>, vector<8x128xf32>
    %cst_93 = arith.constant dense<0xFF800000> : vector<8xf32>
    %201 = vector.multi_reduction <maximumf>, %200, %cst_93 [1] : vector<8x128xf32> to vector<8xf32>
    %202 = vector.shape_cast %201 : vector<8xf32> to vector<8x1xf32>
    %203 = vector.broadcast %202 : vector<8x1xf32> to vector<8x128xf32>
    %204 = arith.subf %200, %203 : vector<8x128xf32>
    %205 = math.exp %204 : vector<8x128xf32>
    %cst_94 = arith.constant dense<0.000000e+00> : vector<8xf32>
    %206 = vector.multi_reduction <add>, %205, %cst_94 [1] : vector<8x128xf32> to vector<8xf32>
    %207 = vector.shape_cast %206 : vector<8xf32> to vector<8x1xf32>
    %208 = vector.broadcast %207 : vector<8x1xf32> to vector<8x128xf32>
    %209 = arith.divf %205, %208 : vector<8x128xf32>
    %210 = arith.select %180, %209, %187 : vector<8x128xi1>, vector<8x128xf32>
    %211 = arith.select %175, %198, %210 : vector<8x128xi1>, vector<8x128xf32>
    %c0_95 = arith.constant 0 : index
    %c0_96 = arith.constant 0 : index
    %212 = vector.load %arg26[%c0_95, %c0_96] : memref<8x128xf32, #tpu.memory_space<vmem>>, vector<8x128xf32>
    tpu.vector_store %arg26[%c0_95, %c0_96], %211 {strides = array<i32>} : memref<8x128xf32, #tpu.memory_space<vmem>>, vector<8x128xf32>,
    return
  }
  func.func @transform_0(%arg0: i32) -> (i32, i32) {
    %c0_i32 = arith.constant 0 : i32
    %c0_i32_0 = arith.constant 0 : i32
    return %arg0, %c0_i32 : i32, i32
  }
  func.func @transform_1(%arg0: i32) -> (i32, i32) {
    %c0_i32 = arith.constant 0 : i32
    %c0_i32_0 = arith.constant 0 : i32
    %c0_i32_1 = arith.constant 0 : i32
    return %c0_i32, %c0_i32_0 : i32, i32
  }
  func.func @transform_2(%arg0: i32) -> (i32, i32) {
    %c0_i32 = arith.constant 0 : i32
    %c0_i32_0 = arith.constant 0 : i32
    %c0_i32_1 = arith.constant 0 : i32
    return %c0_i32, %c0_i32_0 : i32, i32
  }
  func.func @transform_3(%arg0: i32) -> (i32, i32) {
    %c0_i32 = arith.constant 0 : i32
    %c0_i32_0 = arith.constant 0 : i32
    %c0_i32_1 = arith.constant 0 : i32
    return %c0_i32, %c0_i32_0 : i32, i32
  }
  func.func @transform_4(%arg0: i32) -> (i32, i32) {
    %c0_i32 = arith.constant 0 : i32
    %c0_i32_0 = arith.constant 0 : i32
    %c0_i32_1 = arith.constant 0 : i32
    return %c0_i32, %c0_i32_0 : i32, i32
  }
  func.func @transform_5(%arg0: i32) -> (i32, i32) {
    %c0_i32 = arith.constant 0 : i32
    %c0_i32_0 = arith.constant 0 : i32
    %c0_i32_1 = arith.constant 0 : i32
    return %c0_i32, %c0_i32_0 : i32, i32
  }
  func.func @transform_6(%arg0: i32) -> (i32, i32) {
    %c0_i32 = arith.constant 0 : i32
    %c0_i32_0 = arith.constant 0 : i32
    %c0_i32_1 = arith.constant 0 : i32
    return %c0_i32, %c0_i32_0 : i32, i32
  }
  func.func @transform_7(%arg0: i32) -> (i32, i32) {
    %c0_i32 = arith.constant 0 : i32
    %c0_i32_0 = arith.constant 0 : i32
    %c0_i32_1 = arith.constant 0 : i32
    return %c0_i32, %c0_i32_0 : i32, i32
  }
  func.func @transform_8(%arg0: i32) -> (i32, i32) {
    %c0_i32 = arith.constant 0 : i32
    %c0_i32_0 = arith.constant 0 : i32
    %c0_i32_1 = arith.constant 0 : i32
    return %c0_i32, %c0_i32_0 : i32, i32
  }
  func.func @transform_9(%arg0: i32) -> (i32, i32) {
    %c0_i32 = arith.constant 0 : i32
    %c0_i32_0 = arith.constant 0 : i32
    %c0_i32_1 = arith.constant 0 : i32
    return %c0_i32, %c0_i32_0 : i32, i32
  }
  func.func @transform_10(%arg0: i32) -> (i32, i32) {
    %c0_i32 = arith.constant 0 : i32
    %c0_i32_0 = arith.constant 0 : i32
    %c0_i32_1 = arith.constant 0 : i32
    return %c0_i32, %c0_i32_0 : i32, i32
  }
  func.func @transform_11(%arg0: i32) -> (i32, i32) {
    %c0_i32 = arith.constant 0 : i32
    %c0_i32_0 = arith.constant 0 : i32
    %c0_i32_1 = arith.constant 0 : i32
    return %c0_i32, %c0_i32_0 : i32, i32
  }
  func.func @transform_12(%arg0: i32) -> (i32, i32) {
    %c0_i32 = arith.constant 0 : i32
    %c0_i32_0 = arith.constant 0 : i32
    %c0_i32_1 = arith.constant 0 : i32
    return %c0_i32, %c0_i32_0 : i32, i32
  }
  func.func @transform_13(%arg0: i32) -> (i32, i32) {
    %c0_i32 = arith.constant 0 : i32
    %c0_i32_0 = arith.constant 0 : i32
    %c0_i32_1 = arith.constant 0 : i32
    return %c0_i32, %c0_i32_0 : i32, i32
  }
  func.func @transform_14(%arg0: i32) -> (i32, i32) {
    %c0_i32 = arith.constant 0 : i32
    %c0_i32_0 = arith.constant 0 : i32
    %c0_i32_1 = arith.constant 0 : i32
    return %c0_i32, %c0_i32_0 : i32, i32
  }
  func.func @transform_15(%arg0: i32) -> (i32, i32) {
    %c0_i32 = arith.constant 0 : i32
    %c0_i32_0 = arith.constant 0 : i32
    %c0_i32_1 = arith.constant 0 : i32
    return %c0_i32, %c0_i32_0 : i32, i32
  }
  func.func @transform_16(%arg0: i32) -> (i32, i32) {
    %c0_i32 = arith.constant 0 : i32
    %c0_i32_0 = arith.constant 0 : i32
    %c0_i32_1 = arith.constant 0 : i32
    return %c0_i32, %c0_i32_0 : i32, i32
  }
  func.func @transform_17(%arg0: i32) -> (i32, i32) {
    %c0_i32 = arith.constant 0 : i32
    %c0_i32_0 = arith.constant 0 : i32
    %c0_i32_1 = arith.constant 0 : i32
    return %c0_i32, %c0_i32_0 : i32, i32
  }
  func.func @transform_18(%arg0: i32) -> (i32, i32) {
    %c0_i32 = arith.constant 0 : i32
    %c0_i32_0 = arith.constant 0 : i32
    %c0_i32_1 = arith.constant 0 : i32
    return %c0_i32, %c0_i32_0 : i32, i32
  }
  func.func @transform_19(%arg0: i32) -> (i32, i32) {
    %c0_i32 = arith.constant 0 : i32
    %c0_i32_0 = arith.constant 0 : i32
    %c0_i32_1 = arith.constant 0 : i32
    return %c0_i32, %c0_i32_0 : i32, i32
  }
  func.func @transform_20(%arg0: i32) -> (i32, i32) {
    %c0_i32 = arith.constant 0 : i32
    %c0_i32_0 = arith.constant 0 : i32
    %c0_i32_1 = arith.constant 0 : i32
    return %c0_i32, %c0_i32_0 : i32, i32
  }
  func.func @transform_21(%arg0: i32) -> (i32, i32) {
    %c0_i32 = arith.constant 0 : i32
    %c0_i32_0 = arith.constant 0 : i32
    %c0_i32_1 = arith.constant 0 : i32
    return %c0_i32, %c0_i32_0 : i32, i32
  }
  func.func @transform_22(%arg0: i32) -> (i32, i32) {
    %c0_i32 = arith.constant 0 : i32
    %c0_i32_0 = arith.constant 0 : i32
    %c0_i32_1 = arith.constant 0 : i32
    return %c0_i32, %c0_i32_0 : i32, i32
  }
  func.func @transform_23(%arg0: i32) -> (i32, i32) {
    %c0_i32 = arith.constant 0 : i32
    %c0_i32_0 = arith.constant 0 : i32
    %c0_i32_1 = arith.constant 0 : i32
    return %c0_i32, %c0_i32_0 : i32, i32
  }
  func.func @transform_24(%arg0: i32) -> (i32, i32) {
    %c0_i32 = arith.constant 0 : i32
    %c0_i32_0 = arith.constant 0 : i32
    %c0_i32_1 = arith.constant 0 : i32
    return %c0_i32, %c0_i32_0 : i32, i32
  }
  func.func @transform_25(%arg0: i32) -> (i32, i32) {
    %c0_i32 = arith.constant 0 : i32
    %c0_i32_0 = arith.constant 0 : i32
    return %arg0, %c0_i32 : i32, i32
  }
}

</mosaic_0001>

<bundles_post_ra>
// kernel: tpu_custom_call.1
= control target key start
LH: loop header
LB: loop body
LE: loop exit
PB: predicated region body
PF: predicated region fallthrough
CT: control target
= control target key end

     0   :  { %s7198_s0 = inlined_call_operand.hbm [shape: f32[8,192], index: 0, kind: input, shape index: {}]   ;;  %s7199_s1 = inlined_call_operand.hbm [shape: bf16[192,256], index: 1, kind: input, shape index: {}]   ;;  %s7200_s2 = inlined_call_operand.hbm [shape: f32[1,256], index: 2, kind: input, shape index: {}]   ;;  %s7201_s3 = inlined_call_operand.hbm [shape: f32[1,256], index: 3, kind: input, shape index: {}]   ;;  %s7202_s4 = inlined_call_operand.hbm [shape: f32[1,256], index: 4, kind: input, shape index: {}]   ;;  %s7203_s5 = inlined_call_operand.hbm [shape: bf16[256,512], index: 5, kind: input, shape index: {}]   ;;  %s7204_s6 = inlined_call_operand.vmem [shape: f32[1,512], index: 6, kind: input, shape index: {}]   ;;  %s7205_s7 = inlined_call_operand.hbm [shape: f32[1,512], index: 7, kind: input, shape index: {}]   ;;  %s7206_s8 = inlined_call_operand.hbm [shape: f32[1,512], index: 8, kind: input, shape index: {}]   ;;  %s7207_s9 = inlined_call_operand.hbm [shape: bf16[512,512], index: 9, kind: input, shape index: {}]   ;;  %s7208_s10 = inlined_call_operand.vmem [shape: f32[1,512], index: 10, kind: input, shape index: {}]   ;;  %s7209_s11 = inlined_call_operand.hbm [shape: bf16[512,512], index: 11, kind: input, shape index: {}]   ;;  %s7210_s12 = inlined_call_operand.hbm [shape: f32[1,512], index: 12, kind: input, shape index: {}]   ;;  %s7211_s13 = inlined_call_operand.vmem [shape: f32[1,512], index: 13, kind: input, shape index: {}]   ;;  %s7212_s14 = inlined_call_operand.hbm [shape: f32[1,512], index: 14, kind: input, shape index: {}]   ;;  %s7213_s15 = inlined_call_operand.hbm [shape: bf16[512,256], index: 15, kind: input, shape index: {}]   ;;  %s7214_s16 = inlined_call_operand.vmem [shape: f32[1,256], index: 16, kind: input, shape index: {}]   ;;  %s7215_s17 = inlined_call_operand.vmem [shape: f32[1,256], index: 17, kind: input, shape index: {}]   ;;  %s7216_s18 = inlined_call_operand.hbm [shape: f32[1,256], index: 18, kind: input, shape index: {}]   ;;  %s7217_s19 = inlined_call_operand.hbm [shape: bf16[256,128], index: 19, kind: input, shape index: {}]   ;;  %s7218_s20 = inlined_call_operand.vmem [shape: f32[1,128], index: 20, kind: input, shape index: {}]   ;;  %s7219_s21 = inlined_call_operand.vmem [shape: f32[1,128], index: 21, kind: input, shape index: {}]   ;;  %s7220_s22 = inlined_call_operand.vmem [shape: f32[1,128], index: 22, kind: input, shape index: {}]   ;;  %s7221_s23 = inlined_call_operand.hbm [shape: bf16[128,128], index: 23, kind: input, shape index: {}]   ;;  %s7222_s24 = inlined_call_operand.vmem [shape: f32[1,128], index: 24, kind: input, shape index: {}]   ;;  %s7223_s25 = inlined_call_operand.hbm [shape: f32[8,128], index: 25, kind: output, shape index: {}]  }
   0x1   :  { %7224 = sst [smem:[#allocation39_spill]] %s7198_s0 }
   0x2   :  { %7225 = sst [smem:[#allocation40_spill]] %s7199_s1 }
   0x3   :  { %7226 = sst [smem:[#allocation41_spill]] %s7200_s2 }
   0x4   :  { %7227 = sst [smem:[#allocation42_spill]] %s7201_s3 }
   0x5   :  { %7228 = sst [smem:[#allocation43_spill]] %s7202_s4 }
   0x6   :  { %7229 = sst [smem:[#allocation44_spill]] %s7203_s5 }
   0x7   :  { %7230 = sst [smem:[#allocation45_spill]] %s7204_s6 }
   0x8   :  { %7231 = sst [smem:[#allocation46_spill]] %s7205_s7 }
   0x9   :  { %7232 = sst [smem:[#allocation47_spill]] %s7206_s8 }
   0xa   :  { %7233 = sst [smem:[#allocation48_spill]] %s7207_s9 }
   0xb   :  { %7234 = sst [smem:[#allocation49_spill]] %s7219_s21 }
   0xc   :  { %7235 = sst [smem:[#allocation50_spill]] %s7220_s22 }
   0xd   :  { %7236 = sst [smem:[#allocation51_spill]] %s7222_s24 }
   0xe   :  { %7237 = sst [smem:[#allocation52_spill]] %s7223_s25 }
   0xf   :  { %30 = vsyncpa [#allocation3], 0 }
  0x10   :  { %31 = vsyncpa [#allocation6], 0 }
  0x11   :  { %32 = vsyncpa [#allocation9], 0 }
  0x12   :  { %33 = vsyncpa [#allocation12], 0 }
  0x13   :  { %34 = vsyncpa [#allocation15], 0 }
  0x14   :  { %35 = vsyncpa [#allocation18], 0 }
  0x15   :  { %36 = vsyncpa [#allocation21], 0 }
  0x16   :  { %37 = vsyncpa [#allocation24], 0 }
  0x17   :  { %38 = vsyncpa [#allocation27], 0  ;;  %s7238_s6 = sld [smem:[#allocation40_spill]] }
  0x1d   :  { %s55_s30 = sshll.u32 %s7238_s6, 4  ;;  %s56_s30 = int_to_ptr.hbm [resolvable:$true] %s55_s30 }
  0x1e   :  { %39 = vsyncpa [#allocation4], 0  ;;  %s6762_s7 = smov [#allocation5]   ;;  %s7239_s8 = sld [smem:[#allocation42_spill]] }
  0x1f   :  { %s57_s3 = sshll.u32 %s6762_s7, 4  ;;  %s6763_s4 = smov 128   ;;  %s58_s3 = int_to_ptr.vmem [resolvable:$true] %s57_s3 }
  0x20   :  { %s6764_s28 = smov 8   ;;  %s6765_s9 = smov [#allocation8]  }
  0x21   :  { %63 = dma.hbm_to_vmem [thread:$0]  %s56_s30, 3072, %s58_s3, [#allocation6], %s6763_s4, %s6763_s4, %s6764_s28  }
  0x22   :  { %s82_s5 = sshll.u32 %s6765_s9, 4  ;;  %s7240_s2 = sld [smem:[#allocation44_spill]]  ;;  %s83_s5 = int_to_ptr.vmem [resolvable:$true] %s82_s5 }
  0x23   :  { %s6766_s7 = smov [#allocation11]   ;;  %s6767_s22 = smov 256  }
  0x24   :  { %s80_s27 = sshll.u32 %s7239_s8, 4  ;;  %s103_s25 = sshll.u32 %s6766_s7, 4  ;;  %s81_s27 = int_to_ptr.hbm [resolvable:$true] %s80_s27  ;;  %s104_s25 = int_to_ptr.vmem [resolvable:$true] %s103_s25 }
  0x25   :  { %85 = dma.hbm_to_vmem [thread:$0]  %s81_s27, 32, %s83_s5, [#allocation9]  }
  0x26   :  { %s7241_s8 = sld [smem:[#allocation47_spill]]  ;;  %s6768_s21 = smov 16  }
  0x27   :  { %s6769_s30 = smov [#allocation14]   ;;  %s153_s27 = sshll.u32 %s7209_s11, 4  ;;  %s154_s27 = int_to_ptr.hbm [resolvable:$true] %s153_s27 }
  0x28   :  { %s101_s6 = sshll.u32 %s7240_s2, 4  ;;  %s130_s3 = sshll.u32 %s6769_s30, 4  ;;  %s102_s6 = int_to_ptr.hbm [resolvable:$true] %s101_s6  ;;  %s131_s3 = int_to_ptr.vmem [resolvable:$true] %s130_s3 }
  0x29   :  { %109 = dma.hbm_to_vmem [thread:$0]  %s102_s6, 8192, %s104_s25, [#allocation12], %s6767_s22, %s6767_s22, %s6768_s21  }
  0x2a   :  { %s180_s2 = sshll.u32 %s7212_s14, 4  ;;  %s6770_s7 = smov [#allocation17]   ;;  %s181_s2 = int_to_ptr.hbm [resolvable:$true] %s180_s2 }
  0x2b   :  { %s155_s26 = sshll.u32 %s6770_s7, 4  ;;  %s6771_s25 = smov [#allocation20]   ;;  %s156_s26 = int_to_ptr.vmem [resolvable:$true] %s155_s26 }
  0x2c   :  { %s128_s24 = sshll.u32 %s7241_s8, 4  ;;  %s182_s6 = sshll.u32 %s6771_s25, 4  ;;  %s129_s24 = int_to_ptr.hbm [resolvable:$true] %s128_s24  ;;  %s183_s6 = int_to_ptr.vmem [resolvable:$true] %s182_s6 }
  0x2d   :  { %133 = dma.hbm_to_vmem [thread:$0]  %s129_s24, 64, %s131_s3, [#allocation15]  }
  0x2e   :  { %161 = dma.hbm_to_vmem [thread:$0]  %s154_s27, 16384, %s156_s26, [#allocation18], %s6767_s22, %s6767_s22, %s6768_s21  }
  0x2f   :  { %s208_s11 = sshll.u32 %s7216_s18, 4  ;;  %s7242_s14 = sld [smem:[#allocation39_spill]]  ;;  %s209_s11 = int_to_ptr.hbm [resolvable:$true] %s208_s11 }
  0x30   :  { %185 = dma.hbm_to_vmem [thread:$0]  %s181_s2, 64, %s183_s6, [#allocation21]  }
  0x31   :  { %s6772_s9 = smov [#allocation23]   ;;  %s6773_s5 = smov [#allocation2]  }
  0x32   :  { %s210_s0 = sshll.u32 %s6772_s9, 4  ;;  %s47_s27 = sshll.u32 %s6773_s5, 4  ;;  %s211_s0 = int_to_ptr.vmem [resolvable:$true] %s210_s0  ;;  %s48_s27 = int_to_ptr.vmem [resolvable:$true] %s47_s27 }
  0x33   :  { %213 = dma.hbm_to_vmem [thread:$0]  %s209_s11, 32, %s211_s0, [#allocation24]  }
  0x34   :  { %s7243_s26 = sld [smem:[#allocation41_spill]]  ;;  %s6774_s8 = smov [#allocation7]  }
  0x35   :  { %s45_s3 = sshll.u32 %s7242_s14, 4  ;;  %s7244_s6 = sld [smem:[#allocation43_spill]]  ;;  %s46_s3 = int_to_ptr.hbm [resolvable:$true] %s45_s3 }
  0x36   :  { %50 = dma.hbm_to_vmem [thread:$0]  %s46_s3, 256, %s48_s27, [#allocation3]  }
  0x37   :  { %s71_s24 = sshll.u32 %s6774_s8, 4  ;;  %s6775_s30 = smov [#allocation10]   ;;  %s72_s24 = int_to_ptr.vmem [resolvable:$true] %s71_s24 }
  0x38   :  { %s93_s11 = sshll.u32 %s6775_s30, 4  ;;  %s7245_s0 = sld [smem:[#allocation46_spill]]  ;;  %s94_s11 = int_to_ptr.vmem [resolvable:$true] %s93_s11 }
  0x39   :  { %s7246_s27 = sld [smem:[#allocation48_spill]]  ;;  %s6777_s2 = smov [#allocation16]  }
  0x3a   :  { %s69_s25 = sshll.u32 %s7243_s26, 4  ;;  %s6776_s26 = smov [#allocation13]   ;;  %s70_s25 = int_to_ptr.hbm [resolvable:$true] %s69_s25 }
  0x3b   :  { %s91_s1 = sshll.u32 %s7244_s6, 4  ;;  %s119_s18 = sshll.u32 %s6776_s26, 4  ;;  %s92_s1 = int_to_ptr.hbm [resolvable:$true] %s91_s1  ;;  %s120_s18 = int_to_ptr.vmem [resolvable:$true] %s119_s18 }
  0x3c   :  { %74 = dma.hbm_to_vmem [thread:$0]  %s70_s25, 32, %s72_s24, [#allocation6]  }
  0x3d   :  { %96 = dma.hbm_to_vmem [thread:$0]  %s92_s1, 32, %s94_s11, [#allocation9]  }
  0x3e   :  { %s117_s5 = sshll.u32 %s7245_s0, 4  ;;  %s140_s25 = sshll.u32 %s6777_s2, 4  ;;  %s118_s5 = int_to_ptr.hbm [resolvable:$true] %s117_s5  ;;  %s141_s25 = int_to_ptr.vmem [resolvable:$true] %s140_s25 }
  0x3f   :  { %s138_s7 = sshll.u32 %s7246_s27, 4  ;;  %s167_s24 = sshll.u32 %s7210_s12, 4  ;;  %s139_s7 = int_to_ptr.hbm [resolvable:$true] %s138_s7  ;;  %s168_s24 = int_to_ptr.hbm [resolvable:$true] %s167_s24 }
  0x40   :  { %122 = dma.hbm_to_vmem [thread:$0]  %s118_s5, 64, %s120_s18, [#allocation12]  }
  0x41   :  { %146 = dma.hbm_to_vmem [thread:$0]  %s139_s7, 16384, %s141_s25, [#allocation15], %s6767_s22, %s6767_s22, %s6768_s21  }
  0x42   :  { %s190_s11 = sshll.u32 %s7213_s15, 4  ;;  %s6778_s14 = smov [#allocation19]   ;;  %s191_s11 = int_to_ptr.hbm [resolvable:$true] %s190_s11 }
  0x43   :  { %s169_s9 = sshll.u32 %s6778_s14, 4  ;;  %s6779_s0 = smov [#allocation22]   ;;  %s170_s9 = int_to_ptr.vmem [resolvable:$true] %s169_s9 }
  0x44   :  { %172 = dma.hbm_to_vmem [thread:$0]  %s168_s24, 64, %s170_s9, [#allocation18]  }
  0x45   :  { %s192_s5 = sshll.u32 %s6779_s0, 4  ;;  %s218_s12 = sshll.u32 %s7217_s19, 4  ;;  %s193_s5 = int_to_ptr.vmem [resolvable:$true] %s192_s5  ;;  %s219_s12 = int_to_ptr.hbm [resolvable:$true] %s218_s12 }
  0x46   :  { %198 = dma.hbm_to_vmem [thread:$0]  %s191_s11, 8192, %s193_s5, [#allocation21], %s6763_s4, %s6763_s4, %s6764_s28  }
  0x47   :  { %s6780_s21 = smov [#allocation25]   ;;  %s237_s7 = sshll.u32 %s7221_s23, 4  ;;  %s238_s7 = int_to_ptr.hbm [resolvable:$true] %s237_s7 }
  0x48   :  { %s220_s22 = sshll.u32 %s6780_s21, 4  ;;  %s6781_s26 = smov 64   ;;  %s221_s22 = int_to_ptr.vmem [resolvable:$true] %s220_s22 }
  0x49   :  { %s6782_s18 = smov 4   ;;  %s6783_s2 = smov [#allocation26]  }
  0x4a   :  { %226 = dma.hbm_to_vmem [thread:$0]  %s219_s12, 2048, %s221_s22, [#allocation24], %s6781_s26, %s6781_s26, %s6782_s18  }
  0x4b   :  { %s239_s25 = sshll.u32 %s6783_s2, 4  ;;  %s240_s25 = int_to_ptr.vmem [resolvable:$true] %s239_s25 }
  0x4c   :  { %245 = dma.hbm_to_vmem [thread:$0]  %s238_s7, 1024, %s240_s25, [#allocation27], %s6781_s26, %s6781_s26, %s6782_s18  }
  0x4d   :  { %6742 = dma.done.wait [#allocation3], 256  }
  0x4e   :  { %6743 = vsyncadd [#allocation3], 4294967040 }
  0x4f   :  { %6744 = dma.done.wait [#allocation6], 3104  }
  0x50   :  { %6745 = vsyncadd [#allocation6], 4294964192 }
  0x51   :  { %6746 = dma.done.wait [#allocation9], 64  }
  0x52   :  { %6747 = vsyncadd [#allocation9], 4294967232 }
  0x53   :  { %6748 = dma.done.wait [#allocation12], 8256  }
  0x54   :  { %6749 = vsyncadd [#allocation12], 4294959040 }
  0x55   :  { %6750 = dma.done.wait [#allocation15], 16448  }
  0x56   :  { %6751 = vsyncadd [#allocation15], 4294950848 }
  0x57   :  { %6752 = dma.done.wait [#allocation18], 16448  }
  0x58   :  { %6753 = vsyncadd [#allocation18], 4294950848 }
  0x59   :  { %6754 = dma.done.wait [#allocation21], 8256  }
  0x5a   :  { %6755 = vsyncadd [#allocation21], 4294959040 }
  0x5b   :  { %6756 = dma.done.wait [#allocation24], 2080  }
  0x5c   :  { %6757 = vsyncadd [#allocation24], 4294965216 }
  0x5d   :  { %6758 = dma.done.wait [#allocation27], 1024  }
  0x5e   :  { %6759 = vsyncadd [#allocation27], 4294966272  ;;  %v4172_v0 = vld [vmem:[#allocation5 + $0x70] sm:$0xf]  ;;  %v5859_v1 = vld [vmem:[#allocation5 + $0x74] sm:$0xf0] }
  0x5f   :  { %v5858_v2 = vld [vmem:[#allocation5 + $0x74] sm:$0xf]  ;;  %v4173_v3 = vor.u32 %v5859_v1, %v4172_v0  ;;  %v4174_v4 = vld [vmem:[#allocation5 + $0x78] sm:$0xf0]  ;;  %v4164_v5 = vld [vmem:[#allocation5 + $0x60] sm:$0xf] }
  0x60   :  { %v5857_v6 = vld [vmem:[#allocation5 + $0x64] sm:$0xf0]  ;;  %v4177_v7 = vor.u32 %v5858_v2, %v4174_v4  ;;  %v5856_v8 = vld [vmem:[#allocation5 + $0x64] sm:$0xf]  ;;  %v4166_v9 = vld [vmem:[#allocation5 + $0x68] sm:$0xf0] }
  0x61   :  { %471 = vmatpush.bf16.msra.mxu0 %v4173_v3  ;;  %v4165_v10 = vor.u32 %v5857_v6, %v4164_v5  ;;  %v4156_v11 = vld [vmem:[#allocation5 + $0x50] sm:$0xf]  ;;  %v4169_v12 = vor.u32 %v5856_v8, %v4166_v9  ;;  %v5855_v13 = vld [vmem:[#allocation5 + $0x54] sm:$0xf0]  ;;  %v5866_v14 = vld [vmem:[#allocation5 + $0xb4] sm:$0xf] }
  0x62   :  { %497 = vmatpush.bf16.msra.mxu2 %v4177_v7  ;;  %v4206_v15 = vld [vmem:[#allocation5 + $0xb8] sm:$0xf0]  ;;  %v5854_v16 = vld [vmem:[#allocation5 + $0x54] sm:$0xf]  ;;  %v5864_v19 = vld [vmem:[#allocation5 + $0xa4] sm:$0xf]  ;;  %v4157_v21 = vor.u32 %v5855_v13, %v4156_v11 }
  0x63   :  { %v4158_v17 = vld [vmem:[#allocation5 + $0x58] sm:$0xf0]  ;;  %v4209_v18 = vor.u32 %v5866_v14, %v4206_v15  ;;  %v4198_v20 = vld [vmem:[#allocation5 + $0xa8] sm:$0xf0]  ;;  %v4204_v23 = vld [vmem:[#allocation5 + $0xb0] sm:$0xf] }
  0x64   :  { %v4201_v22 = vor.u32 %v5864_v19, %v4198_v20  ;;  %v5867_v24 = vld [vmem:[#allocation5 + $0xb4] sm:$0xf0]  ;;  %v4161_v25 = vor.u32 %v5854_v16, %v4158_v17  ;;  %v4148_v26 = vld [vmem:[#allocation5 + $0x40] sm:$0xf]  ;;  %v5853_v27 = vld [vmem:[#allocation5 + $0x44] sm:$0xf0] }
  0x65   :  { %472 = vmatpush.bf16.msra.mxu0 %v4165_v10  ;;  %514 = vmatpush.bf16.msra.mxu3 %v4209_v18  ;;  %v4205_v28 = vor.u32 %v5867_v24, %v4204_v23  ;;  %v5862_v29 = vld [vmem:[#allocation5 + $0x94] sm:$0xf]  ;;  %v5852_v30 = vld [vmem:[#allocation5 + $0x44] sm:$0xf]  ;;  %v4150_v31 = vld [vmem:[#allocation5 + $0x48] sm:$0xf0]  ;;  %v4149_v35 = vor.u32 %v5853_v27, %v4148_v26 }
  0x66   :  { %498 = vmatpush.bf16.msra.mxu2 %v4169_v12  ;;  %v4190_v32 = vld [vmem:[#allocation5 + $0x98] sm:$0xf0]  ;;  %v4196_v33 = vld [vmem:[#allocation5 + $0xa0] sm:$0xf]  ;;  %v5865_v34 = vld [vmem:[#allocation5 + $0xa4] sm:$0xf0]  ;;  %v4153_v40 = vor.u32 %v5852_v30, %v4150_v31 }
  0x67   :  { %488 = vmatpush.bf16.msra.mxu1 %v4205_v28  ;;  %v4140_v36 = vld [vmem:[#allocation5 + $0x30] sm:$0xf]  ;;  %v5851_v37 = vld [vmem:[#allocation5 + $0x34] sm:$0xf0]  ;;  %v4193_v38 = vor.u32 %v5862_v29, %v4190_v32  ;;  %v4197_v39 = vor.u32 %v5865_v34, %v4196_v33  ;;  %v5860_v41 = vld [vmem:[#allocation5 + $0x84] sm:$0xf] }
  0x68   :  { %v4182_v42 = vld [vmem:[#allocation5 + $0x88] sm:$0xf0]  ;;  %v4188_v43 = vld [vmem:[#allocation5 + $0x90] sm:$0xf]  ;;  %v5850_v44 = vld [vmem:[#allocation5 + $0x34] sm:$0xf]  ;;  %v4141_v48 = vor.u32 %v5851_v37, %v4140_v36 }
  0x69   :  { %473 = vmatpush.bf16.msra.mxu0 %v4157_v21  ;;  %515 = vmatpush.bf16.msra.mxu3 %v4201_v22  ;;  %v4142_v45 = vld [vmem:[#allocation5 + $0x38] sm:$0xf0]  ;;  %v5863_v46 = vld [vmem:[#allocation5 + $0x94] sm:$0xf0]  ;;  %v4185_v49 = vor.u32 %v5860_v41, %v4182_v42  ;;  %v4180_v51 = vld [vmem:[#allocation5 + $0x80] sm:$0xf] }
  0x6a   :  { %499 = vmatpush.bf16.msra.mxu2 %v4161_v25  ;;  %v4189_v47 = vor.u32 %v5863_v46, %v4188_v43  ;;  %v314_v50 = vld [vmem:[#allocation2 + $0x8] sm:$0xff]  ;;  %v5861_v52 = vld [vmem:[#allocation5 + $0x84] sm:$0xf0]  ;;  %v4145_v53 = vor.u32 %v5850_v44, %v4142_v45  ;;  %v4132_v54 = vld [vmem:[#allocation5 + $0x20] sm:$0xf]  ;;  %vm467_vm0 = vcmask 523264  }
  0x6b   :  { %489 = vmatpush.bf16.msra.mxu1 %v4197_v39  ;;  %v5849_v55 = vld [vmem:[#allocation5 + $0x24] sm:$0xf0]  ;;  %v5848_v56 = vld [vmem:[#allocation5 + $0x24] sm:$0xf]  ;;  %v4134_v57 = vld [vmem:[#allocation5 + $0x28] sm:$0xf0]  ;;  %v316_v58 = vpack.c.bf16 %v314_v50, %v314_v50  ;;  %v4181_v59 = vor.u32 %v5861_v52, %v4180_v51 }
  0x6c   :  { %v4133_v60 = vor.u32 %v5849_v55, %v4132_v54  ;;  %v4137_v61 = vor.u32 %v5848_v56, %v4134_v57  ;;  %v4124_v62 = vld [vmem:[#allocation5 + $0x10] sm:$0xf]  ;;  %v5847_v63 = vld [vmem:[#allocation5 + $0x14] sm:$0xf0]  ;;  %v5846_v0 = vld [vmem:[#allocation5 + $0x14] sm:$0xf] }
  0x6d   :  { %474 = vmatpush.bf16.msra.mxu0 %v4149_v35  ;;  %516 = vmatpush.bf16.msra.mxu3 %v4193_v38  ;;  %v4126_v1 = vld [vmem:[#allocation5 + $0x18] sm:$0xf0]  ;;  %v4125_v2 = vor.u32 %v5847_v63, %v4124_v62  ;;  %v4116_v4 = vld [vmem:[#allocation5] sm:$0xf]  ;;  %v5845_v5 = vld [vmem:[#allocation5 + $0x4] sm:$0xf0] }
  0x6e   :  { %500 = vmatpush.bf16.msra.mxu2 %v4153_v40  ;;  %v4129_v3 = vor.u32 %v5846_v0, %v4126_v1  ;;  %v5844_v6 = vld [vmem:[#allocation5 + $0x4] sm:$0xf]  ;;  %v4118_v7 = vld [vmem:[#allocation5 + $0x8] sm:$0xf0]  ;;  %v4117_v8 = vor.u32 %v5845_v5, %v4116_v4  ;;  %v313_v9 = vld [vmem:[#allocation2] sm:$0xff]  ;;  %v6784_v28 = vmov 256.0  }
  0x6f   :  { %490 = vmatpush.bf16.msra.mxu1 %v4189_v47  ;;  %v4121_v10 = vor.u32 %v5844_v6, %v4118_v7  ;;  %v315_v11 = vpack.c.bf16 %v313_v9, %v313_v9  ;;  %v341_v14 = vld [vmem:[#allocation7] sm:$0x3]  ;;  %6306 = vrcp.f32 %v6784_v28  ;;  %v4326_v31 = vld [vmem:[#allocation11 + $0xe0] sm:$0xf]  ;;  %v5898_v32 = vld [vmem:[#allocation11 + $0xec] sm:$0xf0] }
  0x70   :  { %v343_v16 = vperm.slane %v341_v14, 0  ;;  %v344_v20 = vperm.slane %v341_v14, 1  ;;  %v4454_v33 = vld [vmem:[#allocation11 + $0x1e0] sm:$0xf]  ;;  %v4327_v34 = vor.u32 %v5898_v32, %v4326_v31  ;;  %v5930_v35 = vld [vmem:[#allocation11 + $0x1ec] sm:$0xf0] }
  0x71   :  { %475 = vmatpush.bf16.msra.mxu0 %v4141_v48  ;;  %517 = vmatpush.bf16.msra.mxu3 %v4185_v49  ;;  %v5896_v36 = vld [vmem:[#allocation11 + $0xe4] sm:$0xf]  ;;  %v4328_v37 = vld [vmem:[#allocation11 + $0xf0] sm:$0xf0]  ;;  %v4455_v38 = vor.u32 %v5930_v35, %v4454_v33  ;;  %v4310_v42 = vld [vmem:[#allocation11 + $0xc0] sm:$0xf] }
  0x72   :  { %501 = vmatpush.bf16.msra.mxu2 %v4145_v53  ;;  %v4331_v39 = vor.u32 %v5896_v36, %v4328_v37  ;;  %v5928_v40 = vld [vmem:[#allocation11 + $0x1e4] sm:$0xf]  ;;  %v4456_v41 = vld [vmem:[#allocation11 + $0x1f0] sm:$0xf0]  ;;  %v5894_v44 = vld [vmem:[#allocation11 + $0xcc] sm:$0xf0] }
  0x73   :  { %491 = vmatpush.bf16.msra.mxu1 %v4181_v59  ;;  %v4459_v43 = vor.u32 %v5928_v40, %v4456_v41  ;;  %v4438_v45 = vld [vmem:[#allocation11 + $0x1c0] sm:$0xf]  ;;  %v5926_v46 = vld [vmem:[#allocation11 + $0x1cc] sm:$0xf0]  ;;  %v4311_v47 = vor.u32 %v5894_v44, %v4310_v42  ;;  %v5892_v49 = vld [vmem:[#allocation11 + $0xc4] sm:$0xf] }
  0x74   :  { %4211 = vmatmul.msk.bf16.vlgmr.msra.gmra.mxu3 %vm467_vm0, %v316_v58  ;;  %v4439_v48 = vor.u32 %v5926_v46, %v4438_v45  ;;  %v4312_v50 = vld [vmem:[#allocation11 + $0xd0] sm:$0xf0]  ;;  %v5924_v51 = vld [vmem:[#allocation11 + $0x1c4] sm:$0xf]  ;;  %v4294_v54 = vld [vmem:[#allocation11 + $0xa0] sm:$0xf] }
  0x75   :  { %476 = vmatpush.bf16.msra.mxu0 %v4133_v60  ;;  %v6307_v29 = vpop.eup %6306  ;;  %982 = vmatpush.bf16.msrb.mxu3 %v4455_v38  ;;  %v4315_v52 = vor.u32 %v5892_v49, %v4312_v50  ;;  %v4440_v53 = vld [vmem:[#allocation11 + $0x1d0] sm:$0xf0]  ;;  %v5890_v55 = vld [vmem:[#allocation11 + $0xac] sm:$0xf0]  ;;  %v4422_v57 = vld [vmem:[#allocation11 + $0x1a0] sm:$0xf] }
  0x76   :  { %502 = vmatpush.bf16.msra.mxu2 %v4137_v61  ;;  %4210 = vmatmul.msk.bf16.vlgmr.msra.gmra.mxu1 %vm467_vm0, %v316_v58  ;;  %v527_v30 = vmul.f32 256.0, %v6307_v29  ;;  %v4443_v56 = vor.u32 %v5924_v51, %v4440_v53  ;;  %v5922_v58 = vld [vmem:[#allocation11 + $0x1ac] sm:$0xf0]  ;;  %v5888_v59 = vld [vmem:[#allocation11 + $0xa4] sm:$0xf]  ;;  %v4295_v60 = vor.u32 %v5890_v55, %v4294_v54  ;;  %vm531_vm1 = vweird.f32 %v6307_v29  ;;  %s7247_s4 = sld [smem:[#allocation45_spill]] }
  0x77   :  { %969 = vmatpush.bf16.msrb.mxu1 %v4327_v34  ;;  %v4296_v61 = vld [vmem:[#allocation11 + $0xb0] sm:$0xf0]  ;;  %v5920_v62 = vld [vmem:[#allocation11 + $0x1a4] sm:$0xf]  ;;  %v4423_v0 = vor.u32 %v5922_v58, %v4422_v57  ;;  %v4278_v14 = vld [vmem:[#allocation11 + $0x80] sm:$0xf] }
  0x78   :  { %v4424_v63 = vld [vmem:[#allocation11 + $0x1b0] sm:$0xf0]  ;;  %v4299_v1 = vor.u32 %v5888_v59, %v4296_v61  ;;  %v4390_v28 = vld [vmem:[#allocation11 + $0x160] sm:$0xf]  ;;  %v5880_v31 = vld [vmem:[#allocation11 + $0x64] sm:$0xf] }
  0x79   :  { %477 = vmatpush.bf16.msra.mxu0 %v4125_v2  ;;  %983 = vmatpush.bf16.msrb.mxu3 %v4439_v48  ;;  %v528_v2 = vsub.f32 1.0, %v527_v30  ;;  %v5914_v30 = vld [vmem:[#allocation11 + $0x16c] sm:$0xf0]  ;;  %v4264_v32 = vld [vmem:[#allocation11 + $0x70] sm:$0xf0]  ;;  %s7248_s14 = sld [smem:[#allocation49_spill]] }
  0x7a   :  { %503 = vmatpush.bf16.msra.mxu2 %v4129_v3  ;;  %v4427_v3 = vor.u32 %v5920_v62, %v4424_v63  ;;  %v4391_v33 = vor.u32 %v5914_v30, %v4390_v28  ;;  %v4267_v34 = vor.u32 %v5880_v31, %v4264_v32  ;;  %v5912_v35 = vld [vmem:[#allocation11 + $0x164] sm:$0xf]  ;;  %v4392_v36 = vld [vmem:[#allocation11 + $0x170] sm:$0xf0]  ;;  %v4246_v38 = vld [vmem:[#allocation11 + $0x40] sm:$0xf] }
  0x7b   :  { %970 = vmatpush.bf16.msrb.mxu1 %v4311_v47  ;;  %v529_v4 = vmul.f32 %v6307_v29, %v528_v2  ;;  %v4395_v37 = vor.u32 %v5912_v35, %v4392_v36  ;;  %v4374_v40 = vld [vmem:[#allocation11 + $0x140] sm:$0xf]  ;;  %v5910_v42 = vld [vmem:[#allocation11 + $0x14c] sm:$0xf0]  ;;  %v4248_v44 = vld [vmem:[#allocation11 + $0x50] sm:$0xf0] }
  0x7c   :  { %v4375_v45 = vor.u32 %v5910_v42, %v4374_v40  ;;  %v5908_v47 = vld [vmem:[#allocation11 + $0x144] sm:$0xf]  ;;  %v4376_v48 = vld [vmem:[#allocation11 + $0x150] sm:$0xf0]  ;;  %v4230_v50 = vld [vmem:[#allocation11 + $0x20] sm:$0xf] }
  0x7d   :  { %478 = vmatpush.bf16.msra.mxu0 %v4117_v8  ;;  %984 = vmatpush.bf16.msrb.mxu3 %v4423_v0  ;;  %v530_v5 = vadd.f32 %v6307_v29, %v529_v4  ;;  %v4379_v49 = vor.u32 %v5908_v47, %v4376_v48  ;;  %v5874_v51 = vld [vmem:[#allocation11 + $0x2c] sm:$0xf0]  ;;  %v5872_v55 = vld [vmem:[#allocation11 + $0x24] sm:$0xf]  ;;  %v4214_v62 = vld [vmem:[#allocation11] sm:$0xf] }
  0x7e   :  { %504 = vmatpush.bf16.msra.mxu2 %v4121_v10  ;;  %v4231_v53 = vor.u32 %v5874_v51, %v4230_v50  ;;  %v5906_v54 = vld [vmem:[#allocation11 + $0x12c] sm:$0xf0]  ;;  %v5904_v59 = vld [vmem:[#allocation11 + $0x124] sm:$0xf]  ;;  %v4342_v0 = vld [vmem:[#allocation11 + $0x100] sm:$0xf] }
  0x7f   :  { %971 = vmatpush.bf16.msrb.mxu1 %v4295_v60  ;;  %v6989_v6 = vsel %vm531_vm1, %v6307_v29, %v530_v5  ;;  %v4360_v60 = vld [vmem:[#allocation11 + $0x130] sm:$0xf0]  ;;  %v5870_v63 = vld [vmem:[#allocation11 + $0xc] sm:$0xf0]  ;;  %v4446_v28 = vld [vmem:[#allocation11 + $0x1c8] sm:$0xf] }
  0x80   :  { %479 = vmatmul.bf16.vlgmr.msra.gmra.mxu0 %v315_v11  ;;  %v4363_v61 = vor.u32 %v5904_v59, %v4360_v60  ;;  %v5902_v2 = vld [vmem:[#allocation11 + $0x10c] sm:$0xf0]  ;;  %v4216_v4 = vld [vmem:[#allocation11 + $0x10] sm:$0xf0]  ;;  %v5893_v30 = vld [vmem:[#allocation11 + $0xcc] sm:$0xf] }
  0x81   :  { %505 = vmatmul.bf16.vlgmr.msra.gmra.mxu2 %v315_v11  ;;  %995 = vmatpush.bf16.msrb.mxu0 %v4331_v39  ;;  %v5878_v39 = vld [vmem:[#allocation11 + $0x4c] sm:$0xf0]  ;;  %v4343_v5 = vor.u32 %v5902_v2, %v4342_v0  ;;  %v4320_v32 = vld [vmem:[#allocation11 + $0xd8] sm:$0xf0]  ;;  %v5889_v42 = vld [vmem:[#allocation11 + $0xac] sm:$0xf] }
  0x82   :  { %1008 = vmatpush.bf16.msrb.mxu2 %v4459_v43  ;;  %v4247_v41 = vor.u32 %v5878_v39, %v4246_v38  ;;  %v5876_v43 = vld [vmem:[#allocation11 + $0x44] sm:$0xf]  ;;  %v4323_v35 = vor.u32 %v5893_v30, %v4320_v32  ;;  %v5891_v38 = vld [vmem:[#allocation11 + $0xb4] sm:$0xf0]  ;;  %v4430_v39 = vld [vmem:[#allocation11 + $0x1a8] sm:$0xf] }
  0x83   :  { %v4251_v46 = vor.u32 %v5876_v43, %v4248_v44  ;;  %v4304_v43 = vld [vmem:[#allocation11 + $0xb8] sm:$0xf0]  ;;  %v4286_v48 = vld [vmem:[#allocation11 + $0x88] sm:$0xf]  ;;  %v5887_v50 = vld [vmem:[#allocation11 + $0x94] sm:$0xf0] }
  0x84   :  { %v4432_v47 = vld [vmem:[#allocation11 + $0x1b8] sm:$0xf0]  ;;  %v4414_v51 = vld [vmem:[#allocation11 + $0x188] sm:$0xf]  ;;  %v5907_v30 = vld [vmem:[#allocation11 + $0x134] sm:$0xf0] }
  0x85   :  { %996 = vmatpush.bf16.msrb.mxu0 %v4315_v52  ;;  %v4358_v52 = vld [vmem:[#allocation11 + $0x120] sm:$0xf]  ;;  %v4398_v0 = vld [vmem:[#allocation11 + $0x168] sm:$0xf]  ;;  %v4240_v32 = vld [vmem:[#allocation11 + $0x38] sm:$0xf0] }
  0x86   :  { %1009 = vmatpush.bf16.msrb.mxu2 %v4443_v56  ;;  %v4232_v56 = vld [vmem:[#allocation11 + $0x30] sm:$0xf0]  ;;  %v4359_v57 = vor.u32 %v5906_v54, %v4358_v52  ;;  %v5919_v52 = vld [vmem:[#allocation11 + $0x194] sm:$0xf0]  ;;  %v4288_v54 = vld [vmem:[#allocation11 + $0x98] sm:$0xf0] }
  0x87   :  { %v4235_v58 = vor.u32 %v5872_v55, %v4232_v56  ;;  %v5917_v55 = vld [vmem:[#allocation11 + $0x18c] sm:$0xf]  ;;  %v4287_v56 = vor.u32 %v5887_v50, %v4286_v48  ;;  %s7249_s5 = sld [smem:[#allocation50_spill]]  ;;  %s6787_s21 = smov [#allocation28]  }
  0x88   :  { %s7250_s12 = sld [smem:[#allocation51_spill]]  ;;  %s4094_s22 = sshll.u32 %s6787_s21, 4  ;;  %s4095_s22 = int_to_ptr.vmem [resolvable:$true] %s4094_s22 }
  0x89   :  { %997 = vmatpush.bf16.msrb.mxu0 %v4299_v1  ;;  %v4215_v1 = vor.u32 %v5870_v63, %v4214_v62  ;;  %v4270_v62 = vld [vmem:[#allocation11 + $0x68] sm:$0xf]  ;;  %v5883_v63 = vld [vmem:[#allocation11 + $0x74] sm:$0xf0]  ;;  %s7255_s7 = sld [smem:[#allocation52_spill]] }
  0x8a   :  { %1010 = vmatpush.bf16.msrb.mxu2 %v4427_v3  ;;  %v5868_v3 = vld [vmem:[#allocation11 + $0x4] sm:$0xf]  ;;  %v4271_v2 = vor.u32 %v5883_v63, %v4270_v62 }
  0x8f   :  { %s4096_s26 = sshll.u32 %s7255_s7, 4  ;;  %s4097_s26 = int_to_ptr.hbm [resolvable:$true] %s4096_s26 }
  0xf3   :  { %v493_v12 = vpop.f32.mrf.mxu1 }
  0xf7   :  { %v519_v13 = vpop.f32.mrf.mxu3 }
  0xfb   :  { %v495_v15 = vpop.f32.mrf.mxu1 }
  0xfc   :  { %v5886_v15 = vld [vmem:[#allocation11 + $0x8c] sm:$0xf0] }
  0xfd   :  { %v480_v17 = vpop.f32.mrf.mxu0 }
  0xfe   :  { %v481_v19 = vadd.f32 %v480_v17, %v343_v16  ;;  %v4406_v16 = vld [vmem:[#allocation11 + $0x180] sm:$0xf]  ;;  %v4279_v17 = vor.u32 %v5886_v15, %v4278_v14  ;;  %v5899_v14 = vld [vmem:[#allocation11 + $0xf4] sm:$0xf0]  ;;  %v4462_v15 = vld [vmem:[#allocation11 + $0x1e8] sm:$0xf] }
  0xff   :  { %v521_v18 = vpop.f32.mrf.mxu3 }
 0x100   :  { %v6983_v22 = vadd.f32 %v493_v12, %v481_v19  ;;  %v5918_v18 = vld [vmem:[#allocation11 + $0x18c] sm:$0xf0]  ;;  %v5884_v19 = vld [vmem:[#allocation11 + $0x84] sm:$0xf]  ;;  %972 = vmatpush.bf16.msrb.mxu1 %v4279_v17 }
 0x104   :  { %v506_v21 = vpop.f32.mrf.mxu2 }
 0x105   :  { %v507_v23 = vadd.f32 %v506_v21, %v344_v20  ;;  %v482_v24 = vpop.f32.mrf.mxu0  ;;  %v4280_v20 = vld [vmem:[#allocation11 + $0x90] sm:$0xf0]  ;;  %v4407_v21 = vor.u32 %v5918_v18, %v4406_v16  ;;  %v5931_v16 = vld [vmem:[#allocation11 + $0x1f4] sm:$0xf0] }
 0x106   :  { %v4408_v24 = vld [vmem:[#allocation11 + $0x190] sm:$0xf0]  ;;  %v4463_v18 = vor.u32 %v5931_v16, %v4462_v15  ;;  %v5879_v16 = vld [vmem:[#allocation11 + $0x54] sm:$0xf0] }
 0x107   :  { %v6985_v25 = vadd.f32 %v519_v13, %v507_v23  ;;  %v5916_v23 = vld [vmem:[#allocation11 + $0x184] sm:$0xf]  ;;  %985 = vmatpush.bf16.msrb.mxu3 %v4407_v21  ;;  %v5929_v21 = vld [vmem:[#allocation11 + $0x1ec] sm:$0xf] }
 0x109   :  { %v523_v26 = vadd.f32 %v6985_v25, %v6983_v22 }
 0x10b   :  { %524 = vadd.xlane.f32.xlu0 %v523_v26  ;;  %v4262_v26 = vld [vmem:[#allocation11 + $0x60] sm:$0xf]  ;;  %986 = vmatpush.bf16.msrb.mxu3 %v4391_v33  ;;  %v5925_v33 = vld [vmem:[#allocation11 + $0x1cc] sm:$0xf] }
 0x10c   :  { %v508_v27 = vpop.f32.mrf.mxu2 }
 0x10d   :  { %v5882_v27 = vld [vmem:[#allocation11 + $0x6c] sm:$0xf0] }
 0x10e   :  { %v4263_v29 = vor.u32 %v5882_v27, %v4262_v26 }
 0x10f   :  { %987 = vmatpush.bf16.msrb.mxu3 %v4375_v45  ;;  %v4307_v45 = vor.u32 %v5889_v42, %v4304_v43  ;;  %v5869_v43 = vld [vmem:[#allocation11 + $0xc] sm:$0xf] }
 0x110   :  { %973 = vmatpush.bf16.msrb.mxu1 %v4263_v29  ;;  %v5927_v29 = vld [vmem:[#allocation11 + $0x1d4] sm:$0xf0] }
 0x111   :  { %v4447_v31 = vor.u32 %v5927_v29, %v4446_v28  ;;  %v5875_v28 = vld [vmem:[#allocation11 + $0x34] sm:$0xf0]  ;;  %v4366_v29 = vld [vmem:[#allocation11 + $0x128] sm:$0xf] }
 0x113   :  { %988 = vmatpush.bf16.msrb.mxu3 %v4359_v57  ;;  %v4415_v57 = vor.u32 %v5919_v52, %v4414_v51 }
 0x114   :  { %974 = vmatpush.bf16.msrb.mxu1 %v4247_v41  ;;  %v5923_v41 = vld [vmem:[#allocation11 + $0x1b4] sm:$0xf0] }
 0x115   :  { %v4431_v44 = vor.u32 %v5923_v41, %v4430_v39  ;;  %v5871_v39 = vld [vmem:[#allocation11 + $0x14] sm:$0xf0] }
 0x116   :  { %v5903_v41 = vld [vmem:[#allocation11 + $0x114] sm:$0xf0] }
 0x117   :  { %989 = vmatpush.bf16.msrb.mxu3 %v4343_v5  ;;  %v4272_v5 = vld [vmem:[#allocation11 + $0x78] sm:$0xf0] }
 0x118   :  { %975 = vmatpush.bf16.msrb.mxu1 %v4231_v53  ;;  %v5885_v53 = vld [vmem:[#allocation11 + $0x8c] sm:$0xf] }
 0x119   :  { %v4291_v59 = vor.u32 %v5885_v53, %v4288_v54 }
 0x11b   :  { %1034 = vmatpush.bf16.msra.mxu3 %v4463_v18 }
 0x11c   :  { %976 = vmatpush.bf16.msrb.mxu1 %v4215_v1 }
 0x11f   :  { %1035 = vmatpush.bf16.msra.mxu3 %v4447_v31  ;;  %v5873_v31 = vld [vmem:[#allocation11 + $0x2c] sm:$0xf] }
 0x123   :  { %1036 = vmatpush.bf16.msra.mxu3 %v4431_v44  ;;  %v4224_v44 = vld [vmem:[#allocation11 + $0x18] sm:$0xf0] }
 0x124   :  { %v4227_v51 = vor.u32 %v5869_v43, %v4224_v44  ;;  %v6785_v43 = vmov 512.0  }
 0x127   :  { %1037 = vmatpush.bf16.msra.mxu3 %v4415_v57 }
 0x17e   :  { %v525_v7 = vpop.xlane.xlu0 %524 }
 0x17f   :  { %v533_v8 = vmul.f32 %v6989_v6, %v525_v7  ;;  %v4219_v7 = vor.u32 %v5868_v3, %v4216_v4  ;;  %v5915_v3 = vld [vmem:[#allocation11 + $0x174] sm:$0xf0]  ;;  %v5881_v4 = vld [vmem:[#allocation11 + $0x6c] sm:$0xf] }
 0x181   :  { %v6993_v9 = vsub.f32 %v6983_v22, %v533_v8  ;;  %v6996_v10 = vsub.f32 %v6985_v25, %v533_v8  ;;  %v4283_v22 = vor.u32 %v5884_v19, %v4280_v20  ;;  %v4411_v25 = vor.u32 %v5916_v23, %v4408_v24  ;;  %v5900_v8 = vld [vmem:[#allocation11 + $0x104] sm:$0xf]  ;;  %v5897_v19 = vld [vmem:[#allocation11 + $0xec] sm:$0xf]  ;;  %v4336_v20 = vld [vmem:[#allocation11 + $0xf8] sm:$0xf0] }
 0x182   :  { %v4464_v23 = vld [vmem:[#allocation11 + $0x1f8] sm:$0xf0]  ;;  %v4318_v24 = vld [vmem:[#allocation11 + $0xc8] sm:$0xf] }
 0x183   :  { %v536_v11 = vmul.f32 %v6993_v9, %v6993_v9  ;;  %v537_v12 = vmul.f32 %v6996_v10, %v6996_v10  ;;  %998 = vmatpush.bf16.msrb.mxu0 %v4283_v22  ;;  %1011 = vmatpush.bf16.msrb.mxu2 %v4411_v25  ;;  %v4339_v22 = vor.u32 %v5897_v19, %v4336_v20  ;;  %v5895_v25 = vld [vmem:[#allocation11 + $0xd4] sm:$0xf0]  ;;  %v5877_v20 = vld [vmem:[#allocation11 + $0x4c] sm:$0xf] }
 0x184   :  { %v4467_v26 = vor.u32 %v5929_v21, %v4464_v23  ;;  %v4319_v27 = vor.u32 %v5895_v25, %v4318_v24  ;;  %v5911_v19 = vld [vmem:[#allocation11 + $0x154] sm:$0xf0]  ;;  %v4256_v21 = vld [vmem:[#allocation11 + $0x58] sm:$0xf0]  ;;  %v5909_v24 = vld [vmem:[#allocation11 + $0x14c] sm:$0xf] }
 0x185   :  { %v538_v13 = vadd.f32 %v537_v12, %v536_v11  ;;  %v4344_v11 = vld [vmem:[#allocation11 + $0x110] sm:$0xf0]  ;;  %v4334_v12 = vld [vmem:[#allocation11 + $0xe8] sm:$0xf]  ;;  %v4259_v23 = vor.u32 %v5877_v20, %v4256_v21  ;;  %v4384_v25 = vld [vmem:[#allocation11 + $0x158] sm:$0xf0] }
 0x186   :  { %v4335_v17 = vor.u32 %v5899_v14, %v4334_v12  ;;  %v4400_v12 = vld [vmem:[#allocation11 + $0x178] sm:$0xf0] }
 0x187   :  { %539 = vadd.xlane.f32.xlu0 %v538_v13  ;;  %999 = vmatpush.bf16.msrb.mxu0 %v4267_v34  ;;  %v4347_v13 = vor.u32 %v5900_v8, %v4344_v11  ;;  %v4448_v34 = vld [vmem:[#allocation11 + $0x1d8] sm:$0xf0]  ;;  %v4275_v8 = vor.u32 %v5881_v4, %v4272_v5  ;;  %v5913_v11 = vld [vmem:[#allocation11 + $0x16c] sm:$0xf] }
 0x188   :  { %1012 = vmatpush.bf16.msrb.mxu2 %v4395_v37  ;;  %1021 = vmatpush.bf16.msra.mxu1 %v4335_v17  ;;  %v4451_v36 = vor.u32 %v5925_v33, %v4448_v34  ;;  %v4302_v37 = vld [vmem:[#allocation11 + $0xa8] sm:$0xf]  ;;  %v4403_v15 = vor.u32 %v5913_v11, %v4400_v12  ;;  %v5905_v33 = vld [vmem:[#allocation11 + $0x12c] sm:$0xf] }
 0x189   :  { %v4303_v40 = vor.u32 %v5891_v38, %v4302_v37  ;;  %v4382_v17 = vld [vmem:[#allocation11 + $0x148] sm:$0xf]  ;;  %v4243_v38 = vor.u32 %v5873_v31, %v4240_v32 }
 0x18a   :  { %v4222_v37 = vld [vmem:[#allocation11 + $0x8] sm:$0xf] }
 0x18b   :  { %1000 = vmatpush.bf16.msrb.mxu0 %v4251_v46  ;;  %v5921_v46 = vld [vmem:[#allocation11 + $0x1ac] sm:$0xf] }
 0x18c   :  { %1013 = vmatpush.bf16.msrb.mxu2 %v4379_v49  ;;  %1022 = vmatpush.bf16.msra.mxu1 %v4319_v27  ;;  %v4435_v49 = vor.u32 %v5921_v46, %v4432_v47  ;;  %v4387_v27 = vor.u32 %v5909_v24, %v4384_v25  ;;  %v5901_v46 = vld [vmem:[#allocation11 + $0x10c] sm:$0xf]  ;;  %v4352_v47 = vld [vmem:[#allocation11 + $0x118] sm:$0xf0] }
 0x18d   :  { %v4355_v53 = vor.u32 %v5901_v46, %v4352_v47  ;;  %v4582_v47 = vld [vmem:[#allocation16 + $0xe0] sm:$0xf] }
 0x18f   :  { %1001 = vmatpush.bf16.msrb.mxu0 %v4235_v58  ;;  %v4416_v58 = vld [vmem:[#allocation11 + $0x198] sm:$0xf0] }
 0x190   :  { %1014 = vmatpush.bf16.msrb.mxu2 %v4363_v61  ;;  %1023 = vmatpush.bf16.msra.mxu1 %v4303_v40  ;;  %v4419_v60 = vor.u32 %v5917_v55, %v4416_v58  ;;  %v4350_v40 = vld [vmem:[#allocation11 + $0x108] sm:$0xf]  ;;  %v563_v58 = vld [vmem:[#allocation10] sm:$0x3] }
 0x191   :  { %v4351_v50 = vor.u32 %v5903_v41, %v4350_v40 }
 0x193   :  { %1002 = vmatpush.bf16.msrb.mxu0 %v4219_v7  ;;  %v4399_v7 = vor.u32 %v5915_v3, %v4398_v0  ;;  %v565_v0 = vperm.slane %v563_v58, 0 }
 0x194   :  { %1015 = vmatpush.bf16.msrb.mxu2 %v4347_v13  ;;  %1024 = vmatpush.bf16.msra.mxu1 %v4287_v56  ;;  %v4254_v13 = vld [vmem:[#allocation11 + $0x48] sm:$0xf]  ;;  %v555_v56 = vld [vmem:[#allocation8] sm:$0x3] }
 0x195   :  { %1038 = vmatpush.bf16.msra.mxu3 %v4399_v7  ;;  %v4255_v18 = vor.u32 %v5879_v16, %v4254_v13 }
 0x197   :  { %1047 = vmatpush.bf16.msra.mxu0 %v4339_v22  ;;  %v4383_v22 = vor.u32 %v5911_v19, %v4382_v17  ;;  %v639_v17 = vld [vmem:[%s7247_s4] sm:$0xf] }
 0x198   :  { %1060 = vmatpush.bf16.msra.mxu2 %v4467_v26  ;;  %1025 = vmatpush.bf16.msra.mxu1 %v4271_v2  ;;  %v4238_v26 = vld [vmem:[#allocation11 + $0x28] sm:$0xf]  ;;  %v642_v19 = vperm.slane %v639_v17, 1  ;;  %v643_v25 = vperm.slane %v639_v17, 2 }
 0x199   :  { %1039 = vmatpush.bf16.msra.mxu3 %v4383_v22  ;;  %v4239_v34 = vor.u32 %v5875_v28, %v4238_v26 }
 0x19b   :  { %1048 = vmatpush.bf16.msra.mxu0 %v4323_v35  ;;  %v4367_v35 = vor.u32 %v5907_v30, %v4366_v29  ;;  %v644_v29 = vperm.slane %v639_v17, 3 }
 0x19c   :  { %1061 = vmatpush.bf16.msra.mxu2 %v4451_v36  ;;  %1026 = vmatpush.bf16.msra.mxu1 %v4255_v18  ;;  %v4368_v36 = vld [vmem:[#allocation11 + $0x138] sm:$0xf0]  ;;  %v641_v18 = vperm.slane %v639_v17, 0 }
 0x19d   :  { %v4371_v42 = vor.u32 %v5905_v33, %v4368_v36  ;;  %1040 = vmatpush.bf16.msra.mxu3 %v4367_v35 }
 0x19f   :  { %1049 = vmatpush.bf16.msra.mxu0 %v4307_v45 }
 0x1a0   :  { %1062 = vmatpush.bf16.msra.mxu2 %v4435_v49  ;;  %1027 = vmatpush.bf16.msra.mxu1 %v4239_v34  ;;  %v4223_v49 = vor.u32 %v5871_v39, %v4222_v37 }
 0x1a1   :  { %1041 = vmatpush.bf16.msra.mxu3 %v4351_v50 }
 0x1a3   :  { %1050 = vmatpush.bf16.msra.mxu0 %v4291_v59  ;;  %v557_v59 = vperm.slane %v555_v56, 0 }
 0x1a4   :  { %1063 = vmatpush.bf16.msra.mxu2 %v4419_v60  ;;  %1028 = vmatpush.bf16.msra.mxu1 %v4223_v49  ;;  %v558_v60 = vperm.slane %v555_v56, 1  ;;  %v4710_v49 = vld [vmem:[#allocation16 + $0x1e0] sm:$0xf] }
 0x1a5   :  { %v4966_v56 = vld [vmem:[#allocation16 + $0x3e0] sm:$0xf] }
 0x1a7   :  { %1051 = vmatpush.bf16.msra.mxu0 %v4275_v8 }
 0x1a8   :  { %1064 = vmatpush.bf16.msra.mxu2 %v4403_v15 }
 0x1ab   :  { %1052 = vmatpush.bf16.msra.mxu0 %v4259_v23 }
 0x1ac   :  { %1065 = vmatpush.bf16.msra.mxu2 %v4387_v27 }
 0x1af   :  { %1053 = vmatpush.bf16.msra.mxu0 %v4243_v38 }
 0x1b0   :  { %1066 = vmatpush.bf16.msra.mxu2 %v4371_v42 }
 0x1b3   :  { %1054 = vmatpush.bf16.msra.mxu0 %v4227_v51  ;;  %v5994_v51 = vld [vmem:[#allocation16 + $0x1ec] sm:$0xf0] }
 0x1b4   :  { %1067 = vmatpush.bf16.msra.mxu2 %v4355_v53  ;;  %v6026_v53 = vld [vmem:[#allocation16 + $0x2ec] sm:$0xf0] }
 0x1fa   :  { %v540_v61 = vpop.xlane.xlu0 %539 }
 0x1fb   :  { %v541_v1 = vmul.f32 %v540_v61, %v6989_v6 }
 0x1fd   :  { %v7003_v14 = vadd.f32 1e-05, %v541_v1  ;;  %v566_v1 = vperm.slane %v563_v58, 1  ;;  %v4566_v58 = vld [vmem:[#allocation16 + $0xc0] sm:$0xf] }
 0x1ff   :  { %6308 = vrsqrt.f32 %v7003_v14  ;;  %vm549_vm3 = vweird.f32 %v7003_v14 }
 0x200   :  { %6310 = vrcp.f32 %v6785_v43  ;;  %v6010_v43 = vld [vmem:[#allocation16 + $0x26c] sm:$0xf0] }
 0x205   :  { %v6309_v45 = vpop.eup %6308 }
 0x206   :  { %v544_v48 = vmul.f32 %v6309_v45, %v7003_v14  ;;  %vm550_vm2 = vweird.f32 %v6309_v45  ;;  %v7025_v44 = vpop.eup %6310 }
 0x207   :  { %vm551_vm4 = vmor %vm549_vm3, %vm550_vm2  ;;  %vm1083_vm5 = vweird.f32 %v7025_v44 }
 0x208   :  { %v545_v52 = vmul.f32 %v6309_v45, %v544_v48  ;;  %v5962_v48 = vld [vmem:[#allocation16 + $0xec] sm:$0xf0] }
 0x209   :  { %v4583_v50 = vor.u32 %v5962_v48, %v4582_v47 }
 0x20a   :  { %v546_v54 = vmul.f32 0.5, %v545_v52  ;;  %v4838_v52 = vld [vmem:[#allocation16 + $0x2e0] sm:$0xf] }
 0x20c   :  { %v547_v55 = vsub.f32 1.5, %v546_v54  ;;  %v4711_v54 = vor.u32 %v5994_v51, %v4710_v49  ;;  %v5942_v51 = vld [vmem:[#allocation16 + $0x4c] sm:$0xf0] }
 0x20e   :  { %v548_v57 = vmul.f32 %v6309_v45, %v547_v55  ;;  %v4839_v55 = vor.u32 %v6026_v53, %v4838_v52 }
 0x210   :  { %v552_v61 = vsel %vm551_vm4, %v6309_v45, %v548_v57  ;;  %v1079_v45 = vmul.f32 512.0, %v7025_v44  ;;  %v6058_v57 = vld [vmem:[#allocation16 + $0x3ec] sm:$0xf0] }
 0x211   :  { %v553_v62 = vmul.f32 %v552_v61, %v6993_v9  ;;  %v554_v63 = vmul.f32 %v552_v61, %v6996_v10  ;;  %v4694_v61 = vld [vmem:[#allocation16 + $0x1c0] sm:$0xf] }
 0x212   :  { %v1080_v46 = vsub.f32 1.0, %v1079_v45  ;;  %v4902_v45 = vld [vmem:[#allocation16 + $0x360] sm:$0xf] }
 0x213   :  { %v561_v2 = vmul.f32 %v557_v59, %v553_v62  ;;  %v562_v3 = vmul.f32 %v558_v60, %v554_v63  ;;  %v4967_v59 = vor.u32 %v6058_v57, %v4966_v56  ;;  %v5958_v60 = vld [vmem:[#allocation16 + $0xcc] sm:$0xf0]  ;;  %v4758_v56 = vld [vmem:[#allocation16 + $0x240] sm:$0xf] }
 0x214   :  { %v5990_v62 = vld [vmem:[#allocation16 + $0x1cc] sm:$0xf0]  ;;  %v4567_v63 = vor.u32 %v5958_v60, %v4566_v58  ;;  %v4886_v58 = vld [vmem:[#allocation16 + $0x340] sm:$0xf] }
 0x215   :  { %v569_v4 = vadd.f32 %v565_v0, %v561_v2  ;;  %v570_v5 = vadd.f32 %v566_v1, %v562_v3  ;;  %v4695_v0 = vor.u32 %v5990_v62, %v4694_v61  ;;  %v4822_v1 = vld [vmem:[#allocation16 + $0x2c0] sm:$0xf]  ;;  %v6022_v2 = vld [vmem:[#allocation16 + $0x2cc] sm:$0xf0] }
 0x216   :  { %v4950_v3 = vld [vmem:[#allocation16 + $0x3c0] sm:$0xf]  ;;  %v6006_v57 = vld [vmem:[#allocation16 + $0x24c] sm:$0xf0] }
 0x217   :  { %v571_v7 = vmax.f32 %v569_v4, 0.0  ;;  %v572_v8 = vmax.f32 %v570_v5, 0.0  ;;  %v4823_v4 = vor.u32 %v6022_v2, %v4822_v1  ;;  %v6054_v5 = vld [vmem:[#allocation16 + $0x3cc] sm:$0xf0] }
 0x218   :  { %v5938_v1 = vld [vmem:[#allocation16 + $0x2c] sm:$0xf0] }
 0x219   :  { %v573_v11 = vpack.c.bf16 %v571_v7, %v571_v7  ;;  %v574_v12 = vpack.c.bf16 %v572_v8, %v572_v8  ;;  %v4550_v7 = vld [vmem:[#allocation16 + $0xa0] sm:$0xf]  ;;  %v5954_v8 = vld [vmem:[#allocation16 + $0xac] sm:$0xf0] }
 0x21b   :  { %977 = vmatmul.bf16.vlgmr.msrb.gmra.mxu1 %v573_v11  ;;  %990 = vmatmul.bf16.vlgmr.msrb.gmra.mxu3 %v574_v12 }
 0x21c   :  { %1003 = vmatmul.bf16.vlgmr.msrb.gmra.mxu0 %v573_v11  ;;  %1016 = vmatmul.bf16.vlgmr.msrb.gmra.mxu2 %v574_v12 }
 0x21d   :  { %1929 = vmatpush.bf16.msrb.mxu1 %v4583_v50  ;;  %1942 = vmatpush.bf16.msrb.mxu3 %v4711_v54  ;;  %v4502_v50 = vld [vmem:[#allocation16 + $0x40] sm:$0xf] }
 0x21e   :  { %1955 = vmatpush.bf16.msrb.mxu0 %v4839_v55  ;;  %1968 = vmatpush.bf16.msrb.mxu2 %v4967_v59  ;;  %v4630_v54 = vld [vmem:[#allocation16 + $0x140] sm:$0xf]  ;;  %v5974_v55 = vld [vmem:[#allocation16 + $0x14c] sm:$0xf0]  ;;  %v4503_v61 = vor.u32 %v5942_v51, %v4502_v50  ;;  %v4568_v50 = vld [vmem:[#allocation16 + $0xd0] sm:$0xf0] }
 0x21f   :  { %v6038_v59 = vld [vmem:[#allocation16 + $0x34c] sm:$0xf0] }
 0x220   :  { %v4887_v2 = vor.u32 %v6038_v59, %v4886_v58  ;;  %v4824_v58 = vld [vmem:[#allocation16 + $0x2d0] sm:$0xf0]  ;;  %v6052_v59 = vld [vmem:[#allocation16 + $0x3c4] sm:$0xf] }
 0x221   :  { %1930 = vmatpush.bf16.msrb.mxu1 %v4567_v63  ;;  %1943 = vmatpush.bf16.msrb.mxu3 %v4695_v0  ;;  %v4631_v63 = vor.u32 %v5974_v55, %v4630_v54  ;;  %v4486_v0 = vld [vmem:[#allocation16 + $0x20] sm:$0xf]  ;;  %v5988_v54 = vld [vmem:[#allocation16 + $0x1c4] sm:$0xf]  ;;  %v4696_v55 = vld [vmem:[#allocation16 + $0x1d0] sm:$0xf0] }
 0x222   :  { %1956 = vmatpush.bf16.msrb.mxu0 %v4823_v4  ;;  %v5970_v4 = vld [vmem:[#allocation16 + $0x12c] sm:$0xf0] }
 0x22b   :  { %1029 = vmatmul.bf16.vlgmr.msra.gmra.mxu1 %v573_v11  ;;  %1042 = vmatmul.bf16.vlgmr.msra.gmra.mxu3 %v574_v12 }
 0x22c   :  { %1055 = vmatmul.bf16.vlgmr.msra.gmra.mxu0 %v573_v11  ;;  %1068 = vmatmul.bf16.vlgmr.msra.gmra.mxu2 %v574_v12  ;;  %v4951_v11 = vor.u32 %v6054_v5, %v4950_v3  ;;  %v4678_v12 = vld [vmem:[#allocation16 + $0x1a0] sm:$0xf] }
 0x22d   :  { %v4614_v3 = vld [vmem:[#allocation16 + $0x120] sm:$0xf] }
 0x22e   :  { %1969 = vmatpush.bf16.msrb.mxu2 %v4951_v11  ;;  %v4742_v5 = vld [vmem:[#allocation16 + $0x220] sm:$0xf] }
 0x298   :  { %v978_v9 = vpop.f32.mrf.mxu1 }
 0x299   :  { %v1004_v10 = vpop.f32.mrf.mxu0  ;;  %v979_v23 = vadd.f32 %v978_v9, %v641_v18  ;;  %v5986_v9 = vld [vmem:[#allocation16 + $0x1ac] sm:$0xf0] }
 0x29a   :  { %v1005_v24 = vadd.f32 %v1004_v10, %v642_v19  ;;  %v4806_v10 = vld [vmem:[#allocation16 + $0x2a0] sm:$0xf]  ;;  %v4679_v17 = vor.u32 %v5986_v9, %v4678_v12  ;;  %v6002_v12 = vld [vmem:[#allocation16 + $0x22c] sm:$0xf0] }
 0x29b   :  { %v4534_v19 = vld [vmem:[#allocation16 + $0x80] sm:$0xf] }
 0x29c   :  { %1944 = vmatpush.bf16.msrb.mxu3 %v4679_v17  ;;  %v4870_v9 = vld [vmem:[#allocation16 + $0x320] sm:$0xf] }
 0x29e   :  { %v991_v13 = vpop.f32.mrf.mxu3 }
 0x29f   :  { %v1017_v14 = vpop.f32.mrf.mxu2  ;;  %v7013_v27 = vadd.f32 %v991_v13, %v979_v23  ;;  %v4551_v13 = vor.u32 %v5954_v8, %v4550_v7 }
 0x2a0   :  { %v980_v15 = vpop.f32.mrf.mxu1  ;;  %v7015_v28 = vadd.f32 %v1017_v14, %v1005_v24  ;;  %v6018_v14 = vld [vmem:[#allocation16 + $0x2ac] sm:$0xf0] }
 0x2a1   :  { %v1006_v16 = vpop.f32.mrf.mxu0  ;;  %v4934_v15 = vld [vmem:[#allocation16 + $0x3a0] sm:$0xf]  ;;  %v4807_v18 = vor.u32 %v6018_v14, %v4806_v10  ;;  %v5982_v24 = vld [vmem:[#allocation16 + $0x18c] sm:$0xf0]  ;;  %1931 = vmatpush.bf16.msrb.mxu1 %v4551_v13  ;;  %v4487_v13 = vor.u32 %v5938_v1, %v4486_v0  ;;  %v4552_v0 = vld [vmem:[#allocation16 + $0xb0] sm:$0xf0] }
 0x2a2   :  { %v1073_v32 = vadd.f32 %v7015_v28, %v7013_v27  ;;  %v6050_v16 = vld [vmem:[#allocation16 + $0x3ac] sm:$0xf0]  ;;  %v5984_v1 = vld [vmem:[#allocation16 + $0x1a4] sm:$0xf] }
 0x2a3   :  { %v4935_v23 = vor.u32 %v6050_v16, %v4934_v15  ;;  %1957 = vmatpush.bf16.msrb.mxu0 %v4807_v18  ;;  %v6034_v10 = vld [vmem:[#allocation16 + $0x32c] sm:$0xf0] }
 0x2a4   :  { %v4871_v16 = vor.u32 %v6034_v10, %v4870_v9  ;;  %v6048_v9 = vld [vmem:[#allocation16 + $0x3a4] sm:$0xf]  ;;  %v4936_v10 = vld [vmem:[#allocation16 + $0x3b0] sm:$0xf0] }
 0x2a5   :  { %1970 = vmatpush.bf16.msrb.mxu2 %v4935_v23  ;;  %v4598_v23 = vld [vmem:[#allocation16 + $0x100] sm:$0xf] }
 0x2a6   :  { %v993_v20 = vpop.f32.mrf.mxu3 }
 0x2a7   :  { %v1019_v21 = vpop.f32.mrf.mxu2  ;;  %v5950_v20 = vld [vmem:[#allocation16 + $0x8c] sm:$0xf0] }
 0x2a8   :  { %v1030_v22 = vpop.f32.mrf.mxu1  ;;  %v4662_v21 = vld [vmem:[#allocation16 + $0x180] sm:$0xf] }
 0x2a9   :  { %v1056_v26 = vpop.f32.mrf.mxu0  ;;  %v1031_v30 = vadd.f32 %v1030_v22, %v643_v25  ;;  %v1081_v22 = vmul.f32 %v7025_v44, %v1080_v46  ;;  %v4790_v25 = vld [vmem:[#allocation16 + $0x280] sm:$0xf]  ;;  %v6042_v46 = vld [vmem:[#allocation16 + $0x36c] sm:$0xf0] }
 0x2aa   :  { %v1057_v33 = vadd.f32 %v1056_v26, %v644_v29  ;;  %v6014_v26 = vld [vmem:[#allocation16 + $0x28c] sm:$0xf0]  ;;  %v4918_v29 = vld [vmem:[#allocation16 + $0x380] sm:$0xf]  ;;  %v4903_v53 = vor.u32 %v6042_v46, %v4902_v45  ;;  %v4840_v45 = vld [vmem:[#allocation16 + $0x2f0] sm:$0xf0] }
 0x2ab   :  { %v6056_v46 = vld [vmem:[#allocation16 + $0x3e4] sm:$0xf] }
 0x2ae   :  { %v1043_v31 = vpop.f32.mrf.mxu3 }
 0x2af   :  { %v7019_v34 = vadd.f32 %v1043_v31, %v1031_v30  ;;  %v1069_v35 = vpop.f32.mrf.mxu2  ;;  %v6046_v30 = vld [vmem:[#allocation16 + $0x38c] sm:$0xf0]  ;;  %v4535_v31 = vor.u32 %v5950_v20, %v4534_v19 }
 0x2b0   :  { %v1032_v36 = vpop.f32.mrf.mxu1  ;;  %v7021_v37 = vadd.f32 %v1069_v35, %v1057_v33  ;;  %v4791_v33 = vor.u32 %v6014_v26, %v4790_v25  ;;  %v4518_v35 = vld [vmem:[#allocation16 + $0x60] sm:$0xf]  ;;  %v5966_v25 = vld [vmem:[#allocation16 + $0x10c] sm:$0xf0] }
 0x2b1   :  { %v1058_v38 = vpop.f32.mrf.mxu0  ;;  %v1074_v39 = vadd.f32 %v1073_v32, %v7019_v34  ;;  %v4663_v32 = vor.u32 %v5982_v24, %v4662_v21  ;;  %v5946_v36 = vld [vmem:[#allocation16 + $0x6c] sm:$0xf0]  ;;  %1932 = vmatpush.bf16.msrb.mxu1 %v4535_v31  ;;  %v4470_v21 = vld [vmem:[#allocation16] sm:$0xf] }
 0x2b2   :  { %v4646_v38 = vld [vmem:[#allocation16 + $0x160] sm:$0xf]  ;;  %v4519_v47 = vor.u32 %v5946_v36, %v4518_v35  ;;  %1958 = vmatpush.bf16.msrb.mxu0 %v4791_v33  ;;  %v6030_v33 = vld [vmem:[#allocation16 + $0x30c] sm:$0xf0]  ;;  %v5960_v35 = vld [vmem:[#allocation16 + $0xe4] sm:$0xf] }
 0x2b3   :  { %v1075_v40 = vadd.f32 %v1074_v39, %v7021_v37  ;;  %v1082_v39 = vadd.f32 %v7025_v44, %v1081_v22  ;;  %1945 = vmatpush.bf16.msrb.mxu3 %v4663_v32  ;;  %v5934_v22 = vld [vmem:[#allocation16 + $0xc] sm:$0xf0]  ;;  %v4726_v26 = vld [vmem:[#allocation16 + $0x200] sm:$0xf] }
 0x2b4   :  { %v4471_v24 = vor.u32 %v5934_v22, %v4470_v21  ;;  %v4854_v32 = vld [vmem:[#allocation16 + $0x300] sm:$0xf]  ;;  %v4920_v21 = vld [vmem:[#allocation16 + $0x390] sm:$0xf0] }
 0x2b5   :  { %1076 = vadd.xlane.f32.xlu1 %v1075_v40  ;;  %v4919_v40 = vor.u32 %v6046_v30, %v4918_v29  ;;  %v7032_v52 = vsel %vm1083_vm5, %v7025_v44, %v1082_v39  ;;  %1933 = vmatpush.bf16.msrb.mxu1 %v4519_v47  ;;  %v4759_v44 = vor.u32 %v6006_v57, %v4758_v56  ;;  %v5998_v29 = vld [vmem:[#allocation16 + $0x20c] sm:$0xf0]  ;;  %v5992_v39 = vld [vmem:[#allocation16 + $0x1e4] sm:$0xf] }
 0x2b6   :  { %v1045_v41 = vpop.f32.mrf.mxu3  ;;  %v4599_v30 = vor.u32 %v5966_v25, %v4598_v23  ;;  %v4727_v31 = vor.u32 %v5998_v29, %v4726_v26  ;;  %v4855_v36 = vor.u32 %v6030_v33, %v4854_v32  ;;  %v6020_v56 = vld [vmem:[#allocation16 + $0x2c4] sm:$0xf]  ;;  %v4699_v57 = vor.u32 %v5988_v54, %v4696_v55  ;;  %v4648_v29 = vld [vmem:[#allocation16 + $0x170] sm:$0xf0] }
 0x2b7   :  { %v1071_v42 = vpop.f32.mrf.mxu2  ;;  %v5978_v41 = vld [vmem:[#allocation16 + $0x16c] sm:$0xf0]  ;;  %1971 = vmatpush.bf16.msrb.mxu2 %v4919_v40  ;;  %v4712_v40 = vld [vmem:[#allocation16 + $0x1f0] sm:$0xf0]  ;;  %v5944_v23 = vld [vmem:[#allocation16 + $0x64] sm:$0xf] }
 0x2b8   :  { %v4774_v42 = vld [vmem:[#allocation16 + $0x260] sm:$0xf]  ;;  %v4647_v48 = vor.u32 %v5978_v41, %v4646_v38  ;;  %v4584_v38 = vld [vmem:[#allocation16 + $0xf0] sm:$0xf0]  ;;  %v5976_v25 = vld [vmem:[#allocation16 + $0x164] sm:$0xf] }
 0x2b9   :  { %v4775_v49 = vor.u32 %v6010_v43, %v4774_v42  ;;  %1934 = vmatpush.bf16.msrb.mxu1 %v4503_v61  ;;  %v4587_v41 = vor.u32 %v5960_v35, %v4584_v38  ;;  %v4715_v42 = vor.u32 %v5992_v39, %v4712_v40  ;;  %v6024_v43 = vld [vmem:[#allocation16 + $0x2e4] sm:$0xf]  ;;  %v4827_v61 = vor.u32 %v6020_v56, %v4824_v58  ;;  %v4504_v40 = vld [vmem:[#allocation16 + $0x50] sm:$0xf0] }
 0x2ba   :  { %1946 = vmatpush.bf16.msrb.mxu3 %v4647_v48  ;;  %v4843_v47 = vor.u32 %v6024_v43, %v4840_v45  ;;  %v4968_v48 = vld [vmem:[#allocation16 + $0x3f0] sm:$0xf0]  ;;  %v4651_v32 = vor.u32 %v5976_v25, %v4648_v29  ;;  %v6040_v35 = vld [vmem:[#allocation16 + $0x364] sm:$0xf] }
 0x2bb   :  { %1959 = vmatpush.bf16.msrb.mxu0 %v4775_v49  ;;  %1972 = vmatpush.bf16.msrb.mxu2 %v4903_v53  ;;  %v5956_v49 = vld [vmem:[#allocation16 + $0xc4] sm:$0xf]  ;;  %v4971_v51 = vor.u32 %v6056_v46, %v4968_v48  ;;  %v4632_v43 = vld [vmem:[#allocation16 + $0x150] sm:$0xf0] }
 0x2bc   :  { %v4571_v53 = vor.u32 %v5956_v49, %v4568_v50  ;;  %v5940_v39 = vld [vmem:[#allocation16 + $0x44] sm:$0xf]  ;;  %v4760_v46 = vld [vmem:[#allocation16 + $0x250] sm:$0xf0] }
 0x2bd   :  { %1935 = vmatpush.bf16.msrb.mxu1 %v4487_v13  ;;  %v4939_v13 = vor.u32 %v6048_v9, %v4936_v10  ;;  %v6004_v45 = vld [vmem:[#allocation16 + $0x244] sm:$0xf]  ;;  %v4888_v50 = vld [vmem:[#allocation16 + $0x350] sm:$0xf0] }
 0x2be   :  { %1947 = vmatpush.bf16.msrb.mxu3 %v4631_v63  ;;  %v5952_v63 = vld [vmem:[#allocation16 + $0xa4] sm:$0xf]  ;;  %v4763_v48 = vor.u32 %v6004_v45, %v4760_v46  ;;  %v4488_v54 = vld [vmem:[#allocation16 + $0x30] sm:$0xf0]  ;;  %v4590_v46 = vld [vmem:[#allocation16 + $0xe8] sm:$0xf] }
 0x2bf   :  { %1960 = vmatpush.bf16.msrb.mxu0 %v4759_v44  ;;  %1973 = vmatpush.bf16.msrb.mxu2 %v4887_v2  ;;  %v4555_v44 = vor.u32 %v5952_v63, %v4552_v0  ;;  %v4680_v2 = vld [vmem:[#allocation16 + $0x1b0] sm:$0xf0]  ;;  %v6036_v49 = vld [vmem:[#allocation16 + $0x344] sm:$0xf] }
 0x2c0   :  { %v5968_v55 = vld [vmem:[#allocation16 + $0x124] sm:$0xf]  ;;  %v4616_v56 = vld [vmem:[#allocation16 + $0x130] sm:$0xf0] }
 0x2c1   :  { %1936 = vmatpush.bf16.msrb.mxu1 %v4471_v24  ;;  %v4520_v24 = vld [vmem:[#allocation16 + $0x70] sm:$0xf0]  ;;  %v5932_v63 = vld [vmem:[#allocation16 + $0x4] sm:$0xf] }
 0x2c2   :  { %v4523_v26 = vor.u32 %v5944_v23, %v4520_v24  ;;  %v4744_v58 = vld [vmem:[#allocation16 + $0x230] sm:$0xf0] }
 0x2c3   :  { %1974 = vmatpush.bf16.msrb.mxu2 %v4871_v16  ;;  %v4664_v16 = vld [vmem:[#allocation16 + $0x190] sm:$0xf0] }
 0x2c4   :  { %v4856_v9 = vld [vmem:[#allocation16 + $0x310] sm:$0xf0] }
 0x2c5   :  { %1981 = vmatpush.bf16.msra.mxu1 %v4587_v41  ;;  %v5972_v41 = vld [vmem:[#allocation16 + $0x144] sm:$0xf] }
 0x2c7   :  { %1975 = vmatpush.bf16.msrb.mxu2 %v4855_v36  ;;  %v4904_v36 = vld [vmem:[#allocation16 + $0x370] sm:$0xf0] }
 0x2c8   :  { %v4907_v38 = vor.u32 %v6040_v35, %v4904_v36 }
 0x2c9   :  { %1982 = vmatpush.bf16.msra.mxu1 %v4571_v53  ;;  %v4891_v53 = vor.u32 %v6036_v49, %v4888_v50 }
 0x2cb   :  { %2020 = vmatpush.bf16.msra.mxu2 %v4971_v51  ;;  %v5936_v51 = vld [vmem:[#allocation16 + $0x24] sm:$0xf] }
 0x2cd   :  { %1983 = vmatpush.bf16.msra.mxu1 %v4555_v44  ;;  %v5964_v44 = vld [vmem:[#allocation16 + $0x104] sm:$0xf] }
 0x328   :  { %v1077_v60 = vpop.xlane.xlu1 %1076 }
 0x329   :  { %v1085_v62 = vmul.f32 %v7032_v52, %v1077_v60  ;;  %v4952_v60 = vld [vmem:[#allocation16 + $0x3d0] sm:$0xf0] }
 0x32b   :  { %v7036_v7 = vsub.f32 %v7013_v27, %v1085_v62  ;;  %v7039_v8 = vsub.f32 %v7015_v28, %v1085_v62  ;;  %v7042_v11 = vsub.f32 %v7019_v34, %v1085_v62  ;;  %v7045_v14 = vsub.f32 %v7021_v37, %v1085_v62 }
 0x32c   :  { %v4615_v28 = vor.u32 %v5970_v4, %v4614_v3  ;;  %v4743_v34 = vor.u32 %v6002_v12, %v4742_v5  ;;  %v4955_v62 = vor.u32 %v6052_v59, %v4952_v60  ;;  %v6016_v3 = vld [vmem:[#allocation16 + $0x2a4] sm:$0xf]  ;;  %v4808_v4 = vld [vmem:[#allocation16 + $0x2b0] sm:$0xf0]  ;;  %v4683_v5 = vor.u32 %v5984_v1, %v4680_v2 }
 0x32d   :  { %v1090_v15 = vmul.f32 %v7036_v7, %v7036_v7  ;;  %v1091_v27 = vmul.f32 %v7039_v8, %v7039_v8  ;;  %v1092_v17 = vmul.f32 %v7042_v11, %v7042_v11  ;;  %v1093_v37 = vmul.f32 %v7045_v14, %v7045_v14  ;;  %v6032_v59 = vld [vmem:[#allocation16 + $0x324] sm:$0xf]  ;;  %v4472_v1 = vld [vmem:[#allocation16 + $0x10] sm:$0xf0] }
 0x32e   :  { %1948 = vmatpush.bf16.msrb.mxu3 %v4615_v28  ;;  %1961 = vmatpush.bf16.msrb.mxu0 %v4743_v34  ;;  %v4811_v12 = vor.u32 %v6016_v3, %v4808_v4  ;;  %v5980_v28 = vld [vmem:[#allocation16 + $0x184] sm:$0xf]  ;;  %v4491_v60 = vor.u32 %v5936_v51, %v4488_v54  ;;  %v4600_v2 = vld [vmem:[#allocation16 + $0x110] sm:$0xf0]  ;;  %v4475_v10 = vor.u32 %v5932_v63, %v4472_v1  ;;  %v5963_v51 = vld [vmem:[#allocation16 + $0xf4] sm:$0xf0] }
 0x32f   :  { %v1094_v18 = vadd.f32 %v1091_v27, %v1090_v15  ;;  %2021 = vmatpush.bf16.msra.mxu2 %v4955_v62  ;;  %v5948_v15 = vld [vmem:[#allocation16 + $0x84] sm:$0xf]  ;;  %v4536_v27 = vld [vmem:[#allocation16 + $0x90] sm:$0xf0]  ;;  %v5995_v54 = vld [vmem:[#allocation16 + $0x1f4] sm:$0xf0] }
 0x330   :  { %v4539_v34 = vor.u32 %v5948_v15, %v4536_v27  ;;  %v4872_v62 = vld [vmem:[#allocation16 + $0x330] sm:$0xf0]  ;;  %v5996_v4 = vld [vmem:[#allocation16 + $0x204] sm:$0xf]  ;;  %v4574_v1 = vld [vmem:[#allocation16 + $0xc8] sm:$0xf] }
 0x331   :  { %v1095_v19 = vadd.f32 %v1094_v18, %v1092_v17  ;;  %v6012_v17 = vld [vmem:[#allocation16 + $0x284] sm:$0xf]  ;;  %v4792_v18 = vld [vmem:[#allocation16 + $0x290] sm:$0xf0]  ;;  %v4875_v3 = vor.u32 %v6032_v59, %v4872_v62  ;;  %v4591_v59 = vor.u32 %v5963_v51, %v4590_v46  ;;  %v4654_v46 = vld [vmem:[#allocation16 + $0x168] sm:$0xf] }
 0x332   :  { %1949 = vmatpush.bf16.msrb.mxu3 %v4599_v30  ;;  %1962 = vmatpush.bf16.msrb.mxu0 %v4727_v31  ;;  %v6008_v30 = vld [vmem:[#allocation16 + $0x264] sm:$0xf]  ;;  %v4776_v31 = vld [vmem:[#allocation16 + $0x270] sm:$0xf0]  ;;  %v6043_v51 = vld [vmem:[#allocation16 + $0x374] sm:$0xf0] }
 0x333   :  { %v1096_v20 = vadd.f32 %v1095_v19, %v1093_v37  ;;  %v4667_v37 = vor.u32 %v5980_v28, %v4664_v16  ;;  %v4795_v19 = vor.u32 %v6012_v17, %v4792_v18  ;;  %2022 = vmatpush.bf16.msra.mxu2 %v4939_v13  ;;  %1984 = vmatpush.bf16.msra.mxu1 %v4539_v34 }
 0x334   :  { %v4779_v33 = vor.u32 %v6008_v30, %v4776_v31  ;;  %v4603_v13 = vor.u32 %v5964_v44, %v4600_v2  ;;  %v5959_v44 = vld [vmem:[#allocation16 + $0xd4] sm:$0xf0] }
 0x335   :  { %1097 = vadd.xlane.f32.xlu1 %v1096_v20  ;;  %v6044_v20 = vld [vmem:[#allocation16 + $0x384] sm:$0xf] }
 0x336   :  { %1994 = vmatpush.bf16.msra.mxu3 %v4715_v42  ;;  %2007 = vmatpush.bf16.msra.mxu0 %v4843_v47  ;;  %v4923_v22 = vor.u32 %v6044_v20, %v4920_v21  ;;  %v4507_v42 = vor.u32 %v5940_v39, %v4504_v40  ;;  %v4635_v47 = vor.u32 %v5972_v41, %v4632_v43  ;;  %v1115_v20 = vld [vmem:[#allocation13] sm:$0xf] }
 0x337   :  { %1985 = vmatpush.bf16.msra.mxu1 %v4523_v26  ;;  %v1117_v24 = vperm.slane %v1115_v20, 0  ;;  %v1118_v26 = vperm.slane %v1115_v20, 1  ;;  %v1119_v29 = vperm.slane %v1115_v20, 2  ;;  %v1120_v30 = vperm.slane %v1115_v20, 3  ;;  %v6019_v20 = vld [vmem:[#allocation16 + $0x2b4] sm:$0xf0] }
 0x338   :  { %2023 = vmatpush.bf16.msra.mxu2 %v4923_v22  ;;  %v1129_v22 = vld [vmem:[#allocation14] sm:$0xf] }
 0x339   :  { %v1131_v25 = vperm.slane %v1129_v22, 0  ;;  %v1134_v35 = vperm.slane %v1129_v22, 3 }
 0x33a   :  { %1995 = vmatpush.bf16.msra.mxu3 %v4699_v57  ;;  %2008 = vmatpush.bf16.msra.mxu0 %v4827_v61  ;;  %v6000_v57 = vld [vmem:[#allocation16 + $0x224] sm:$0xf]  ;;  %v4619_v61 = vor.u32 %v5968_v55, %v4616_v56  ;;  %v4846_v55 = vld [vmem:[#allocation16 + $0x2e8] sm:$0xf] }
 0x33b   :  { %1986 = vmatpush.bf16.msra.mxu1 %v4507_v42  ;;  %v4747_v0 = vor.u32 %v6000_v57, %v4744_v58  ;;  %v4974_v56 = vld [vmem:[#allocation16 + $0x3e8] sm:$0xf] }
 0x33c   :  { %2024 = vmatpush.bf16.msra.mxu2 %v4907_v38 }
 0x33e   :  { %1996 = vmatpush.bf16.msra.mxu3 %v4683_v5  ;;  %2009 = vmatpush.bf16.msra.mxu0 %v4811_v12  ;;  %v4728_v5 = vld [vmem:[#allocation16 + $0x210] sm:$0xf0]  ;;  %v6028_v12 = vld [vmem:[#allocation16 + $0x304] sm:$0xf] }
 0x33f   :  { %1987 = vmatpush.bf16.msra.mxu1 %v4491_v60  ;;  %v4731_v27 = vor.u32 %v5996_v4, %v4728_v5  ;;  %v4859_v34 = vor.u32 %v6028_v12, %v4856_v9  ;;  %v4702_v4 = vld [vmem:[#allocation16 + $0x1c8] sm:$0xf]  ;;  %v5991_v5 = vld [vmem:[#allocation16 + $0x1d4] sm:$0xf0] }
 0x340   :  { %2025 = vmatpush.bf16.msra.mxu2 %v4891_v53  ;;  %v4718_v53 = vld [vmem:[#allocation16 + $0x1e8] sm:$0xf]  ;;  %v6023_v9 = vld [vmem:[#allocation16 + $0x2d4] sm:$0xf0] }
 0x341   :  { %v4719_v60 = vor.u32 %v5995_v54, %v4718_v53  ;;  %v4830_v12 = vld [vmem:[#allocation16 + $0x2c8] sm:$0xf] }
 0x342   :  { %1997 = vmatpush.bf16.msra.mxu3 %v4667_v37  ;;  %2010 = vmatpush.bf16.msra.mxu0 %v4795_v19 }
 0x343   :  { %1988 = vmatpush.bf16.msra.mxu1 %v4475_v10  ;;  %v4958_v10 = vld [vmem:[#allocation16 + $0x3c8] sm:$0xf] }
 0x344   :  { %2026 = vmatpush.bf16.msra.mxu2 %v4875_v3 }
 0x346   :  { %1998 = vmatpush.bf16.msra.mxu3 %v4651_v32  ;;  %2011 = vmatpush.bf16.msra.mxu0 %v4779_v33  ;;  %v1132_v32 = vperm.slane %v1129_v22, 1  ;;  %v1133_v33 = vperm.slane %v1129_v22, 2  ;;  %v6051_v22 = vld [vmem:[#allocation16 + $0x3b4] sm:$0xf0] }
 0x348   :  { %2027 = vmatpush.bf16.msra.mxu2 %v4859_v34  ;;  %v5955_v34 = vld [vmem:[#allocation16 + $0xb4] sm:$0xf0] }
 0x34a   :  { %1999 = vmatpush.bf16.msra.mxu3 %v4635_v47  ;;  %2012 = vmatpush.bf16.msra.mxu0 %v4763_v48 }
 0x34e   :  { %2000 = vmatpush.bf16.msra.mxu3 %v4619_v61  ;;  %2013 = vmatpush.bf16.msra.mxu0 %v4747_v0 }
 0x352   :  { %2001 = vmatpush.bf16.msra.mxu3 %v4603_v13  ;;  %2014 = vmatpush.bf16.msra.mxu0 %v4731_v27  ;;  %v6055_v13 = vld [vmem:[#allocation16 + $0x3d4] sm:$0xf0]  ;;  %v4703_v27 = vor.u32 %v5991_v5, %v4702_v4 }
 0x3a8   :  { %v1098_v15 = vpop.xlane.xlu1 %1097 }
 0x3a9   :  { %v1099_v28 = vmul.f32 %v1098_v15, %v7032_v52  ;;  %v4575_v15 = vor.u32 %v5959_v44, %v4574_v1 }
 0x3ab   :  { %v1100_v16 = vadd.f32 1e-05, %v1099_v28  ;;  %v4558_v28 = vld [vmem:[#allocation16 + $0xa8] sm:$0xf] }
 0x3ad   :  { %6312 = vrsqrt.f32 %v1100_v16  ;;  %vm1107_vm7 = vweird.f32 %v1100_v16 }
 0x3b3   :  { %v6313_v17 = vpop.eup %6312 }
 0x3b4   :  { %v1102_v18 = vmul.f32 %v6313_v17, %v1100_v16  ;;  %vm1108_vm6 = vweird.f32 %v6313_v17  ;;  %v4831_v16 = vor.u32 %v6023_v9, %v4830_v12  ;;  %v4622_v12 = vld [vmem:[#allocation16 + $0x128] sm:$0xf]  ;;  %v5971_v9 = vld [vmem:[#allocation16 + $0x134] sm:$0xf0] }
 0x3b5   :  { %vm1109_vm8 = vmor %vm1107_vm7, %vm1108_vm6 }
 0x3b6   :  { %v1103_v37 = vmul.f32 %v6313_v17, %v1102_v18  ;;  %v4686_v18 = vld [vmem:[#allocation16 + $0x1a8] sm:$0xf] }
 0x3b8   :  { %v1104_v19 = vmul.f32 0.5, %v1103_v37  ;;  %v5987_v37 = vld [vmem:[#allocation16 + $0x1b4] sm:$0xf0] }
 0x3ba   :  { %v1105_v21 = vsub.f32 1.5, %v1104_v19  ;;  %v4814_v19 = vld [vmem:[#allocation16 + $0x2a8] sm:$0xf] }
 0x3bc   :  { %v1106_v23 = vmul.f32 %v6313_v17, %v1105_v21  ;;  %v4942_v21 = vld [vmem:[#allocation16 + $0x3a8] sm:$0xf] }
 0x3be   :  { %v1110_v31 = vsel %vm1109_vm8, %v6313_v17, %v1106_v23  ;;  %v4959_v17 = vor.u32 %v6055_v13, %v4958_v10  ;;  %v4559_v23 = vor.u32 %v5955_v34, %v4558_v28  ;;  %v4750_v10 = vld [vmem:[#allocation16 + $0x228] sm:$0xf]  ;;  %v6003_v13 = vld [vmem:[#allocation16 + $0x234] sm:$0xf0] }
 0x3bf   :  { %v1111_v36 = vmul.f32 %v1110_v31, %v7036_v7  ;;  %v1112_v38 = vmul.f32 %v1110_v31, %v7039_v8  ;;  %v1113_v39 = vmul.f32 %v1110_v31, %v7042_v11  ;;  %v1114_v40 = vmul.f32 %v1110_v31, %v7045_v14  ;;  %v6027_v7 = vld [vmem:[#allocation16 + $0x2f4] sm:$0xf0]  ;;  %v4670_v31 = vld [vmem:[#allocation16 + $0x188] sm:$0xf] }
 0x3c0   :  { %v6059_v14 = vld [vmem:[#allocation16 + $0x3f4] sm:$0xf0]  ;;  %v4847_v2 = vor.u32 %v6027_v7, %v4846_v55  ;;  %v4510_v55 = vld [vmem:[#allocation16 + $0x48] sm:$0xf] }
 0x3c1   :  { %v1125_v41 = vmul.f32 %v1117_v24, %v1111_v36  ;;  %v1126_v42 = vmul.f32 %v1118_v26, %v1112_v38  ;;  %v1127_v43 = vmul.f32 %v1119_v29, %v1113_v39  ;;  %v1128_v45 = vmul.f32 %v1120_v30, %v1114_v40  ;;  %v5951_v26 = vld [vmem:[#allocation16 + $0x94] sm:$0xf0]  ;;  %v4926_v36 = vld [vmem:[#allocation16 + $0x388] sm:$0xf] }
 0x3c2   :  { %v4975_v3 = vor.u32 %v6059_v14, %v4974_v56  ;;  %v4687_v24 = vor.u32 %v5987_v37, %v4686_v18  ;;  %v4815_v29 = vor.u32 %v6019_v20, %v4814_v19  ;;  %v4943_v30 = vor.u32 %v6051_v22, %v4942_v21  ;;  %v6047_v38 = vld [vmem:[#allocation16 + $0x394] sm:$0xf0]  ;;  %v4478_v28 = vld [vmem:[#allocation16 + $0x8] sm:$0xf] }
 0x3c3   :  { %v1139_v47 = vadd.f32 %v1131_v25, %v1125_v41  ;;  %v1140_v48 = vadd.f32 %v1132_v32, %v1126_v42  ;;  %v1141_v49 = vadd.f32 %v1133_v33, %v1127_v43  ;;  %v1142_v50 = vadd.f32 %v1134_v35, %v1128_v45  ;;  %v4542_v25 = vld [vmem:[#allocation16 + $0x88] sm:$0xf]  ;;  %v5983_v32 = vld [vmem:[#allocation16 + $0x194] sm:$0xf0] }
 0x3c4   :  { %v4798_v33 = vld [vmem:[#allocation16 + $0x288] sm:$0xf]  ;;  %v6015_v35 = vld [vmem:[#allocation16 + $0x294] sm:$0xf0]  ;;  %v4543_v39 = vor.u32 %v5951_v26, %v4542_v25  ;;  %v4671_v40 = vor.u32 %v5983_v32, %v4670_v31  ;;  %v4927_v45 = vor.u32 %v6047_v38, %v4926_v36  ;;  %v4751_v19 = vor.u32 %v6003_v13, %v4750_v10  ;;  %v5961_v25 = vld [vmem:[#allocation16 + $0xec] sm:$0xf] }
 0x3c5   :  { %v1143_v8 = vmax.f32 %v1139_v47, 0.0  ;;  %v1144_v57 = vmax.f32 %v1140_v48, 0.0  ;;  %v1145_v11 = vmax.f32 %v1141_v49, 0.0  ;;  %v1146_v58 = vmax.f32 %v1142_v50, 0.0  ;;  %v4526_v41 = vld [vmem:[#allocation16 + $0x68] sm:$0xf] }
 0x3c6   :  { %v5947_v42 = vld [vmem:[#allocation16 + $0x74] sm:$0xf0]  ;;  %v4799_v43 = vor.u32 %v6015_v35, %v4798_v33  ;;  %v4782_v48 = vld [vmem:[#allocation16 + $0x268] sm:$0xf]  ;;  %v4592_v26 = vld [vmem:[#allocation16 + $0xf8] sm:$0xf0] }
 0x3c7   :  { %v7060_v61 = vpack.c.bf16 %v1143_v8, %v1143_v8  ;;  %v7062_v62 = vpack.c.bf16 %v1144_v57, %v1144_v57  ;;  %v7064_v63 = vpack.c.bf16 %v1145_v11, %v1145_v11  ;;  %v7066_v0 = vpack.c.bf16 %v1146_v58, %v1146_v58  ;;  %v5979_v47 = vld [vmem:[#allocation16 + $0x174] sm:$0xf0]  ;;  %v4910_v50 = vld [vmem:[#allocation16 + $0x368] sm:$0xf]  ;;  %v6025_v31 = vld [vmem:[#allocation16 + $0x2ec] sm:$0xf] }
 0x3c8   :  { %v6011_v49 = vld [vmem:[#allocation16 + $0x274] sm:$0xf0]  ;;  %v4527_v53 = vor.u32 %v5947_v42, %v4526_v41  ;;  %v4655_v54 = vor.u32 %v5979_v47, %v4654_v46  ;;  %v4911_v8 = vor.u32 %v6043_v51, %v4910_v50  ;;  %v4638_v57 = vld [vmem:[#allocation16 + $0x148] sm:$0xf]  ;;  %v4848_v35 = vld [vmem:[#allocation16 + $0x2f8] sm:$0xf0]  ;;  %v4595_v41 = vor.u32 %v5961_v25, %v4592_v26 }
 0x3c9   :  { %1937 = vmatmul.bf16.vlgmr.msrb.gmra.mxu1 %v7060_v61  ;;  %1950 = vmatmul.bf16.vlgmr.msrb.gmra.mxu3 %v7062_v62  ;;  %v5943_v7 = vld [vmem:[#allocation16 + $0x54] sm:$0xf0]  ;;  %v4783_v56 = vor.u32 %v6011_v49, %v4782_v48  ;;  %v4766_v58 = vld [vmem:[#allocation16 + $0x248] sm:$0xf]  ;;  %v6057_v36 = vld [vmem:[#allocation16 + $0x3ec] sm:$0xf]  ;;  %v4851_v46 = vor.u32 %v6025_v31, %v4848_v35 }
 0x3ca   :  { %1963 = vmatmul.bf16.vlgmr.msrb.gmra.mxu0 %v7064_v63  ;;  %1976 = vmatmul.bf16.vlgmr.msrb.gmra.mxu2 %v7066_v0  ;;  %v5975_v11 = vld [vmem:[#allocation16 + $0x154] sm:$0xf0]  ;;  %v4511_v1 = vor.u32 %v5943_v7, %v4510_v55  ;;  %v4606_v18 = vld [vmem:[#allocation16 + $0x108] sm:$0xf]  ;;  %v4976_v38 = vld [vmem:[#allocation16 + $0x3f8] sm:$0xf0] }
 0x3cb   :  { %2033 = vmatpush.bf16.msrb.mxu1 %v4591_v59  ;;  %2046 = vmatpush.bf16.msrb.mxu3 %v4719_v60  ;;  %v6007_v14 = vld [vmem:[#allocation16 + $0x254] sm:$0xf0]  ;;  %v4894_v59 = vld [vmem:[#allocation16 + $0x348] sm:$0xf]  ;;  %v4639_v44 = vor.u32 %v5975_v11, %v4638_v57  ;;  %v4979_v47 = vor.u32 %v6057_v36, %v4976_v38  ;;  %v5989_v48 = vld [vmem:[#allocation16 + $0x1cc] sm:$0xf] }
 0x3cc   :  { %2059 = vmatpush.bf16.msrb.mxu0 %v4847_v2  ;;  %2072 = vmatpush.bf16.msrb.mxu2 %v4975_v3  ;;  %v6039_v60 = vld [vmem:[#allocation16 + $0x354] sm:$0xf0]  ;;  %v4494_v2 = vld [vmem:[#allocation16 + $0x28] sm:$0xf]  ;;  %v4767_v4 = vor.u32 %v6007_v14, %v4766_v58  ;;  %v4704_v49 = vld [vmem:[#allocation16 + $0x1d8] sm:$0xf0] }
 0x3cd   :  { %v5939_v3 = vld [vmem:[#allocation16 + $0x34] sm:$0xf0]  ;;  %v4895_v5 = vor.u32 %v6039_v60, %v4894_v59  ;;  %v4734_v21 = vld [vmem:[#allocation16 + $0x208] sm:$0xf]  ;;  %v6021_v50 = vld [vmem:[#allocation16 + $0x2cc] sm:$0xf]  ;;  %v4707_v7 = vor.u32 %v5989_v48, %v4704_v49 }
 0x3ce   :  { %v4495_v34 = vor.u32 %v5939_v3, %v4494_v2  ;;  %v5967_v37 = vld [vmem:[#allocation16 + $0x114] sm:$0xf0]  ;;  %v4832_v51 = vld [vmem:[#allocation16 + $0x2d8] sm:$0xf0]  ;;  %v5985_v58 = vld [vmem:[#allocation16 + $0x1ac] sm:$0xf] }
 0x3cf   :  { %2034 = vmatpush.bf16.msrb.mxu1 %v4575_v15  ;;  %2047 = vmatpush.bf16.msrb.mxu3 %v4703_v27  ;;  %v4878_v15 = vld [vmem:[#allocation16 + $0x328] sm:$0xf]  ;;  %v6035_v27 = vld [vmem:[#allocation16 + $0x334] sm:$0xf0]  ;;  %v4607_v33 = vor.u32 %v5967_v37, %v4606_v18  ;;  %v4835_v57 = vor.u32 %v6021_v50, %v4832_v51  ;;  %v4688_v14 = vld [vmem:[#allocation16 + $0x1b8] sm:$0xf0] }
 0x3d0   :  { %2060 = vmatpush.bf16.msrb.mxu0 %v4831_v16  ;;  %2073 = vmatpush.bf16.msrb.mxu2 %v4959_v17  ;;  %v4623_v16 = vor.u32 %v5971_v9, %v4622_v12  ;;  %v5935_v17 = vld [vmem:[#allocation16 + $0x14] sm:$0xf0]  ;;  %v4879_v20 = vor.u32 %v6035_v27, %v4878_v15  ;;  %v6017_v59 = vld [vmem:[#allocation16 + $0x2ac] sm:$0xf]  ;;  %v4816_v60 = vld [vmem:[#allocation16 + $0x2b8] sm:$0xf0]  ;;  %v4691_v3 = vor.u32 %v5985_v58, %v4688_v14 }
 0x3d1   :  { %v5999_v22 = vld [vmem:[#allocation16 + $0x214] sm:$0xf0]  ;;  %v4479_v32 = vor.u32 %v5935_v17, %v4478_v28  ;;  %v4819_v12 = vor.u32 %v6017_v59, %v4816_v60  ;;  %v5981_v10 = vld [vmem:[#allocation16 + $0x18c] sm:$0xf]  ;;  %v4672_v13 = vld [vmem:[#allocation16 + $0x198] sm:$0xf0] }
 0x3d2   :  { %v6013_v15 = vld [vmem:[#allocation16 + $0x28c] sm:$0xf]  ;;  %v4800_v27 = vld [vmem:[#allocation16 + $0x298] sm:$0xf0]  ;;  %v4675_v17 = vor.u32 %v5981_v10, %v4672_v13 }
 0x3d3   :  { %2035 = vmatpush.bf16.msrb.mxu1 %v4559_v23  ;;  %2048 = vmatpush.bf16.msrb.mxu3 %v4687_v24  ;;  %v4862_v23 = vld [vmem:[#allocation16 + $0x308] sm:$0xf]  ;;  %v6031_v24 = vld [vmem:[#allocation16 + $0x314] sm:$0xf0]  ;;  %v6045_v28 = vld [vmem:[#allocation16 + $0x38c] sm:$0xf] }
 0x3d4   :  { %2061 = vmatpush.bf16.msrb.mxu0 %v4815_v29  ;;  %2074 = vmatpush.bf16.msrb.mxu2 %v4943_v30  ;;  %v5993_v29 = vld [vmem:[#allocation16 + $0x1ec] sm:$0xf]  ;;  %v4720_v30 = vld [vmem:[#allocation16 + $0x1f8] sm:$0xf0] }
 0x3d5   :  { %v4723_v42 = vor.u32 %v5993_v29, %v4720_v30  ;;  %v5945_v18 = vld [vmem:[#allocation16 + $0x6c] sm:$0xf]  ;;  %v4528_v37 = vld [vmem:[#allocation16 + $0x78] sm:$0xf0] }
 0x3d6   :  { %v6041_v25 = vld [vmem:[#allocation16 + $0x36c] sm:$0xf]  ;;  %v4912_v26 = vld [vmem:[#allocation16 + $0x378] sm:$0xf0]  ;;  %v4531_v29 = vor.u32 %v5945_v18, %v4528_v37  ;;  %v5206_v18 = vld [vmem:[#allocation17 + $0x1c0] sm:$0xf] }
 0x3d7   :  { %2036 = vmatpush.bf16.msrb.mxu1 %v4543_v39  ;;  %2049 = vmatpush.bf16.msrb.mxu3 %v4671_v40  ;;  %v4735_v39 = vor.u32 %v5999_v22, %v4734_v21  ;;  %v4863_v40 = vor.u32 %v6031_v24, %v4862_v23  ;;  %v5977_v21 = vld [vmem:[#allocation16 + $0x16c] sm:$0xf]  ;;  %v4656_v22 = vld [vmem:[#allocation16 + $0x178] sm:$0xf0]  ;;  %v4915_v35 = vor.u32 %v6041_v25, %v4912_v26  ;;  %v6118_v37 = vld [vmem:[#allocation17 + $0x1cc] sm:$0xf0] }
 0x3d8   :  { %2062 = vmatpush.bf16.msrb.mxu0 %v4799_v43  ;;  %2075 = vmatpush.bf16.msrb.mxu2 %v4927_v45  ;;  %v5957_v43 = vld [vmem:[#allocation16 + $0xcc] sm:$0xf]  ;;  %v4576_v45 = vld [vmem:[#allocation16 + $0xd8] sm:$0xf0]  ;;  %v4659_v30 = vor.u32 %v5977_v21, %v4656_v22  ;;  %v5207_v25 = vor.u32 %v6118_v37, %v5206_v18  ;;  %v5190_v26 = vld [vmem:[#allocation17 + $0x1a0] sm:$0xf] }
 0x3d9   :  { %1989 = vmatmul.bf16.vlgmr.msra.gmra.mxu1 %v7060_v61  ;;  %2002 = vmatmul.bf16.vlgmr.msra.gmra.mxu3 %v7062_v62  ;;  %v4579_v55 = vor.u32 %v5957_v43, %v4576_v45  ;;  %v6009_v23 = vld [vmem:[#allocation16 + $0x26c] sm:$0xf]  ;;  %v4784_v24 = vld [vmem:[#allocation16 + $0x278] sm:$0xf0]  ;;  %v6120_v37 = vld [vmem:[#allocation17 + $0x1e4] sm:$0xf] }
 0x3da   :  { %2015 = vmatmul.bf16.vlgmr.msra.gmra.mxu0 %v7064_v63  ;;  %2028 = vmatmul.bf16.vlgmr.msra.gmra.mxu2 %v7066_v0  ;;  %v5941_v31 = vld [vmem:[#allocation16 + $0x4c] sm:$0xf]  ;;  %v4640_v38 = vld [vmem:[#allocation16 + $0x158] sm:$0xf0] }
 0x3db   :  { %2037 = vmatpush.bf16.msrb.mxu1 %v4527_v53  ;;  %2050 = vmatpush.bf16.msrb.mxu3 %v4655_v54  ;;  %v6053_v53 = vld [vmem:[#allocation16 + $0x3cc] sm:$0xf]  ;;  %v4960_v54 = vld [vmem:[#allocation16 + $0x3d8] sm:$0xf0] }
 0x3dc   :  { %2063 = vmatpush.bf16.msrb.mxu0 %v4783_v56  ;;  %2076 = vmatpush.bf16.msrb.mxu2 %v4911_v8  ;;  %v5953_v56 = vld [vmem:[#allocation16 + $0xac] sm:$0xf]  ;;  %v4560_v8 = vld [vmem:[#allocation16 + $0xb8] sm:$0xf0]  ;;  %v4963_v11 = vor.u32 %v6053_v53, %v4960_v54 }
 0x3dd   :  { %v4563_v2 = vor.u32 %v5953_v56, %v4560_v8  ;;  %v5973_v36 = vld [vmem:[#allocation16 + $0x14c] sm:$0xf]  ;;  %v4624_v51 = vld [vmem:[#allocation16 + $0x138] sm:$0xf0] }
 0x3de   :  { %v4643_v45 = vor.u32 %v5973_v36, %v4640_v38  ;;  %v5969_v50 = vld [vmem:[#allocation16 + $0x12c] sm:$0xf]  ;;  %v4752_v54 = vld [vmem:[#allocation16 + $0x238] sm:$0xf0]  ;;  %v6078_v36 = vld [vmem:[#allocation17 + $0x8c] sm:$0xf0] }
 0x3df   :  { %2038 = vmatpush.bf16.msrb.mxu1 %v4511_v1  ;;  %2051 = vmatpush.bf16.msrb.mxu3 %v4639_v44  ;;  %v6049_v1 = vld [vmem:[#allocation16 + $0x3ac] sm:$0xf]  ;;  %v4944_v44 = vld [vmem:[#allocation16 + $0x3b8] sm:$0xf0]  ;;  %v4627_v8 = vor.u32 %v5969_v50, %v4624_v51  ;;  %v6070_v50 = vld [vmem:[#allocation17 + $0x4c] sm:$0xf0] }
 0x3e0   :  { %2064 = vmatpush.bf16.msrb.mxu0 %v4767_v4  ;;  %2077 = vmatpush.bf16.msrb.mxu2 %v4895_v5  ;;  %v5949_v4 = vld [vmem:[#allocation16 + $0x8c] sm:$0xf]  ;;  %v4544_v5 = vld [vmem:[#allocation16 + $0x98] sm:$0xf0]  ;;  %v4947_v9 = vor.u32 %v6049_v1, %v4944_v44  ;;  %v5142_v51 = vld [vmem:[#allocation17 + $0x140] sm:$0xf] }
 0x3e1   :  { %v6001_v53 = vld [vmem:[#allocation16 + $0x22c] sm:$0xf]  ;;  %v4608_v60 = vld [vmem:[#allocation16 + $0x118] sm:$0xf0] }
 0x3e2   :  { %v5965_v58 = vld [vmem:[#allocation16 + $0x10c] sm:$0xf]  ;;  %v4755_v14 = vor.u32 %v6001_v53, %v4752_v54  ;;  %v4736_v44 = vld [vmem:[#allocation16 + $0x218] sm:$0xf0]  ;;  %v6102_v53 = vld [vmem:[#allocation17 + $0x14c] sm:$0xf0] }
 0x3e3   :  { %2039 = vmatpush.bf16.msrb.mxu1 %v4495_v34  ;;  %2052 = vmatpush.bf16.msrb.mxu3 %v4623_v16  ;;  %v4928_v34 = vld [vmem:[#allocation16 + $0x398] sm:$0xf0]  ;;  %v4547_v16 = vor.u32 %v5949_v4, %v4544_v5  ;;  %v5997_v1 = vld [vmem:[#allocation16 + $0x20c] sm:$0xf]  ;;  %v5094_v4 = vld [vmem:[#allocation17 + $0xe0] sm:$0xf]  ;;  %v4611_v13 = vor.u32 %v5965_v58, %v4608_v60 }
 0x3e4   :  { %2065 = vmatpush.bf16.msrb.mxu0 %v4751_v19  ;;  %2078 = vmatpush.bf16.msrb.mxu2 %v4879_v20  ;;  %v4803_v19 = vor.u32 %v6013_v15, %v4800_v27  ;;  %v4931_v20 = vor.u32 %v6045_v28, %v4928_v34  ;;  %v6090_v5 = vld [vmem:[#allocation17 + $0xec] sm:$0xf0]  ;;  %v4739_v15 = vor.u32 %v5997_v1, %v4736_v44  ;;  %v5078_v34 = vld [vmem:[#allocation17 + $0xc0] sm:$0xf]  ;;  %v6088_v60 = vld [vmem:[#allocation17 + $0xe4] sm:$0xf] }
 0x3e5   :  { %v5095_v28 = vor.u32 %v6090_v5, %v5094_v4  ;;  %v5096_v1 = vld [vmem:[#allocation17 + $0xf0] sm:$0xf0] }
 0x3e6   :  { %v5080_v4 = vld [vmem:[#allocation17 + $0xd0] sm:$0xf0] }
 0x3e7   :  { %2040 = vmatpush.bf16.msrb.mxu1 %v4479_v32  ;;  %2053 = vmatpush.bf16.msrb.mxu3 %v4607_v33  ;;  %v4512_v32 = vld [vmem:[#allocation16 + $0x58] sm:$0xf0]  ;;  %v4787_v33 = vor.u32 %v6009_v23, %v4784_v24  ;;  %v5062_v23 = vld [vmem:[#allocation17 + $0xa0] sm:$0xf]  ;;  %v6082_v24 = vld [vmem:[#allocation17 + $0xac] sm:$0xf0] }
 0x3e8   :  { %2066 = vmatpush.bf16.msrb.mxu0 %v4735_v39  ;;  %2079 = vmatpush.bf16.msrb.mxu2 %v4863_v40  ;;  %v6005_v39 = vld [vmem:[#allocation16 + $0x24c] sm:$0xf]  ;;  %v4768_v40 = vld [vmem:[#allocation16 + $0x258] sm:$0xf0]  ;;  %v4515_v43 = vor.u32 %v5941_v31, %v4512_v32  ;;  %v6150_v31 = vld [vmem:[#allocation17 + $0x2cc] sm:$0xf0] }
 0x3e9   :  { %v4771_v48 = vor.u32 %v6005_v39, %v4768_v40  ;;  %v5174_v39 = vld [vmem:[#allocation17 + $0x180] sm:$0xf] }
 0x3ea   :  { %2041 = vmatmul.bf16.vlgmr.msrb.gmra.mxu1 %v7060_v61  ;;  %2054 = vmatmul.bf16.vlgmr.msrb.gmra.mxu3 %v7062_v62  ;;  %v5318_v40 = vld [vmem:[#allocation17 + $0x2a0] sm:$0xf] }
 0x3eb   :  { %2085 = vmatpush.bf16.msra.mxu1 %v4595_v41  ;;  %2098 = vmatpush.bf16.msra.mxu3 %v4723_v42  ;;  %v6037_v41 = vld [vmem:[#allocation16 + $0x34c] sm:$0xf]  ;;  %v4896_v42 = vld [vmem:[#allocation16 + $0x358] sm:$0xf0] }
 0x3ec   :  { %2111 = vmatpush.bf16.msra.mxu0 %v4851_v46  ;;  %2124 = vmatpush.bf16.msra.mxu2 %v4979_v47  ;;  %v5937_v46 = vld [vmem:[#allocation16 + $0x2c] sm:$0xf]  ;;  %v4496_v47 = vld [vmem:[#allocation16 + $0x38] sm:$0xf0]  ;;  %v4899_v49 = vor.u32 %v6037_v41, %v4896_v42 }
 0x3ed   :  { %2067 = vmatmul.bf16.vlgmr.msrb.gmra.mxu0 %v7064_v63  ;;  %2080 = vmatmul.bf16.vlgmr.msrb.gmra.mxu2 %v7066_v0  ;;  %v4499_v56 = vor.u32 %v5937_v46, %v4496_v47  ;;  %v6106_v46 = vld [vmem:[#allocation17 + $0x16c] sm:$0xf0] }
 0x3ef   :  { %2086 = vmatpush.bf16.msra.mxu1 %v4579_v55  ;;  %2099 = vmatpush.bf16.msra.mxu3 %v4707_v7  ;;  %v6033_v55 = vld [vmem:[#allocation16 + $0x32c] sm:$0xf]  ;;  %v4880_v7 = vld [vmem:[#allocation16 + $0x338] sm:$0xf0] }
 0x3f0   :  { %2112 = vmatpush.bf16.msra.mxu0 %v4835_v57  ;;  %2125 = vmatpush.bf16.msra.mxu2 %v4963_v11  ;;  %v5933_v57 = vld [vmem:[#allocation16 + $0xc] sm:$0xf]  ;;  %v4480_v11 = vld [vmem:[#allocation16 + $0x18] sm:$0xf0]  ;;  %v4883_v59 = vor.u32 %v6033_v55, %v4880_v7  ;;  %v4998_v55 = vld [vmem:[#allocation17 + $0x20] sm:$0xf]  ;;  %v5143_v7 = vor.u32 %v6102_v53, %v5142_v51 }
 0x3f1   :  { %v4483_v10 = vor.u32 %v5933_v57, %v4480_v11  ;;  %v6098_v57 = vld [vmem:[#allocation17 + $0x12c] sm:$0xf0]  ;;  %v5238_v51 = vld [vmem:[#allocation17 + $0x200] sm:$0xf] }
 0x3f2   :  { %v6126_v53 = vld [vmem:[#allocation17 + $0x20c] sm:$0xf0] }
 0x3f3   :  { %2087 = vmatpush.bf16.msra.mxu1 %v4563_v2  ;;  %2100 = vmatpush.bf16.msra.mxu3 %v4691_v3  ;;  %v6029_v2 = vld [vmem:[#allocation16 + $0x30c] sm:$0xf]  ;;  %v4864_v3 = vld [vmem:[#allocation16 + $0x318] sm:$0xf0] }
 0x3f4   :  { %2113 = vmatpush.bf16.msra.mxu0 %v4819_v12  ;;  %2126 = vmatpush.bf16.msra.mxu2 %v4947_v9  ;;  %v5222_v12 = vld [vmem:[#allocation17 + $0x1e0] sm:$0xf]  ;;  %v6122_v9 = vld [vmem:[#allocation17 + $0x1ec] sm:$0xf0]  ;;  %v4867_v27 = vor.u32 %v6029_v2, %v4864_v3  ;;  %v5099_v2 = vor.u32 %v6088_v60, %v5096_v1  ;;  %v6084_v3 = vld [vmem:[#allocation17 + $0xc4] sm:$0xf] }
 0x3f5   :  { %v5083_v5 = vor.u32 %v6084_v3, %v5080_v4  ;;  %v5462_v1 = vld [vmem:[#allocation17 + $0x3c0] sm:$0xf]  ;;  %v6100_v4 = vld [vmem:[#allocation17 + $0x144] sm:$0xf] }
 0x3f7   :  { %2088 = vmatpush.bf16.msra.mxu1 %v4547_v16  ;;  %2101 = vmatpush.bf16.msra.mxu3 %v4675_v17  ;;  %v5223_v16 = vor.u32 %v6122_v9, %v5222_v12  ;;  %v6086_v17 = vld [vmem:[#allocation17 + $0xcc] sm:$0xf0]  ;;  %v6080_v12 = vld [vmem:[#allocation17 + $0xa4] sm:$0xf]  ;;  %v5064_v9 = vld [vmem:[#allocation17 + $0xb0] sm:$0xf0] }
 0x3f8   :  { %2114 = vmatpush.bf16.msra.mxu0 %v4803_v19  ;;  %2127 = vmatpush.bf16.msra.mxu2 %v4931_v20  ;;  %v5350_v19 = vld [vmem:[#allocation17 + $0x2e0] sm:$0xf]  ;;  %v6154_v20 = vld [vmem:[#allocation17 + $0x2ec] sm:$0xf0]  ;;  %v5079_v22 = vor.u32 %v6086_v17, %v5078_v34  ;;  %v5048_v34 = vld [vmem:[#allocation17 + $0x90] sm:$0xf0] }
 0x3f9   :  { %v5351_v21 = vor.u32 %v6154_v20, %v5350_v19  ;;  %v6142_v17 = vld [vmem:[#allocation17 + $0x28c] sm:$0xf0]  ;;  %v5224_v19 = vld [vmem:[#allocation17 + $0x1f0] sm:$0xf0]  ;;  %v5286_v20 = vld [vmem:[#allocation17 + $0x260] sm:$0xf] }
 0x3fb   :  { %2089 = vmatpush.bf16.msra.mxu1 %v4531_v29  ;;  %2102 = vmatpush.bf16.msra.mxu3 %v4659_v30  ;;  %v6114_v29 = vld [vmem:[#allocation17 + $0x1ac] sm:$0xf0]  ;;  %v5334_v30 = vld [vmem:[#allocation17 + $0x2c0] sm:$0xf] }
 0x3fc   :  { %2115 = vmatpush.bf16.msra.mxu0 %v4787_v33  ;;  %2128 = vmatpush.bf16.msra.mxu2 %v4915_v35  ;;  %v5335_v32 = vor.u32 %v6150_v31, %v5334_v30  ;;  %v5063_v33 = vor.u32 %v6082_v24, %v5062_v23  ;;  %v5046_v35 = vld [vmem:[#allocation17 + $0x80] sm:$0xf]  ;;  %v5191_v38 = vor.u32 %v6114_v29, %v5190_v26  ;;  %v5032_v26 = vld [vmem:[#allocation17 + $0x70] sm:$0xf0]  ;;  %v6116_v29 = vld [vmem:[#allocation17 + $0x1c4] sm:$0xf] }
 0x3fd   :  { %v5047_v42 = vor.u32 %v6078_v36, %v5046_v35  ;;  %v5208_v30 = vld [vmem:[#allocation17 + $0x1d0] sm:$0xf0]  ;;  %v6134_v35 = vld [vmem:[#allocation17 + $0x24c] sm:$0xf0]  ;;  %v6068_v36 = vld [vmem:[#allocation17 + $0x44] sm:$0xf] }
 0x3fe   :  { %v5211_v31 = vor.u32 %v6116_v29, %v5208_v30 }
 0x3ff   :  { %2090 = vmatpush.bf16.msra.mxu1 %v4515_v43  ;;  %2103 = vmatpush.bf16.msra.mxu3 %v4643_v45  ;;  %v6074_v43 = vld [vmem:[#allocation17 + $0x6c] sm:$0xf0]  ;;  %v5158_v45 = vld [vmem:[#allocation17 + $0x160] sm:$0xf] }
 0x400   :  { %2116 = vmatpush.bf16.msra.mxu0 %v4771_v48  ;;  %2129 = vmatpush.bf16.msra.mxu2 %v4899_v49  ;;  %v5014_v48 = vld [vmem:[#allocation17 + $0x40] sm:$0xf]  ;;  %v5159_v49 = vor.u32 %v6106_v46, %v5158_v45  ;;  %v5000_v45 = vld [vmem:[#allocation17 + $0x30] sm:$0xf0]  ;;  %v6108_v46 = vld [vmem:[#allocation17 + $0x184] sm:$0xf] }
 0x401   :  { %v5015_v54 = vor.u32 %v6070_v50, %v5014_v48  ;;  %v6060_v48 = vld [vmem:[#allocation17 + $0x4] sm:$0xf] }
 0x403   :  { %2091 = vmatpush.bf16.msra.mxu1 %v4499_v56  ;;  %2104 = vmatpush.bf16.msra.mxu3 %v4627_v8  ;;  %v6066_v56 = vld [vmem:[#allocation17 + $0x2c] sm:$0xf0]  ;;  %v5126_v8 = vld [vmem:[#allocation17 + $0x120] sm:$0xf] }
 0x404   :  { %2117 = vmatpush.bf16.msra.mxu0 %v4755_v14  ;;  %2130 = vmatpush.bf16.msra.mxu2 %v4883_v59  ;;  %v4999_v11 = vor.u32 %v6066_v56, %v4998_v55  ;;  %v5127_v58 = vor.u32 %v6098_v57, %v5126_v8  ;;  %v4982_v14 = vld [vmem:[#allocation17] sm:$0xf]  ;;  %v6062_v59 = vld [vmem:[#allocation17 + $0xc] sm:$0xf0]  ;;  %v5239_v55 = vor.u32 %v6126_v53, %v5238_v51  ;;  %v6104_v8 = vld [vmem:[#allocation17 + $0x164] sm:$0xf] }
 0x405   :  { %v4983_v44 = vor.u32 %v6062_v59, %v4982_v14  ;;  %v6186_v56 = vld [vmem:[#allocation17 + $0x3ec] sm:$0xf0]  ;;  %v5352_v14 = vld [vmem:[#allocation17 + $0x2f0] sm:$0xf0] }
 0x407   :  { %2092 = vmatpush.bf16.msra.mxu1 %v4483_v10  ;;  %2105 = vmatpush.bf16.msra.mxu3 %v4611_v13  ;;  %v5110_v10 = vld [vmem:[#allocation17 + $0x100] sm:$0xf]  ;;  %v6094_v13 = vld [vmem:[#allocation17 + $0x10c] sm:$0xf0] }
 0x408   :  { %2118 = vmatpush.bf16.msra.mxu0 %v4739_v15  ;;  %2131 = vmatpush.bf16.msra.mxu2 %v4867_v27  ;;  %v5302_v15 = vld [vmem:[#allocation17 + $0x280] sm:$0xf]  ;;  %v5067_v27 = vor.u32 %v6080_v12, %v5064_v9  ;;  %v6148_v12 = vld [vmem:[#allocation17 + $0x2c4] sm:$0xf] }
 0x409   :  { %v5303_v18 = vor.u32 %v6142_v17, %v5302_v15  ;;  %v5446_v15 = vld [vmem:[#allocation17 + $0x3a0] sm:$0xf]  ;;  %v6144_v17 = vld [vmem:[#allocation17 + $0x2a4] sm:$0xf] }
 0x40a   :  { %2093 = vmatmul.bf16.vlgmr.msra.gmra.mxu1 %v7060_v61  ;;  %2106 = vmatmul.bf16.vlgmr.msra.gmra.mxu3 %v7062_v62  ;;  %v6110_v61 = vld [vmem:[#allocation17 + $0x18c] sm:$0xf0] }
 0x40b   :  { %2919 = vmatpush.bf16.msrb.mxu1 %v5095_v28  ;;  %2932 = vmatpush.bf16.msrb.mxu3 %v5223_v16  ;;  %v6146_v62 = vld [vmem:[#allocation17 + $0x2ac] sm:$0xf0]  ;;  %v6076_v28 = vld [vmem:[#allocation17 + $0x84] sm:$0xf]  ;;  %v5111_v16 = vor.u32 %v6094_v13, %v5110_v10  ;;  %v5336_v10 = vld [vmem:[#allocation17 + $0x2d0] sm:$0xf0] }
 0x40c   :  { %2119 = vmatmul.bf16.vlgmr.msra.gmra.mxu0 %v7064_v63  ;;  %2132 = vmatmul.bf16.vlgmr.msra.gmra.mxu2 %v7066_v0  ;;  %v5319_v41 = vor.u32 %v6146_v62, %v5318_v40  ;;  %v5030_v63 = vld [vmem:[#allocation17 + $0x60] sm:$0xf]  ;;  %v5175_v0 = vor.u32 %v6110_v61, %v5174_v39  ;;  %v5051_v24 = vor.u32 %v6076_v28, %v5048_v34  ;;  %v6112_v61 = vld [vmem:[#allocation17 + $0x1a4] sm:$0xf]  ;;  %v5192_v40 = vld [vmem:[#allocation17 + $0x1b0] sm:$0xf0] }
 0x40d   :  { %2945 = vmatpush.bf16.msrb.mxu0 %v5351_v21  ;;  %v5031_v47 = vor.u32 %v6074_v43, %v5030_v63  ;;  %v5227_v21 = vor.u32 %v6120_v37, %v5224_v19  ;;  %v5195_v62 = vor.u32 %v6112_v61, %v5192_v40  ;;  %v6064_v43 = vld [vmem:[#allocation17 + $0x24] sm:$0xf]  ;;  %v5339_v13 = vor.u32 %v6148_v12, %v5336_v10  ;;  %v5320_v37 = vld [vmem:[#allocation17 + $0x2b0] sm:$0xf0] }
 0x40e   :  { %v6096_v34 = vld [vmem:[#allocation17 + $0x124] sm:$0xf]  ;;  %v5323_v19 = vor.u32 %v6144_v17, %v5320_v37  ;;  %v5288_v40 = vld [vmem:[#allocation17 + $0x270] sm:$0xf0]  ;;  %v6083_v37 = vld [vmem:[#allocation17 + $0xb4] sm:$0xf0] }
 0x40f   :  { %2920 = vmatpush.bf16.msrb.mxu1 %v5079_v22  ;;  %2933 = vmatpush.bf16.msrb.mxu3 %v5207_v25  ;;  %v6138_v22 = vld [vmem:[#allocation17 + $0x26c] sm:$0xf0]  ;;  %v6072_v25 = vld [vmem:[#allocation17 + $0x64] sm:$0xf]  ;;  %v5240_v10 = vld [vmem:[#allocation17 + $0x210] sm:$0xf0] }
 0x410   :  { %v5287_v23 = vor.u32 %v6138_v22, %v5286_v20  ;;  %v5430_v20 = vld [vmem:[#allocation17 + $0x380] sm:$0xf]  ;;  %v6136_v61 = vld [vmem:[#allocation17 + $0x264] sm:$0xf] }
 0x411   :  { %2946 = vmatpush.bf16.msrb.mxu0 %v5335_v32  ;;  %v5035_v32 = vor.u32 %v6072_v25, %v5032_v26  ;;  %v7087_v22 = vld [vmem:[%s7208_s10] sm:$0xf]  ;;  %v5112_v25 = vld [vmem:[#allocation17 + $0x110] sm:$0xf0] }
 0x412   :  { %v6140_v26 = vld [vmem:[#allocation17 + $0x284] sm:$0xf] }
 0x413   :  { %2921 = vmatpush.bf16.msrb.mxu1 %v5063_v33  ;;  %2934 = vmatpush.bf16.msrb.mxu3 %v5191_v38  ;;  %v5270_v33 = vld [vmem:[#allocation17 + $0x240] sm:$0xf]  ;;  %v5016_v38 = vld [vmem:[#allocation17 + $0x50] sm:$0xf0] }
 0x414   :  { %v5271_v39 = vor.u32 %v6134_v35, %v5270_v33  ;;  %v5019_v63 = vor.u32 %v6068_v36, %v5016_v38  ;;  %v5414_v36 = vld [vmem:[#allocation17 + $0x360] sm:$0xf]  ;;  %v6170_v38 = vld [vmem:[#allocation17 + $0x36c] sm:$0xf0] }
 0x415   :  { %2947 = vmatpush.bf16.msrb.mxu0 %v5319_v41  ;;  %v5254_v41 = vld [vmem:[#allocation17 + $0x220] sm:$0xf] }
 0x417   :  { %2922 = vmatpush.bf16.msrb.mxu1 %v5047_v42  ;;  %2935 = vmatpush.bf16.msrb.mxu3 %v5175_v0  ;;  %v6130_v42 = vld [vmem:[#allocation17 + $0x22c] sm:$0xf0] }
 0x418   :  { %v5255_v0 = vor.u32 %v6130_v42, %v5254_v41  ;;  %v5398_v42 = vld [vmem:[#allocation17 + $0x340] sm:$0xf] }
 0x419   :  { %2948 = vmatpush.bf16.msrb.mxu0 %v5303_v18 }
 0x41b   :  { %2923 = vmatpush.bf16.msrb.mxu1 %v5031_v47  ;;  %2936 = vmatpush.bf16.msrb.mxu3 %v5159_v49  ;;  %v5176_v47 = vld [vmem:[#allocation17 + $0x190] sm:$0xf0] }
 0x41c   :  { %v4984_v49 = vld [vmem:[#allocation17 + $0x10] sm:$0xf0]  ;;  %v5179_v50 = vor.u32 %v6108_v46, %v5176_v47  ;;  %v6132_v47 = vld [vmem:[#allocation17 + $0x244] sm:$0xf] }
 0x41d   :  { %2949 = vmatpush.bf16.msrb.mxu0 %v5287_v23 }
 0x41f   :  { %2924 = vmatpush.bf16.msrb.mxu1 %v5015_v54  ;;  %2937 = vmatpush.bf16.msrb.mxu3 %v5143_v7  ;;  %v5003_v54 = vor.u32 %v6064_v43, %v5000_v45  ;;  %v5478_v7 = vld [vmem:[#allocation17 + $0x3e0] sm:$0xf] }
 0x420   :  { %v5479_v57 = vor.u32 %v6186_v56, %v5478_v7  ;;  %v5382_v7 = vld [vmem:[#allocation17 + $0x320] sm:$0xf]  ;;  %v6162_v56 = vld [vmem:[#allocation17 + $0x32c] sm:$0xf0] }
 0x421   :  { %2950 = vmatpush.bf16.msrb.mxu0 %v5271_v39  ;;  %v5415_v39 = vor.u32 %v6170_v38, %v5414_v36 }
 0x422   :  { %2958 = vmatpush.bf16.msrb.mxu2 %v5479_v57  ;;  %v5383_v57 = vor.u32 %v6162_v56, %v5382_v7  ;;  %v6168_v56 = vld [vmem:[#allocation17 + $0x364] sm:$0xf] }
 0x423   :  { %2925 = vmatpush.bf16.msrb.mxu1 %v4999_v11  ;;  %2938 = vmatpush.bf16.msrb.mxu3 %v5127_v58  ;;  %v5160_v11 = vld [vmem:[#allocation17 + $0x170] sm:$0xf0]  ;;  %v6152_v58 = vld [vmem:[#allocation17 + $0x2e4] sm:$0xf] }
 0x424   :  { %v5163_v59 = vor.u32 %v6104_v8, %v5160_v11  ;;  %v5355_v60 = vor.u32 %v6152_v58, %v5352_v14  ;;  %v6128_v11 = vld [vmem:[#allocation17 + $0x224] sm:$0xf]  ;;  %v5256_v58 = vld [vmem:[#allocation17 + $0x230] sm:$0xf0] }
 0x425   :  { %2951 = vmatpush.bf16.msrb.mxu0 %v5255_v0 }
 0x427   :  { %2926 = vmatpush.bf16.msrb.mxu1 %v4983_v44  ;;  %2939 = vmatpush.bf16.msrb.mxu3 %v5111_v16  ;;  %v6182_v44 = vld [vmem:[#allocation17 + $0x3cc] sm:$0xf0]  ;;  %v5128_v16 = vld [vmem:[#allocation17 + $0x130] sm:$0xf0] }
 0x428   :  { %v5463_v3 = vor.u32 %v6182_v44, %v5462_v1  ;;  %v5131_v18 = vor.u32 %v6096_v34, %v5128_v16  ;;  %v5086_v1 = vld [vmem:[#allocation17 + $0xc8] sm:$0xf]  ;;  %v6087_v44 = vld [vmem:[#allocation17 + $0xd4] sm:$0xf0]  ;;  %v5480_v34 = vld [vmem:[#allocation17 + $0x3f0] sm:$0xf0] }
 0x429   :  { %2952 = vmatpush.bf16.msrb.mxu0 %v5239_v55  ;;  %v6091_v55 = vld [vmem:[#allocation17 + $0xf4] sm:$0xf0]  ;;  %v1282_v16 = vperm.slane %v7087_v22, 1 }
 0x42a   :  { %2959 = vmatpush.bf16.msrb.mxu2 %v5463_v3  ;;  %v5366_v3 = vld [vmem:[#allocation17 + $0x300] sm:$0xf] }
 0x42b   :  { %2971 = vmatpush.bf16.msra.mxu1 %v5099_v2  ;;  %2984 = vmatpush.bf16.msra.mxu3 %v5227_v21  ;;  %v4987_v2 = vor.u32 %v6060_v48, %v4984_v49  ;;  %v6174_v21 = vld [vmem:[#allocation17 + $0x38c] sm:$0xf0]  ;;  %v5272_v48 = vld [vmem:[#allocation17 + $0x250] sm:$0xf0] }
 0x42c   :  { %v5431_v23 = vor.u32 %v6174_v21, %v5430_v20  ;;  %v6180_v20 = vld [vmem:[#allocation17 + $0x3c4] sm:$0xf]  ;;  %v5464_v21 = vld [vmem:[#allocation17 + $0x3d0] sm:$0xf0] }
 0x42d   :  { %2997 = vmatpush.bf16.msra.mxu0 %v5355_v60 }
 0x42f   :  { %2972 = vmatpush.bf16.msra.mxu1 %v5083_v5  ;;  %2985 = vmatpush.bf16.msra.mxu3 %v5211_v31  ;;  %v5144_v5 = vld [vmem:[#allocation17 + $0x150] sm:$0xf0] }
 0x430   :  { %v5147_v9 = vor.u32 %v6100_v4, %v5144_v5  ;;  %v5304_v31 = vld [vmem:[#allocation17 + $0x290] sm:$0xf0]  ;;  %v6158_v4 = vld [vmem:[#allocation17 + $0x30c] sm:$0xf0] }
 0x431   :  { %2998 = vmatpush.bf16.msra.mxu0 %v5339_v13  ;;  %v5307_v35 = vor.u32 %v6140_v26, %v5304_v31  ;;  %v5367_v12 = vor.u32 %v6158_v4, %v5366_v3  ;;  %v6184_v13 = vld [vmem:[#allocation17 + $0x3e4] sm:$0xf]  ;;  %v5054_v26 = vld [vmem:[#allocation17 + $0x88] sm:$0xf]  ;;  %v1283_v3 = vperm.slane %v7087_v22, 2 }
 0x432   :  { %v6176_v31 = vld [vmem:[#allocation17 + $0x3a4] sm:$0xf] }
 0x433   :  { %2973 = vmatpush.bf16.msra.mxu1 %v5067_v27  ;;  %2986 = vmatpush.bf16.msra.mxu3 %v5195_v62  ;;  %v6178_v27 = vld [vmem:[#allocation17 + $0x3ac] sm:$0xf0]  ;;  %v5291_v62 = vor.u32 %v6136_v61, %v5288_v40  ;;  %v5038_v61 = vld [vmem:[#allocation17 + $0x68] sm:$0xf] }
 0x434   :  { %v5447_v28 = vor.u32 %v6178_v27, %v5446_v15  ;;  %v5087_v27 = vor.u32 %v6087_v44, %v5086_v1  ;;  %v6115_v1 = vld [vmem:[#allocation17 + $0x1b4] sm:$0xf0] }
 0x435   :  { %2999 = vmatpush.bf16.msra.mxu0 %v5323_v19  ;;  %v5483_v19 = vor.u32 %v6184_v13, %v5480_v34  ;;  %v4990_v13 = vld [vmem:[#allocation17 + $0x8] sm:$0xf] }
 0x436   :  { %2960 = vmatpush.bf16.msrb.mxu2 %v5447_v28 }
 0x437   :  { %2974 = vmatpush.bf16.msra.mxu1 %v5051_v24  ;;  %2987 = vmatpush.bf16.msra.mxu3 %v5179_v50  ;;  %v6092_v24 = vld [vmem:[#allocation17 + $0x104] sm:$0xf]  ;;  %v5275_v50 = vor.u32 %v6132_v47, %v5272_v48  ;;  %v5022_v48 = vld [vmem:[#allocation17 + $0x48] sm:$0xf] }
 0x438   :  { %v5115_v30 = vor.u32 %v6092_v24, %v5112_v25 }
 0x439   :  { %3000 = vmatpush.bf16.msra.mxu0 %v5307_v35 }
 0x43a   :  { %2961 = vmatpush.bf16.msrb.mxu2 %v5431_v23  ;;  %v5467_v23 = vor.u32 %v6180_v20, %v5464_v21 }
 0x43b   :  { %2975 = vmatpush.bf16.msra.mxu1 %v5035_v32  ;;  %2988 = vmatpush.bf16.msra.mxu3 %v5163_v59  ;;  %v1281_v32 = vperm.slane %v7087_v22, 0  ;;  %v5259_v59 = vor.u32 %v6128_v11, %v5256_v58  ;;  %v5006_v58 = vld [vmem:[#allocation17 + $0x28] sm:$0xf] }
 0x43d   :  { %3001 = vmatpush.bf16.msra.mxu0 %v5291_v62 }
 0x43e   :  { %2962 = vmatpush.bf16.msrb.mxu2 %v5415_v39 }
 0x43f   :  { %2976 = vmatpush.bf16.msra.mxu1 %v5019_v63  ;;  %2989 = vmatpush.bf16.msra.mxu3 %v5147_v9  ;;  %v6166_v63 = vld [vmem:[#allocation17 + $0x34c] sm:$0xf0]  ;;  %v6124_v9 = vld [vmem:[#allocation17 + $0x204] sm:$0xf] }
 0x440   :  { %v5399_v43 = vor.u32 %v6166_v63, %v5398_v42  ;;  %v5243_v28 = vor.u32 %v6124_v9, %v5240_v10  ;;  %v5230_v42 = vld [vmem:[#allocation17 + $0x1e8] sm:$0xf]  ;;  %v6123_v63 = vld [vmem:[#allocation17 + $0x1f4] sm:$0xf0] }
 0x441   :  { %3002 = vmatpush.bf16.msra.mxu0 %v5275_v50  ;;  %v5231_v47 = vor.u32 %v6123_v63, %v5230_v42  ;;  %v6071_v50 = vld [vmem:[#allocation17 + $0x54] sm:$0xf0] }
 0x442   :  { %2963 = vmatpush.bf16.msrb.mxu2 %v5399_v43  ;;  %v5432_v43 = vld [vmem:[#allocation17 + $0x390] sm:$0xf0] }
 0x443   :  { %2977 = vmatpush.bf16.msra.mxu1 %v5003_v54  ;;  %2990 = vmatpush.bf16.msra.mxu3 %v5131_v18  ;;  %v5102_v54 = vld [vmem:[#allocation17 + $0xe8] sm:$0xf] }
 0x444   :  { %v5103_v14 = vor.u32 %v6091_v55, %v5102_v54  ;;  %v5070_v18 = vld [vmem:[#allocation17 + $0xa8] sm:$0xf] }
 0x445   :  { %3003 = vmatpush.bf16.msra.mxu0 %v5259_v59  ;;  %v5071_v24 = vor.u32 %v6083_v37, %v5070_v18  ;;  %v5198_v59 = vld [vmem:[#allocation17 + $0x1a8] sm:$0xf]  ;;  %v6160_v37 = vld [vmem:[#allocation17 + $0x324] sm:$0xf] }
 0x446   :  { %v1938_v29 = vpop.f32.mrf.mxu1  ;;  %2964 = vmatpush.bf16.msrb.mxu2 %v5383_v57  ;;  %v5023_v57 = vor.u32 %v6071_v50, %v5022_v48  ;;  %v5199_v10 = vor.u32 %v6115_v1, %v5198_v59  ;;  %v5326_v59 = vld [vmem:[#allocation17 + $0x2a8] sm:$0xf]  ;;  %v6147_v1 = vld [vmem:[#allocation17 + $0x2b4] sm:$0xf0] }
 0x447   :  { %2978 = vmatpush.bf16.msra.mxu1 %v4987_v2  ;;  %v1964_v33 = vpop.f32.mrf.mxu0  ;;  %2991 = vmatpush.bf16.msra.mxu3 %v5115_v30  ;;  %v1939_v41 = vadd.f32 %v1938_v29, %v1281_v32  ;;  %v6079_v29 = vld [vmem:[#allocation17 + $0x94] sm:$0xf0]  ;;  %v5448_v32 = vld [vmem:[#allocation17 + $0x3b0] sm:$0xf0] }
 0x448   :  { %v5451_v36 = vor.u32 %v6176_v31, %v5448_v32  ;;  %v5055_v39 = vor.u32 %v6079_v29, %v5054_v26  ;;  %v5166_v29 = vld [vmem:[#allocation17 + $0x168] sm:$0xf] }
 0x449   :  { %3004 = vmatpush.bf16.msra.mxu0 %v5243_v28  ;;  %v6111_v28 = vld [vmem:[#allocation17 + $0x194] sm:$0xf0] }
 0x44a   :  { %2965 = vmatpush.bf16.msrb.mxu2 %v5367_v12  ;;  %v5400_v12 = vld [vmem:[#allocation17 + $0x350] sm:$0xf0] }
 0x44c   :  { %v1951_v0 = vpop.f32.mrf.mxu3 }
 0x44d   :  { %v1952_v45 = vadd.f32 %v1951_v0, %v1939_v41  ;;  %v1977_v46 = vpop.f32.mrf.mxu2  ;;  %v6075_v41 = vld [vmem:[#allocation17 + $0x74] sm:$0xf0]  ;;  %v6172_v0 = vld [vmem:[#allocation17 + $0x384] sm:$0xf] }
 0x44e   :  { %v1940_v49 = vpop.f32.mrf.mxu1  ;;  %3010 = vmatpush.bf16.msra.mxu2 %v5483_v19  ;;  %v5435_v54 = vor.u32 %v6172_v0, %v5432_v43  ;;  %v5384_v19 = vld [vmem:[#allocation17 + $0x330] sm:$0xf0]  ;;  %v5150_v0 = vld [vmem:[#allocation17 + $0x148] sm:$0xf]  ;;  %v6103_v43 = vld [vmem:[#allocation17 + $0x154] sm:$0xf0] }
 0x44f   :  { %v1965_v51 = vadd.f32 %v1964_v33, %v1952_v45  ;;  %v1966_v53 = vpop.f32.mrf.mxu0  ;;  %v5387_v31 = vor.u32 %v6160_v37, %v5384_v19  ;;  %v6069_v37 = vld [vmem:[#allocation17 + $0x4c] sm:$0xf]  ;;  %v5024_v19 = vld [vmem:[#allocation17 + $0x58] sm:$0xf0] }
 0x450   :  { %v6119_v53 = vld [vmem:[#allocation17 + $0x1d4] sm:$0xf0] }
 0x451   :  { %v1978_v8 = vadd.f32 %v1977_v46, %v1965_v51  ;;  %v5039_v46 = vor.u32 %v6075_v41, %v5038_v61  ;;  %v5214_v51 = vld [vmem:[#allocation17 + $0x1c8] sm:$0xf]  ;;  %v6155_v61 = vld [vmem:[#allocation17 + $0x2f4] sm:$0xf0] }
 0x452   :  { %3011 = vmatpush.bf16.msra.mxu2 %v5467_v23  ;;  %v5215_v11 = vor.u32 %v6119_v53, %v5214_v51  ;;  %v5342_v51 = vld [vmem:[#allocation17 + $0x2c8] sm:$0xf]  ;;  %v6151_v53 = vld [vmem:[#allocation17 + $0x2d4] sm:$0xf0] }
 0x453   :  { %v7090_v60 = vpack.c.bf16 %v1978_v8, %v1978_v8  ;;  %v5416_v8 = vld [vmem:[#allocation17 + $0x370] sm:$0xf0] }
 0x454   :  { %v1953_v2 = vpop.f32.mrf.mxu3  ;;  %v5419_v44 = vor.u32 %v6168_v56, %v5416_v8  ;;  %v5134_v8 = vld [vmem:[#allocation17 + $0x128] sm:$0xf] }
 0x455   :  { %v1979_v5 = vpop.f32.mrf.mxu2  ;;  %2927 = vmatmul.bf16.vlgmr.msrb.gmra.mxu1 %v7090_v60 }
 0x456   :  { %3023 = vmatpush.bf16.msrb.mxu1 %v5103_v14  ;;  %v1990_v15 = vpop.f32.mrf.mxu1  ;;  %3012 = vmatpush.bf16.msra.mxu2 %v5451_v36  ;;  %v6067_v14 = vld [vmem:[#allocation17 + $0x34] sm:$0xf0]  ;;  %v6164_v5 = vld [vmem:[#allocation17 + $0x344] sm:$0xf]  ;;  %v5088_v36 = vld [vmem:[#allocation17 + $0xd8] sm:$0xf0] }
 0x457   :  { %v2016_v17 = vpop.f32.mrf.mxu0  ;;  %v1991_v25 = vadd.f32 %v1990_v15, %v1282_v16  ;;  %v5007_v9 = vor.u32 %v6067_v14, %v5006_v58  ;;  %v6063_v15 = vld [vmem:[#allocation17 + $0x14] sm:$0xf0]  ;;  %v5403_v34 = vor.u32 %v6164_v5, %v5400_v12  ;;  %v6089_v16 = vld [vmem:[#allocation17 + $0xec] sm:$0xf]  ;;  %v5056_v14 = vld [vmem:[#allocation17 + $0x98] sm:$0xf0]  ;;  %v5327_v12 = vor.u32 %v6147_v1, %v5326_v59 }
 0x458   :  { %v4991_v21 = vor.u32 %v6063_v15, %v4990_v13  ;;  %v6077_v58 = vld [vmem:[#allocation17 + $0x8c] sm:$0xf]  ;;  %v5232_v13 = vld [vmem:[#allocation17 + $0x1f8] sm:$0xf0]  ;;  %v5310_v15 = vld [vmem:[#allocation17 + $0x288] sm:$0xf] }
 0x459   :  { %v6073_v5 = vld [vmem:[#allocation17 + $0x6c] sm:$0xf]  ;;  %v5168_v59 = vld [vmem:[#allocation17 + $0x178] sm:$0xf0] }
 0x45a   :  { %3024 = vmatpush.bf16.msrb.mxu1 %v5087_v27  ;;  %3013 = vmatpush.bf16.msra.mxu2 %v5435_v54  ;;  %v5182_v27 = vld [vmem:[#allocation17 + $0x188] sm:$0xf]  ;;  %v6153_v1 = vld [vmem:[#allocation17 + $0x2ec] sm:$0xf] }
 0x45b   :  { %v5183_v23 = vor.u32 %v6111_v28, %v5182_v27  ;;  %v6143_v27 = vld [vmem:[#allocation17 + $0x294] sm:$0xf0] }
 0x45c   :  { %v2003_v30 = vpop.f32.mrf.mxu3 }
 0x45d   :  { %v2004_v33 = vadd.f32 %v2003_v30, %v1991_v25  ;;  %v2029_v35 = vpop.f32.mrf.mxu2  ;;  %v6107_v30 = vld [vmem:[#allocation17 + $0x174] sm:$0xf0] }
 0x45e   :  { %3025 = vmatpush.bf16.msrb.mxu1 %v5071_v24  ;;  %v1992_v38 = vpop.f32.mrf.mxu1  ;;  %3014 = vmatpush.bf16.msra.mxu2 %v5419_v44  ;;  %v5167_v41 = vor.u32 %v6107_v30, %v5166_v29  ;;  %v5278_v29 = vld [vmem:[#allocation17 + $0x248] sm:$0xf]  ;;  %v6065_v30 = vld [vmem:[#allocation17 + $0x2c] sm:$0xf] }
 0x45f   :  { %v2017_v40 = vadd.f32 %v2016_v17, %v2004_v33  ;;  %v2018_v62 = vpop.f32.mrf.mxu0  ;;  %v5104_v17 = vld [vmem:[#allocation17 + $0xf8] sm:$0xf0]  ;;  %v5358_v33 = vld [vmem:[#allocation17 + $0x2e8] sm:$0xf] }
 0x460   :  { %v5107_v26 = vor.u32 %v6089_v16, %v5104_v17  ;;  %v5368_v62 = vld [vmem:[#allocation17 + $0x310] sm:$0xf0]  ;;  %v5311_v17 = vor.u32 %v6143_v27, %v5310_v15  ;;  %v6101_v15 = vld [vmem:[#allocation17 + $0x14c] sm:$0xf]  ;;  %v5152_v27 = vld [vmem:[#allocation17 + $0x158] sm:$0xf0] }
 0x461   :  { %v2030_v45 = vadd.f32 %v2029_v35, %v2017_v40  ;;  %v6085_v35 = vld [vmem:[#allocation17 + $0xcc] sm:$0xf]  ;;  %v6156_v40 = vld [vmem:[#allocation17 + $0x304] sm:$0xf] }
 0x462   :  { %3026 = vmatpush.bf16.msrb.mxu1 %v5055_v39  ;;  %3015 = vmatpush.bf16.msra.mxu2 %v5403_v34  ;;  %v5091_v63 = vor.u32 %v6085_v35, %v5088_v36  ;;  %v5371_v48 = vor.u32 %v6156_v40, %v5368_v62  ;;  %v6113_v35 = vld [vmem:[#allocation17 + $0x1ac] sm:$0xf]  ;;  %v5200_v36 = vld [vmem:[#allocation17 + $0x1b8] sm:$0xf0] }
 0x463   :  { %v7094_v49 = vpack.c.bf16 %v2030_v45, %v2030_v45  ;;  %v5359_v45 = vor.u32 %v6155_v61, %v5358_v33  ;;  %v6135_v33 = vld [vmem:[#allocation17 + $0x254] sm:$0xf0]  ;;  %v5203_v62 = vor.u32 %v6113_v35, %v5200_v36  ;;  %v5120_v35 = vld [vmem:[#allocation17 + $0x118] sm:$0xf0]  ;;  %v6141_v36 = vld [vmem:[#allocation17 + $0x28c] sm:$0xf] }
 0x464   :  { %v2005_v55 = vpop.f32.mrf.mxu3  ;;  %v5279_v40 = vor.u32 %v6135_v33, %v5278_v29  ;;  %v6093_v33 = vld [vmem:[#allocation17 + $0x10c] sm:$0xf] }
 0x465   :  { %v2031_v7 = vpop.f32.mrf.mxu2  ;;  %2940 = vmatmul.bf16.vlgmr.msrb.gmra.mxu3 %v7094_v49  ;;  %2979 = vmatmul.bf16.vlgmr.msra.gmra.mxu1 %v7090_v60  ;;  %v5151_v55 = vor.u32 %v6103_v43, %v5150_v0  ;;  %v6131_v0 = vld [vmem:[#allocation17 + $0x234] sm:$0xf0]  ;;  %v6109_v43 = vld [vmem:[#allocation17 + $0x18c] sm:$0xf] }
 0x466   :  { %3027 = vmatpush.bf16.msrb.mxu1 %v5039_v46  ;;  %3036 = vmatpush.bf16.msrb.mxu3 %v5231_v47  ;;  %v6081_v46 = vld [vmem:[#allocation17 + $0xac] sm:$0xf]  ;;  %v5072_v47 = vld [vmem:[#allocation17 + $0xb8] sm:$0xf0] }
 0x467   :  { %v2042_v2 = vpop.f32.mrf.mxu1  ;;  %3016 = vmatpush.bf16.msra.mxu2 %v5387_v31  ;;  %v5075_v56 = vor.u32 %v6081_v46, %v5072_v47  ;;  %v5008_v31 = vld [vmem:[#allocation17 + $0x38] sm:$0xf0] }
 0x468   :  { %v2043_v18 = vadd.f32 %v2042_v2, %v1283_v3  ;;  %v5059_v2 = vor.u32 %v6077_v58, %v5056_v14  ;;  %v5118_v3 = vld [vmem:[#allocation17 + $0x108] sm:$0xf]  ;;  %v5011_v61 = vor.u32 %v6065_v30, %v5008_v31  ;;  %v6187_v58 = vld [vmem:[#allocation17 + $0x3f4] sm:$0xf0]  ;;  %v6105_v14 = vld [vmem:[#allocation17 + $0x16c] sm:$0xf] }
 0x469   :  { %v5438_v30 = vld [vmem:[#allocation17 + $0x388] sm:$0xf] }
 0x46a   :  { %v2068_v4 = vpop.f32.mrf.mxu0  ;;  %3028 = vmatpush.bf16.msrb.mxu1 %v5023_v57  ;;  %3037 = vmatpush.bf16.msrb.mxu3 %v5215_v11  ;;  %v6099_v57 = vld [vmem:[#allocation17 + $0x134] sm:$0xf0]  ;;  %v5343_v11 = vor.u32 %v6151_v53, %v5342_v51 }
 0x46b   :  { %3017 = vmatpush.bf16.msra.mxu2 %v5371_v48  ;;  %v5135_v44 = vor.u32 %v6099_v57, %v5134_v8  ;;  %v5486_v8 = vld [vmem:[#allocation17 + $0x3e8] sm:$0xf] }
 0x46d   :  { %v2055_v20 = vpop.f32.mrf.mxu3 }
 0x46e   :  { %3029 = vmatpush.bf16.msrb.mxu1 %v5007_v9  ;;  %3038 = vmatpush.bf16.msrb.mxu3 %v5199_v10  ;;  %v2056_v24 = vadd.f32 %v2055_v20, %v2043_v18  ;;  %v5040_v9 = vld [vmem:[#allocation17 + $0x78] sm:$0xf0]  ;;  %v6121_v10 = vld [vmem:[#allocation17 + $0x1ec] sm:$0xf]  ;;  %v5294_v18 = vld [vmem:[#allocation17 + $0x268] sm:$0xf] }
 0x46f   :  { %v2044_v32 = vpop.f32.mrf.mxu1  ;;  %v5043_v34 = vor.u32 %v6073_v5, %v5040_v9  ;;  %v5235_v16 = vor.u32 %v6121_v10, %v5232_v13  ;;  %v6139_v20 = vld [vmem:[#allocation17 + $0x274] sm:$0xf0]  ;;  %v5171_v5 = vor.u32 %v6105_v14, %v5168_v59  ;;  %v5248_v14 = vld [vmem:[#allocation17 + $0x218] sm:$0xf0]  ;;  %v6185_v59 = vld [vmem:[#allocation17 + $0x3ec] sm:$0xf] }
 0x470   :  { %v2081_v25 = vpop.f32.mrf.mxu2  ;;  %v2069_v38 = vadd.f32 %v2068_v4, %v2056_v24  ;;  %v6095_v4 = vld [vmem:[#allocation17 + $0x114] sm:$0xf0]  ;;  %v5027_v24 = vor.u32 %v6069_v37, %v5024_v19  ;;  %v5155_v37 = vor.u32 %v6101_v15, %v5152_v27  ;;  %v5454_v19 = vld [vmem:[#allocation17 + $0x3a8] sm:$0xf]  ;;  %v6173_v15 = vld [vmem:[#allocation17 + $0x38c] sm:$0xf] }
 0x471   :  { %v5119_v28 = vor.u32 %v6095_v4, %v5118_v3  ;;  %v5487_v4 = vor.u32 %v6187_v58, %v5486_v8  ;;  %v6183_v13 = vld [vmem:[#allocation17 + $0x3d4] sm:$0xf0]  ;;  %v6125_v58 = vld [vmem:[#allocation17 + $0x20c] sm:$0xf]  ;;  %v5440_v27 = vld [vmem:[#allocation17 + $0x398] sm:$0xf0] }
 0x472   :  { %v2070_v39 = vpop.f32.mrf.mxu0  ;;  %3030 = vmatpush.bf16.msrb.mxu1 %v4991_v21  ;;  %3039 = vmatpush.bf16.msrb.mxu3 %v5183_v23  ;;  %v2082_v42 = vadd.f32 %v2081_v25, %v2069_v38  ;;  %v6117_v21 = vld [vmem:[#allocation17 + $0x1cc] sm:$0xf]  ;;  %v5216_v23 = vld [vmem:[#allocation17 + $0x1d8] sm:$0xf0]  ;;  %v5295_v25 = vor.u32 %v6139_v20, %v5294_v18  ;;  %v1284_v38 = vperm.slane %v7087_v22, 3 }
 0x474   :  { %v7099_v50 = vpack.c.bf16 %v2082_v42, %v2082_v42  ;;  %v6061_v42 = vld [vmem:[#allocation17 + $0xc] sm:$0xf] }
 0x475   :  { %2992 = vmatmul.bf16.vlgmr.msra.gmra.mxu3 %v7094_v49  ;;  %3031 = vmatmul.bf16.vlgmr.msrb.gmra.mxu1 %v7090_v60  ;;  %v2057_v54 = vpop.f32.mrf.mxu3 }
 0x476   :  { %3075 = vmatpush.bf16.msra.mxu1 %v5107_v26  ;;  %3040 = vmatpush.bf16.msrb.mxu3 %v5167_v41  ;;  %v5219_v26 = vor.u32 %v6117_v21, %v5216_v23  ;;  %v5262_v41 = vld [vmem:[#allocation17 + $0x228] sm:$0xf]  ;;  %v6179_v21 = vld [vmem:[#allocation17 + $0x3b4] sm:$0xf0]  ;;  %v5136_v23 = vld [vmem:[#allocation17 + $0x138] sm:$0xf0] }
 0x477   :  { %2953 = vmatmul.bf16.vlgmr.msrb.gmra.mxu0 %v7099_v50  ;;  %v5263_v53 = vor.u32 %v6131_v0, %v5262_v41  ;;  %v6171_v41 = vld [vmem:[#allocation17 + $0x374] sm:$0xf0] }
 0x478   :  { %v2083_v7 = vpop.f32.mrf.mxu2  ;;  %3049 = vmatpush.bf16.msrb.mxu0 %v5359_v45  ;;  %v5184_v45 = vld [vmem:[#allocation17 + $0x198] sm:$0xf0] }
 0x479   :  { %v5187_v54 = vor.u32 %v6109_v43, %v5184_v45  ;;  %v5246_v7 = vld [vmem:[#allocation17 + $0x208] sm:$0xf] }
 0x47a   :  { %3076 = vmatpush.bf16.msra.mxu1 %v5091_v63  ;;  %3041 = vmatpush.bf16.msrb.mxu3 %v5151_v55  ;;  %v4992_v63 = vld [vmem:[#allocation17 + $0x18] sm:$0xf0]  ;;  %v5406_v45 = vld [vmem:[#allocation17 + $0x348] sm:$0xf] }
 0x47b   :  { %v4995_v48 = vor.u32 %v6061_v42, %v4992_v63  ;;  %v6137_v42 = vld [vmem:[#allocation17 + $0x26c] sm:$0xf]  ;;  %v5296_v63 = vld [vmem:[#allocation17 + $0x278] sm:$0xf0] }
 0x47c   :  { %3050 = vmatpush.bf16.msrb.mxu0 %v5343_v11  ;;  %v5299_v43 = vor.u32 %v6137_v42, %v5296_v63 }
 0x47e   :  { %3077 = vmatpush.bf16.msra.mxu1 %v5075_v56  ;;  %3042 = vmatpush.bf16.msrb.mxu3 %v5135_v44  ;;  %v6127_v56 = vld [vmem:[#allocation17 + $0x214] sm:$0xf0]  ;;  %v5360_v44 = vld [vmem:[#allocation17 + $0x2f8] sm:$0xf0] }
 0x47f   :  { %v5247_v3 = vor.u32 %v6127_v56, %v5246_v7  ;;  %v5363_v10 = vor.u32 %v6153_v1, %v5360_v44  ;;  %v5264_v7 = vld [vmem:[#allocation17 + $0x238] sm:$0xf0]  ;;  %v5251_v44 = vor.u32 %v6125_v58, %v5248_v14 }
 0x480   :  { %3051 = vmatpush.bf16.msrb.mxu0 %v5327_v12  ;;  %v5470_v12 = vld [vmem:[#allocation17 + $0x3c8] sm:$0xf]  ;;  %v5488_v1 = vld [vmem:[#allocation17 + $0x3f8] sm:$0xf0] }
 0x481   :  { %v5471_v18 = vor.u32 %v6183_v13, %v5470_v12  ;;  %v6177_v12 = vld [vmem:[#allocation17 + $0x3ac] sm:$0xf] }
 0x482   :  { %3078 = vmatpush.bf16.msra.mxu1 %v5059_v2  ;;  %3043 = vmatpush.bf16.msrb.mxu3 %v5119_v28 }
 0x484   :  { %3052 = vmatpush.bf16.msrb.mxu0 %v5311_v17 }
 0x485   :  { %3044 = vmatmul.bf16.vlgmr.msrb.gmra.mxu3 %v7094_v49 }
 0x486   :  { %3079 = vmatpush.bf16.msra.mxu1 %v5043_v34  ;;  %3088 = vmatpush.bf16.msra.mxu3 %v5235_v16  ;;  %v6149_v34 = vld [vmem:[#allocation17 + $0x2cc] sm:$0xf]  ;;  %v5344_v16 = vld [vmem:[#allocation17 + $0x2d8] sm:$0xf0] }
 0x487   :  { %v2094_v32 = vpop.f32.mrf.mxu1  ;;  %3005 = vmatmul.bf16.vlgmr.msra.gmra.mxu0 %v7099_v50  ;;  %v5347_v20 = vor.u32 %v6149_v34, %v5344_v16  ;;  %v6169_v34 = vld [vmem:[#allocation17 + $0x36c] sm:$0xf]  ;;  %v5424_v16 = vld [vmem:[#allocation17 + $0x378] sm:$0xf0] }
 0x488   :  { %3053 = vmatpush.bf16.msrb.mxu0 %v5295_v25  ;;  %v2095_v46 = vadd.f32 %v2094_v32, %v1284_v38  ;;  %v5328_v25 = vld [vmem:[#allocation17 + $0x2b8] sm:$0xf0]  ;;  %v6175_v32 = vld [vmem:[#allocation17 + $0x394] sm:$0xf0] }
 0x489   :  { %v2120_v39 = vpop.f32.mrf.mxu0  ;;  %v5312_v38 = vld [vmem:[#allocation17 + $0x298] sm:$0xf0] }
 0x48a   :  { %3080 = vmatpush.bf16.msra.mxu1 %v5027_v24  ;;  %3089 = vmatpush.bf16.msra.mxu3 %v5219_v26  ;;  %v6145_v24 = vld [vmem:[#allocation17 + $0x2ac] sm:$0xf]  ;;  %v5455_v26 = vor.u32 %v6179_v21, %v5454_v19  ;;  %v5392_v21 = vld [vmem:[#allocation17 + $0x338] sm:$0xf0] }
 0x48b   :  { %v5331_v31 = vor.u32 %v6145_v24, %v5328_v25 }
 0x48c   :  { %3054 = vmatpush.bf16.msrb.mxu0 %v5279_v40  ;;  %v5315_v40 = vor.u32 %v6141_v36, %v5312_v38 }
 0x48d   :  { %v2107_v47 = vpop.f32.mrf.mxu3 }
 0x48e   :  { %3081 = vmatpush.bf16.msra.mxu1 %v5011_v61  ;;  %v2108_v22 = vadd.f32 %v2107_v47, %v2095_v46  ;;  %3090 = vmatpush.bf16.msra.mxu3 %v5203_v62  ;;  %v5123_v61 = vor.u32 %v6093_v33, %v5120_v35  ;;  %v5422_v62 = vld [vmem:[#allocation17 + $0x368] sm:$0xf]  ;;  %v6167_v46 = vld [vmem:[#allocation17 + $0x354] sm:$0xf0]  ;;  %v6133_v47 = vld [vmem:[#allocation17 + $0x24c] sm:$0xf] }
 0x48f   :  { %v2133_v51 = vpop.f32.mrf.mxu2  ;;  %v2096_v55 = vpop.f32.mrf.mxu1  ;;  %v5423_v0 = vor.u32 %v6171_v41, %v5422_v62 }
 0x490   :  { %v2121_v57 = vadd.f32 %v2120_v39, %v2108_v22  ;;  %3055 = vmatpush.bf16.msrb.mxu0 %v5263_v53  ;;  %v5439_v39 = vor.u32 %v6175_v32, %v5438_v30  ;;  %v5407_v22 = vor.u32 %v6167_v46, %v5406_v45  ;;  %v5390_v53 = vld [vmem:[#allocation17 + $0x328] sm:$0xf]  ;;  %v6129_v55 = vld [vmem:[#allocation17 + $0x22c] sm:$0xf] }
 0x491   :  { %v2122_v11 = vpop.f32.mrf.mxu0  ;;  %v5267_v8 = vor.u32 %v6129_v55, %v5264_v7 }
 0x492   :  { %3082 = vmatpush.bf16.msra.mxu1 %v4995_v48  ;;  %v2134_v2 = vadd.f32 %v2133_v51, %v2121_v57  ;;  %3091 = vmatpush.bf16.msra.mxu3 %v5187_v54  ;;  %v5280_v48 = vld [vmem:[#allocation17 + $0x258] sm:$0xf0]  ;;  %v6163_v54 = vld [vmem:[#allocation17 + $0x334] sm:$0xf0]  ;;  %v5374_v57 = vld [vmem:[#allocation17 + $0x308] sm:$0xf] }
 0x493   :  { %v5283_v51 = vor.u32 %v6133_v47, %v5280_v48  ;;  %v5391_v56 = vor.u32 %v6163_v54, %v5390_v53  ;;  %v6159_v11 = vld [vmem:[#allocation17 + $0x314] sm:$0xf0] }
 0x494   :  { %v7107_v9 = vpack.c.bf16 %v2134_v2, %v2134_v2  ;;  %3056 = vmatpush.bf16.msrb.mxu0 %v5247_v3  ;;  %v5491_v2 = vor.u32 %v6185_v59, %v5488_v1  ;;  %v6181_v3 = vld [vmem:[#allocation17 + $0x3cc] sm:$0xf] }
 0x495   :  { %3083 = vmatmul.bf16.vlgmr.msra.gmra.mxu1 %v7090_v60  ;;  %v2109_v28 = vpop.f32.mrf.mxu3  ;;  %v6097_v60 = vld [vmem:[#allocation17 + $0x12c] sm:$0xf] }
 0x496   :  { %2966 = vmatmul.bf16.vlgmr.msrb.gmra.mxu2 %v7107_v9  ;;  %3092 = vmatpush.bf16.msra.mxu3 %v5171_v5  ;;  %v5139_v29 = vor.u32 %v6097_v60, %v5136_v23  ;;  %v5443_v28 = vor.u32 %v6173_v15, %v5440_v27  ;;  %v6157_v23 = vld [vmem:[#allocation17 + $0x30c] sm:$0xf] }
 0x497   :  { %v2135_v17 = vpop.f32.mrf.mxu2  ;;  %3062 = vmatpush.bf16.msrb.mxu2 %v5487_v4  ;;  %3057 = vmatmul.bf16.vlgmr.msrb.gmra.mxu0 %v7099_v50  ;;  %v5472_v4 = vld [vmem:[#allocation17 + $0x3d8] sm:$0xf0] }
 0x498   :  { %3101 = vmatpush.bf16.msra.mxu0 %v5363_v10  ;;  %v5475_v5 = vor.u32 %v6181_v3, %v5472_v4  ;;  %v5456_v10 = vld [vmem:[#allocation17 + $0x3b8] sm:$0xf0]  ;;  %v5427_v17 = vor.u32 %v6169_v34, %v5424_v16 }
 0x499   :  { %v5459_v13 = vor.u32 %v6177_v12, %v5456_v10 }
 0x49a   :  { %3093 = vmatpush.bf16.msra.mxu3 %v5155_v37  ;;  %v5408_v37 = vld [vmem:[#allocation17 + $0x358] sm:$0xf0] }
 0x49b   :  { %3063 = vmatpush.bf16.msrb.mxu2 %v5471_v18  ;;  %v6165_v18 = vld [vmem:[#allocation17 + $0x34c] sm:$0xf] }
 0x49c   :  { %3102 = vmatpush.bf16.msra.mxu0 %v5347_v20  ;;  %v5411_v19 = vor.u32 %v6165_v18, %v5408_v37  ;;  %v6161_v20 = vld [vmem:[#allocation17 + $0x32c] sm:$0xf] }
 0x49d   :  { %v5395_v60 = vor.u32 %v6161_v20, %v5392_v21  ;;  %v5550_v20 = vld [vmem:[#allocation22 + $0x70] sm:$0xf]  ;;  %v6203_v21 = vld [vmem:[#allocation22 + $0x74] sm:$0xf0] }
 0x49e   :  { %3094 = vmatpush.bf16.msra.mxu3 %v5139_v29  ;;  %v2269_v29 = vld [vmem:[#allocation19] sm:$0xf] }
 0x49f   :  { %3064 = vmatpush.bf16.msrb.mxu2 %v5455_v26  ;;  %v2273_v45 = vperm.slane %v2269_v29, 2  ;;  %v2274_v4 = vperm.slane %v2269_v29, 3 }
 0x4a0   :  { %3103 = vmatpush.bf16.msra.mxu0 %v5331_v31  ;;  %v2271_v31 = vperm.slane %v2269_v29, 0 }
 0x4a2   :  { %3095 = vmatpush.bf16.msra.mxu3 %v5123_v61  ;;  %v2272_v61 = vperm.slane %v2269_v29, 1 }
 0x4a3   :  { %3065 = vmatpush.bf16.msrb.mxu2 %v5439_v39 }
 0x4a4   :  { %3104 = vmatpush.bf16.msra.mxu0 %v5315_v40 }
 0x4a5   :  { %3096 = vmatmul.bf16.vlgmr.msra.gmra.mxu3 %v7094_v49  ;;  %v5375_v49 = vor.u32 %v6159_v11, %v5374_v57 }
 0x4a6   :  { %3018 = vmatmul.bf16.vlgmr.msra.gmra.mxu2 %v7107_v9 }
 0x4a7   :  { %3066 = vmatpush.bf16.msrb.mxu2 %v5423_v0 }
 0x4a8   :  { %3105 = vmatpush.bf16.msra.mxu0 %v5299_v43 }
 0x4ab   :  { %3067 = vmatpush.bf16.msrb.mxu2 %v5407_v22 }
 0x4ac   :  { %3106 = vmatpush.bf16.msra.mxu0 %v5283_v51 }
 0x4af   :  { %3068 = vmatpush.bf16.msrb.mxu2 %v5391_v56 }
 0x4b0   :  { %3107 = vmatpush.bf16.msra.mxu0 %v5267_v8 }
 0x4b3   :  { %3069 = vmatpush.bf16.msrb.mxu2 %v5375_v49 }
 0x4b4   :  { %3108 = vmatpush.bf16.msra.mxu0 %v5251_v44 }
 0x4b6   :  { %3070 = vmatmul.bf16.vlgmr.msrb.gmra.mxu2 %v7107_v9 }
 0x4b7   :  { %3114 = vmatpush.bf16.msra.mxu2 %v5491_v2  ;;  %3109 = vmatmul.bf16.vlgmr.msra.gmra.mxu0 %v7099_v50  ;;  %v5376_v50 = vld [vmem:[#allocation17 + $0x318] sm:$0xf0] }
 0x4b8   :  { %v5379_v24 = vor.u32 %v6157_v23, %v5376_v50  ;;  %v5551_v23 = vor.u32 %v6203_v21, %v5550_v20  ;;  %v6219_v50 = vld [vmem:[#allocation22 + $0xf4] sm:$0xf0]  ;;  %v5582_v21 = vld [vmem:[#allocation22 + $0xb0] sm:$0xf] }
 0x4b9   :  { %v6195_v20 = vld [vmem:[#allocation22 + $0x34] sm:$0xf0] }
 0x4ba   :  { %3588 = vmatpush.bf16.msrb.mxu1 %v5551_v23  ;;  %v6211_v23 = vld [vmem:[#allocation22 + $0xb4] sm:$0xf0] }
 0x4bb   :  { %3115 = vmatpush.bf16.msra.mxu2 %v5475_v5 }
 0x4bf   :  { %3116 = vmatpush.bf16.msra.mxu2 %v5459_v13 }
 0x4c3   :  { %3117 = vmatpush.bf16.msra.mxu2 %v5443_v28 }
 0x4c7   :  { %3118 = vmatpush.bf16.msra.mxu2 %v5427_v17 }
 0x4cb   :  { %3119 = vmatpush.bf16.msra.mxu2 %v5411_v19 }
 0x4cf   :  { %3120 = vmatpush.bf16.msra.mxu2 %v5395_v60  ;;  %v5614_v60 = vld [vmem:[#allocation22 + $0xf0] sm:$0xf] }
 0x4d2   :  { %v2928_v25 = vpop.f32.mrf.mxu1 }
 0x4d3   :  { %3121 = vmatpush.bf16.msra.mxu2 %v5379_v24  ;;  %v2929_v32 = vadd.f32 %v2928_v25, %v2271_v31  ;;  %v5678_v24 = vld [vmem:[#allocation22 + $0x170] sm:$0xf]  ;;  %v6235_v25 = vld [vmem:[#allocation22 + $0x174] sm:$0xf0] }
 0x4d4   :  { %v5679_v29 = vor.u32 %v6235_v25, %v5678_v24  ;;  %v6251_v31 = vld [vmem:[#allocation22 + $0x1f4] sm:$0xf0]  ;;  %v5583_v25 = vor.u32 %v6211_v23, %v5582_v21  ;;  %v5544_v21 = vld [vmem:[#allocation22 + $0x68] sm:$0xf0] }
 0x4d5   :  { %v6227_v24 = vld [vmem:[#allocation22 + $0x134] sm:$0xf0] }
 0x4d6   :  { %3122 = vmatmul.bf16.vlgmr.msra.gmra.mxu2 %v7107_v9  ;;  %3614 = vmatpush.bf16.msrb.mxu0 %v5679_v29  ;;  %v5710_v29 = vld [vmem:[#allocation22 + $0x1b0] sm:$0xf] }
 0x4da   :  { %v2930_v26 = vpop.f32.mrf.mxu1 }
 0x4db   :  { %v5615_v26 = vor.u32 %v6219_v50, %v5614_v60  ;;  %v5646_v50 = vld [vmem:[#allocation22 + $0x130] sm:$0xf] }
 0x4dd   :  { %3601 = vmatpush.bf16.msrb.mxu3 %v5615_v26  ;;  %v5647_v26 = vor.u32 %v6227_v24, %v5646_v50  ;;  %v6216_v50 = vld [vmem:[#allocation22 + $0xe4] sm:$0xf]  ;;  %v5608_v24 = vld [vmem:[#allocation22 + $0xe8] sm:$0xf0] }
 0x4e2   :  { %v2980_v30 = vpop.f32.mrf.mxu1 }
 0x4e3   :  { %v2981_v41 = vadd.f32 %v2980_v30, %v2272_v61  ;;  %v5742_v30 = vld [vmem:[#allocation22 + $0x1f0] sm:$0xf] }
 0x4e8   :  { %v2941_v33 = vpop.f32.mrf.mxu3 }
 0x4e9   :  { %v2942_v35 = vadd.f32 %v2941_v33, %v2929_v32  ;;  %v5542_v32 = vld [vmem:[#allocation22 + $0x60] sm:$0xf]  ;;  %v5743_v33 = vor.u32 %v6251_v31, %v5742_v30  ;;  %v6243_v30 = vld [vmem:[#allocation22 + $0x1b4] sm:$0xf0] }
 0x4ea   :  { %v2982_v36 = vpop.f32.mrf.mxu1  ;;  %v5711_v31 = vor.u32 %v6243_v30, %v5710_v29  ;;  %v5672_v29 = vld [vmem:[#allocation22 + $0x168] sm:$0xf0]  ;;  %v6248_v30 = vld [vmem:[#allocation22 + $0x1e4] sm:$0xf] }
 0x4eb   :  { %v5606_v36 = vld [vmem:[#allocation22 + $0xe0] sm:$0xf]  ;;  %3627 = vmatpush.bf16.msrb.mxu2 %v5743_v33  ;;  %v6193_v33 = vld [vmem:[#allocation22 + $0x24] sm:$0xf0] }
 0x4f0   :  { %v2943_v38 = vpop.f32.mrf.mxu3 }
 0x4f1   :  { %v6217_v38 = vld [vmem:[#allocation22 + $0xe4] sm:$0xf0] }
 0x4f2   :  { %v3032_v39 = vpop.f32.mrf.mxu1  ;;  %v5607_v61 = vor.u32 %v6217_v38, %v5606_v36  ;;  %v6209_v38 = vld [vmem:[#allocation22 + $0xa4] sm:$0xf0] }
 0x4f3   :  { %v3033_v48 = vadd.f32 %v3032_v39, %v2273_v45  ;;  %v5598_v45 = vld [vmem:[#allocation22 + $0xd0] sm:$0xf] }
 0x4f4   :  { %v2954_v40 = vpop.f32.mrf.mxu0  ;;  %3602 = vmatpush.bf16.msrb.mxu3 %v5607_v61  ;;  %v6225_v61 = vld [vmem:[#allocation22 + $0x124] sm:$0xf0] }
 0x4f5   :  { %v2955_v62 = vadd.f32 %v2954_v40, %v2942_v35  ;;  %v6201_v35 = vld [vmem:[#allocation22 + $0x64] sm:$0xf0]  ;;  %v5670_v40 = vld [vmem:[#allocation22 + $0x160] sm:$0xf] }
 0x4f6   :  { %v5543_v39 = vor.u32 %v6201_v35, %v5542_v32  ;;  %v5510_v32 = vld [vmem:[#allocation22 + $0x20] sm:$0xf] }
 0x4f7   :  { %v5574_v35 = vld [vmem:[#allocation22 + $0xa0] sm:$0xf]  ;;  %v5511_v36 = vor.u32 %v6193_v33, %v5510_v32 }
 0x4f8   :  { %v2993_v42 = vpop.f32.mrf.mxu3  ;;  %3589 = vmatpush.bf16.msrb.mxu1 %v5543_v39  ;;  %v5638_v39 = vld [vmem:[#allocation22 + $0x120] sm:$0xf] }
 0x4f9   :  { %v2994_v63 = vadd.f32 %v2993_v42, %v2981_v41  ;;  %v5734_v41 = vld [vmem:[#allocation22 + $0x1e0] sm:$0xf] }
 0x4fa   :  { %v3034_v0 = vpop.f32.mrf.mxu1 }
 0x4fb   :  { %v5534_v0 = vld [vmem:[#allocation22 + $0x50] sm:$0xf] }
 0x4fc   :  { %v2956_v43 = vpop.f32.mrf.mxu0 }
 0x4fd   :  { %v6199_v43 = vld [vmem:[#allocation22 + $0x54] sm:$0xf0] }
 0x500   :  { %v2995_v9 = vpop.f32.mrf.mxu3 }
 0x504   :  { %v3006_v46 = vpop.f32.mrf.mxu0 }
 0x505   :  { %v3007_v47 = vadd.f32 %v3006_v46, %v2994_v63  ;;  %v6249_v63 = vld [vmem:[#allocation22 + $0x1e4] sm:$0xf0]  ;;  %v6215_v46 = vld [vmem:[#allocation22 + $0xd4] sm:$0xf0] }
 0x506   :  { %v5735_v9 = vor.u32 %v6249_v63, %v5734_v41  ;;  %v5702_v41 = vld [vmem:[#allocation22 + $0x1a0] sm:$0xf] }
 0x508   :  { %v3045_v22 = vpop.f32.mrf.mxu3  ;;  %3628 = vmatpush.bf16.msrb.mxu2 %v5735_v9  ;;  %v5566_v9 = vld [vmem:[#allocation22 + $0x90] sm:$0xf] }
 0x509   :  { %v3046_v51 = vadd.f32 %v3045_v22, %v3033_v48  ;;  %v5535_v48 = vor.u32 %v6199_v43, %v5534_v0  ;;  %v6231_v22 = vld [vmem:[#allocation22 + $0x154] sm:$0xf0]  ;;  %v5502_v0 = vld [vmem:[#allocation22 + $0x10] sm:$0xf] }
 0x50a   :  { %v6191_v43 = vld [vmem:[#allocation22 + $0x14] sm:$0xf0] }
 0x50b   :  { %3590 = vmatpush.bf16.msrb.mxu1 %v5535_v48  ;;  %v6223_v48 = vld [vmem:[#allocation22 + $0x114] sm:$0xf0] }
 0x50c   :  { %v3008_v53 = vpop.f32.mrf.mxu0 }
 0x50d   :  { %v6247_v53 = vld [vmem:[#allocation22 + $0x1d4] sm:$0xf0] }
 0x510   :  { %v3047_v55 = vpop.f32.mrf.mxu3 }
 0x512   :  { %v3084_v54 = vpop.f32.mrf.mxu1 }
 0x513   :  { %v3085_v5 = vadd.f32 %v3084_v54, %v2274_v4  ;;  %v5599_v54 = vor.u32 %v6215_v46, %v5598_v45  ;;  %v5503_v45 = vor.u32 %v6191_v43, %v5502_v0  ;;  %v6207_v46 = vld [vmem:[#allocation22 + $0x94] sm:$0xf0]  ;;  %v6196_v0 = vld [vmem:[#allocation22 + $0x44] sm:$0xf] }
 0x514   :  { %v3058_v7 = vpop.f32.mrf.mxu0 }
 0x515   :  { %v3059_v12 = vadd.f32 %v3058_v7, %v3046_v51  ;;  %v5726_v51 = vld [vmem:[#allocation22 + $0x1d0] sm:$0xf]  ;;  %3603 = vmatpush.bf16.msrb.mxu3 %v5599_v54  ;;  %v6239_v54 = vld [vmem:[#allocation22 + $0x194] sm:$0xf0] }
 0x516   :  { %v5727_v7 = vor.u32 %v6247_v53, %v5726_v51  ;;  %v5694_v53 = vld [vmem:[#allocation22 + $0x190] sm:$0xf] }
 0x518   :  { %3629 = vmatpush.bf16.msrb.mxu2 %v5727_v7  ;;  %v5494_v7 = vld [vmem:[#allocation22] sm:$0xf] }
 0x519   :  { %v2967_v56 = vpop.f32.mrf.mxu2 }
 0x51a   :  { %v3086_v8 = vpop.f32.mrf.mxu1  ;;  %v2968_v13 = vadd.f32 %v2967_v56, %v2955_v62  ;;  %v6233_v62 = vld [vmem:[#allocation22 + $0x164] sm:$0xf0] }
 0x51b   :  { %v5671_v42 = vor.u32 %v6233_v62, %v5670_v40  ;;  %v5575_v40 = vor.u32 %v6209_v38, %v5574_v35  ;;  %v5639_v62 = vor.u32 %v6225_v61, %v5638_v39  ;;  %v6198_v35 = vld [vmem:[#allocation22 + $0x54] sm:$0xf]  ;;  %v5600_v39 = vld [vmem:[#allocation22 + $0xd8] sm:$0xf0] }
 0x51c   :  { %v3060_v57 = vpop.f32.mrf.mxu0  ;;  %v6214_v38 = vld [vmem:[#allocation22 + $0xd4] sm:$0xf] }
 0x51d   :  { %3615 = vmatpush.bf16.msrb.mxu0 %v5671_v42  ;;  %v6241_v42 = vld [vmem:[#allocation22 + $0x1a4] sm:$0xf0]  ;;  %v6230_v61 = vld [vmem:[#allocation22 + $0x154] sm:$0xf] }
 0x51e   :  { %v5703_v63 = vor.u32 %v6241_v42, %v5702_v41  ;;  %v5603_v41 = vor.u32 %v6214_v38, %v5600_v39  ;;  %v6246_v42 = vld [vmem:[#allocation22 + $0x1d4] sm:$0xf]  ;;  %v6188_v38 = vld [vmem:[#allocation22 + $0x4] sm:$0xf] }
 0x521   :  { %v2969_v11 = vpop.f32.mrf.mxu2 }
 0x528   :  { %v3097_v14 = vpop.f32.mrf.mxu3 }
 0x529   :  { %v3019_v58 = vpop.f32.mrf.mxu2  ;;  %v3098_v15 = vadd.f32 %v3097_v14, %v3085_v5  ;;  %v5526_v5 = vld [vmem:[#allocation22 + $0x40] sm:$0xf] }
 0x52a   :  { %v7117_v10 = vadd.f32 %v3019_v58, %v3007_v47  ;;  %v5662_v47 = vld [vmem:[#allocation22 + $0x150] sm:$0xf] }
 0x52b   :  { %v5663_v55 = vor.u32 %v6231_v22, %v5662_v47  ;;  %v5630_v47 = vld [vmem:[#allocation22 + $0x110] sm:$0xf]  ;;  %v5567_v22 = vor.u32 %v6207_v46, %v5566_v9  ;;  %v5528_v9 = vld [vmem:[#allocation22 + $0x48] sm:$0xf0] }
 0x52c   :  { %v3127_v28 = vadd.f32 %v7117_v10, %v2968_v13  ;;  %v5631_v51 = vor.u32 %v6223_v48, %v5630_v47  ;;  %v5592_v46 = vld [vmem:[#allocation22 + $0xc8] sm:$0xf0]  ;;  %v6228_v48 = vld [vmem:[#allocation22 + $0x144] sm:$0xf] }
 0x52d   :  { %3616 = vmatpush.bf16.msrb.mxu0 %v5663_v55  ;;  %v5695_v55 = vor.u32 %v6239_v54, %v5694_v53  ;;  %v5720_v53 = vld [vmem:[#allocation22 + $0x1c8] sm:$0xf0]  ;;  %v5531_v54 = vor.u32 %v6196_v0, %v5528_v9 }
 0x52e   :  { %v5688_v9 = vld [vmem:[#allocation22 + $0x188] sm:$0xf0] }
 0x530   :  { %v3099_v1 = vpop.f32.mrf.mxu3 }
 0x531   :  { %v3021_v59 = vpop.f32.mrf.mxu2 }
 0x534   :  { %v3110_v49 = vpop.f32.mrf.mxu0 }
 0x535   :  { %v3111_v34 = vadd.f32 %v3110_v49, %v3098_v15  ;;  %v6213_v15 = vld [vmem:[#allocation22 + $0xc4] sm:$0xf0] }
 0x539   :  { %v3071_v44 = vpop.f32.mrf.mxu2 }
 0x53a   :  { %v3072_v27 = vadd.f32 %v3071_v44, %v3059_v12  ;;  %v6197_v12 = vld [vmem:[#allocation22 + $0x44] sm:$0xf0] }
 0x53c   :  { %v3112_v2 = vpop.f32.mrf.mxu0  ;;  %v3128_v18 = vadd.f32 %v3127_v28, %v3072_v27  ;;  %v6229_v28 = vld [vmem:[#allocation22 + $0x144] sm:$0xf0] }
 0x541   :  { %v3073_v3 = vpop.f32.mrf.mxu2 }
 0x559   :  { %v3123_v16 = vpop.f32.mrf.mxu2 }
 0x55a   :  { %v3124_v17 = vadd.f32 %v3123_v16, %v3111_v34 }
 0x55c   :  { %v3129_v37 = vadd.f32 %v3128_v18, %v3124_v17  ;;  %v6245_v18 = vld [vmem:[#allocation22 + $0x1c4] sm:$0xf0] }
 0x55e   :  { %3130 = vadd.xlane.f32.xlu2 %v3129_v37 }
 0x561   :  { %v3125_v19 = vpop.f32.mrf.mxu2 }
 0x562   :  { %v5518_v19 = vld [vmem:[#allocation22 + $0x30] sm:$0xf] }
 0x563   :  { %v5519_v60 = vor.u32 %v6195_v20, %v5518_v19  ;;  %v5744_v19 = vld [vmem:[#allocation22 + $0x1f8] sm:$0xf0]  ;;  %v6200_v20 = vld [vmem:[#allocation22 + $0x64] sm:$0xf] }
 0x564   :  { %v5547_v23 = vor.u32 %v6200_v20, %v5544_v21 }
 0x5d1   :  { %v3131_v56 = vpop.xlane.xlu2 %3130 }
 0x5d2   :  { %v3132_v8 = vmul.f32 %v3131_v56, %v7032_v52  ;;  %v6189_v56 = vld [vmem:[#allocation22 + $0x4] sm:$0xf0] }
 0x5d4   :  { %v7121_v57 = vsub.f32 %v2968_v13, %v3132_v8  ;;  %v7124_v11 = vsub.f32 %v7117_v10, %v3132_v8  ;;  %v7126_v58 = vsub.f32 %v3072_v27, %v3132_v8  ;;  %v7128_v14 = vsub.f32 %v3124_v17, %v3132_v8  ;;  %v5590_v10 = vld [vmem:[#allocation22 + $0xc0] sm:$0xf] }
 0x5d5   :  { %v5527_v13 = vor.u32 %v6197_v12, %v5526_v5  ;;  %v5654_v27 = vld [vmem:[#allocation22 + $0x140] sm:$0xf]  ;;  %v5591_v34 = vor.u32 %v6213_v15, %v5590_v10  ;;  %v6237_v5 = vld [vmem:[#allocation22 + $0x184] sm:$0xf0]  ;;  %v6202_v12 = vld [vmem:[#allocation22 + $0x74] sm:$0xf] }
 0x5d6   :  { %v3137_v59 = vmul.f32 %v7121_v57, %v7121_v57  ;;  %v3138_v1 = vmul.f32 %v7124_v11, %v7124_v11  ;;  %v3139_v49 = vmul.f32 %v7126_v58, %v7126_v58  ;;  %v3140_v2 = vmul.f32 %v7128_v14, %v7128_v14  ;;  %v5718_v17 = vld [vmem:[#allocation22 + $0x1c0] sm:$0xf]  ;;  %v6218_v15 = vld [vmem:[#allocation22 + $0xf4] sm:$0xf] }
 0x5d7   :  { %v5655_v16 = vor.u32 %v6229_v28, %v5654_v27  ;;  %3591 = vmatpush.bf16.msrb.mxu1 %v5527_v13  ;;  %v5719_v37 = vor.u32 %v6245_v18, %v5718_v17  ;;  %3604 = vmatpush.bf16.msrb.mxu3 %v5591_v34  ;;  %v5558_v8 = vld [vmem:[#allocation22 + $0x80] sm:$0xf]  ;;  %v5552_v13 = vld [vmem:[#allocation22 + $0x78] sm:$0xf0]  ;;  %v6250_v18 = vld [vmem:[#allocation22 + $0x1f4] sm:$0xf] }
 0x5d8   :  { %v3141_v44 = vadd.f32 %v3138_v1, %v3137_v59  ;;  %v5495_v59 = vor.u32 %v6189_v56, %v5494_v7  ;;  %v6205_v1 = vld [vmem:[#allocation22 + $0x84] sm:$0xf0]  ;;  %v5616_v27 = vld [vmem:[#allocation22 + $0xf8] sm:$0xf0]  ;;  %v5555_v28 = vor.u32 %v6202_v12, %v5552_v13  ;;  %v6242_v13 = vld [vmem:[#allocation22 + $0x1b4] sm:$0xf] }
 0x5d9   :  { %3617 = vmatpush.bf16.msrb.mxu0 %v5655_v16  ;;  %3630 = vmatpush.bf16.msrb.mxu2 %v5719_v37  ;;  %v5619_v34 = vor.u32 %v6218_v15, %v5616_v27  ;;  %v6234_v16 = vld [vmem:[#allocation22 + $0x174] sm:$0xf]  ;;  %v5680_v17 = vld [vmem:[#allocation22 + $0x178] sm:$0xf0]  ;;  %v6192_v27 = vld [vmem:[#allocation22 + $0x24] sm:$0xf] }
 0x5da   :  { %v3142_v3 = vadd.f32 %v3141_v44, %v3139_v49  ;;  %v5622_v49 = vld [vmem:[#allocation22 + $0x100] sm:$0xf]  ;;  %v6221_v44 = vld [vmem:[#allocation22 + $0x104] sm:$0xf0]  ;;  %v5683_v37 = vor.u32 %v6234_v16, %v5680_v17  ;;  %v5712_v15 = vld [vmem:[#allocation22 + $0x1b8] sm:$0xf0] }
 0x5db   :  { %3592 = vmatpush.bf16.msrb.mxu1 %v5519_v60  ;;  %3605 = vmatpush.bf16.msrb.mxu3 %v5583_v25  ;;  %v5747_v60 = vor.u32 %v6250_v18, %v5744_v19  ;;  %v6232_v25 = vld [vmem:[#allocation22 + $0x164] sm:$0xf]  ;;  %v5512_v16 = vld [vmem:[#allocation22 + $0x28] sm:$0xf0] }
 0x5dc   :  { %v3143_v4 = vadd.f32 %v3142_v3, %v3140_v2  ;;  %v5559_v2 = vor.u32 %v6205_v1, %v5558_v8  ;;  %v5623_v3 = vor.u32 %v6221_v44, %v5622_v49  ;;  %v5675_v32 = vor.u32 %v6232_v25, %v5672_v29  ;;  %v5520_v1 = vld [vmem:[#allocation22 + $0x38] sm:$0xf0]  ;;  %v6210_v49 = vld [vmem:[#allocation22 + $0xb4] sm:$0xf]  ;;  %v6208_v17 = vld [vmem:[#allocation22 + $0xa4] sm:$0xf] }
 0x5dd   :  { %3618 = vmatpush.bf16.msrb.mxu0 %v5647_v26  ;;  %3631 = vmatpush.bf16.msrb.mxu2 %v5711_v31  ;;  %v5611_v26 = vor.u32 %v6216_v50, %v5608_v24  ;;  %v5736_v31 = vld [vmem:[#allocation22 + $0x1e8] sm:$0xf0]  ;;  %v5515_v18 = vor.u32 %v6192_v27, %v5512_v16  ;;  %v6190_v50 = vld [vmem:[#allocation22 + $0x14] sm:$0xf]  ;;  %v5504_v25 = vld [vmem:[#allocation22 + $0x18] sm:$0xf0] }
 0x5de   :  { %3144 = vadd.xlane.f32.xlu2 %v3143_v4  ;;  %v5686_v4 = vld [vmem:[#allocation22 + $0x180] sm:$0xf]  ;;  %v5739_v33 = vor.u32 %v6248_v30, %v5736_v31  ;;  %v5640_v19 = vld [vmem:[#allocation22 + $0x128] sm:$0xf0]  ;;  %v5568_v29 = vld [vmem:[#allocation22 + $0x98] sm:$0xf0] }
 0x5df   :  { %3593 = vmatpush.bf16.msrb.mxu1 %v5511_v36  ;;  %3606 = vmatpush.bf16.msrb.mxu3 %v5575_v40  ;;  %v5687_v10 = vor.u32 %v6237_v5, %v5686_v4  ;;  %v5536_v36 = vld [vmem:[#allocation22 + $0x58] sm:$0xf0]  ;;  %v6226_v4 = vld [vmem:[#allocation22 + $0x134] sm:$0xf] }
 0x5e0   :  { %v5664_v40 = vld [vmem:[#allocation22 + $0x158] sm:$0xf0]  ;;  %v6222_v30 = vld [vmem:[#allocation22 + $0x114] sm:$0xf] }
 0x5e1   :  { %3619 = vmatpush.bf16.msrb.mxu0 %v5639_v62  ;;  %3632 = vmatpush.bf16.msrb.mxu2 %v5703_v63  ;;  %v5539_v62 = vor.u32 %v6198_v35, %v5536_v36  ;;  %v5728_v63 = vld [vmem:[#allocation22 + $0x1d8] sm:$0xf0]  ;;  %v5667_v43 = vor.u32 %v6230_v61, %v5664_v40  ;;  %v5496_v61 = vld [vmem:[#allocation22 + $0x8] sm:$0xf0]  ;;  %v6204_v40 = vld [vmem:[#allocation22 + $0x84] sm:$0xf] }
 0x5e2   :  { %v5731_v47 = vor.u32 %v6246_v42, %v5728_v63  ;;  %v5648_v5 = vld [vmem:[#allocation22 + $0x138] sm:$0xf0]  ;;  %v6220_v42 = vld [vmem:[#allocation22 + $0x104] sm:$0xf]  ;;  %v5624_v63 = vld [vmem:[#allocation22 + $0x108] sm:$0xf0] }
 0x5e3   :  { %3594 = vmatpush.bf16.msrb.mxu1 %v5503_v45  ;;  %3607 = vmatpush.bf16.msrb.mxu3 %v5567_v22  ;;  %v6212_v45 = vld [vmem:[#allocation22 + $0xc4] sm:$0xf]  ;;  %v5656_v22 = vld [vmem:[#allocation22 + $0x148] sm:$0xf0]  ;;  %v5632_v31 = vld [vmem:[#allocation22 + $0x118] sm:$0xf0] }
 0x5e4   :  { %v5659_v7 = vor.u32 %v6228_v48, %v5656_v22  ;;  %v5696_v36 = vld [vmem:[#allocation22 + $0x198] sm:$0xf0]  ;;  %v5635_v39 = vor.u32 %v6222_v30, %v5632_v31  ;;  %v5627_v48 = vor.u32 %v6220_v42, %v5624_v63  ;;  %v3262_v30 = vld [vmem:[%s7214_s16] sm:$0x3] }
 0x5e5   :  { %3620 = vmatpush.bf16.msrb.mxu0 %v5631_v51  ;;  %3633 = vmatpush.bf16.msrb.mxu2 %v5695_v55  ;;  %v6244_v51 = vld [vmem:[#allocation22 + $0x1c4] sm:$0xf]  ;;  %v5595_v55 = vor.u32 %v6212_v45, %v5592_v46  ;;  %v5499_v46 = vor.u32 %v6188_v38, %v5496_v61  ;;  %v3264_v31 = vperm.slane %v3262_v30, 0  ;;  %v3265_v38 = vperm.slane %v3262_v30, 1 }
 0x5e6   :  { %v5723_v56 = vor.u32 %v6244_v51, %v5720_v53 }
 0x5e7   :  { %3595 = vmatpush.bf16.msrb.mxu1 %v5495_v59  ;;  %3608 = vmatpush.bf16.msrb.mxu3 %v5559_v2  ;;  %v6194_v59 = vld [vmem:[#allocation22 + $0x34] sm:$0xf] }
 0x5e8   :  { %v5523_v2 = vor.u32 %v6194_v59, %v5520_v1 }
 0x5e9   :  { %3621 = vmatpush.bf16.msrb.mxu0 %v5623_v3  ;;  %3634 = vmatpush.bf16.msrb.mxu2 %v5687_v10  ;;  %v5584_v3 = vld [vmem:[#allocation22 + $0xb8] sm:$0xf0]  ;;  %v5651_v10 = vor.u32 %v6226_v4, %v5648_v5 }
 0x5ea   :  { %v5587_v12 = vor.u32 %v6210_v49, %v5584_v3 }
 0x5eb   :  { %3640 = vmatpush.bf16.msra.mxu1 %v5555_v28  ;;  %3653 = vmatpush.bf16.msra.mxu3 %v5619_v34  ;;  %v5715_v34 = vor.u32 %v6242_v13, %v5712_v15 }
 0x5ed   :  { %3666 = vmatpush.bf16.msra.mxu0 %v5683_v37  ;;  %3679 = vmatpush.bf16.msra.mxu2 %v5747_v60  ;;  %v6224_v37 = vld [vmem:[#allocation22 + $0x124] sm:$0xf] }
 0x5ee   :  { %v5643_v21 = vor.u32 %v6224_v37, %v5640_v19  ;;  %v6240_v60 = vld [vmem:[#allocation22 + $0x1a4] sm:$0xf] }
 0x5ef   :  { %3641 = vmatpush.bf16.msra.mxu1 %v5547_v23  ;;  %3654 = vmatpush.bf16.msra.mxu3 %v5611_v26  ;;  %v5704_v23 = vld [vmem:[#allocation22 + $0x1a8] sm:$0xf0]  ;;  %v6206_v26 = vld [vmem:[#allocation22 + $0x94] sm:$0xf] }
 0x5f0   :  { %v5707_v24 = vor.u32 %v6240_v60, %v5704_v23  ;;  %v5571_v35 = vor.u32 %v6206_v26, %v5568_v29 }
 0x5f1   :  { %3667 = vmatpush.bf16.msra.mxu0 %v5675_v32  ;;  %3680 = vmatpush.bf16.msra.mxu2 %v5739_v33  ;;  %v6238_v32 = vld [vmem:[#allocation22 + $0x194] sm:$0xf]  ;;  %v5507_v33 = vor.u32 %v6190_v50, %v5504_v25 }
 0x5f3   :  { %3642 = vmatpush.bf16.msra.mxu1 %v5539_v62  ;;  %3655 = vmatpush.bf16.msra.mxu3 %v5603_v41  ;;  %v5560_v62 = vld [vmem:[#allocation22 + $0x88] sm:$0xf0]  ;;  %v5699_v41 = vor.u32 %v6238_v32, %v5696_v36 }
 0x5f5   :  { %3668 = vmatpush.bf16.msra.mxu0 %v5667_v43  ;;  %3681 = vmatpush.bf16.msra.mxu2 %v5731_v47  ;;  %v6236_v43 = vld [vmem:[#allocation22 + $0x184] sm:$0xf]  ;;  %v5563_v47 = vor.u32 %v6204_v40, %v5560_v62 }
 0x5f6   :  { %v5691_v51 = vor.u32 %v6236_v43, %v5688_v9 }
 0x5f7   :  { %3643 = vmatpush.bf16.msra.mxu1 %v5531_v54  ;;  %3656 = vmatpush.bf16.msra.mxu3 %v5595_v55  ;;  %v3162_v54 = vld [vmem:[%s7211_s13] sm:$0xf] }
 0x5f8   :  { %v3165_v1 = vperm.slane %v3162_v54, 1  ;;  %v3166_v49 = vperm.slane %v3162_v54, 2 }
 0x5f9   :  { %3669 = vmatpush.bf16.msra.mxu0 %v5659_v7  ;;  %3682 = vmatpush.bf16.msra.mxu2 %v5723_v56  ;;  %v3176_v7 = vld [vmem:[#allocation20] sm:$0xf] }
 0x5fa   :  { %v3178_v59 = vperm.slane %v3176_v7, 0  ;;  %v3179_v3 = vperm.slane %v3176_v7, 1  ;;  %v3180_v4 = vperm.slane %v3176_v7, 2  ;;  %v3181_v5 = vperm.slane %v3176_v7, 3 }
 0x5fb   :  { %3644 = vmatpush.bf16.msra.mxu1 %v5523_v2  ;;  %3657 = vmatpush.bf16.msra.mxu3 %v5587_v12 }
 0x5fd   :  { %3670 = vmatpush.bf16.msra.mxu0 %v5651_v10  ;;  %3683 = vmatpush.bf16.msra.mxu2 %v5715_v34 }
 0x5ff   :  { %3645 = vmatpush.bf16.msra.mxu1 %v5515_v18 }
 0x601   :  { %3671 = vmatpush.bf16.msra.mxu0 %v5643_v21  ;;  %3684 = vmatpush.bf16.msra.mxu2 %v5707_v24 }
 0x603   :  { %3646 = vmatpush.bf16.msra.mxu1 %v5507_v33 }
 0x605   :  { %3672 = vmatpush.bf16.msra.mxu0 %v5635_v39  ;;  %3685 = vmatpush.bf16.msra.mxu2 %v5699_v41 }
 0x607   :  { %3647 = vmatpush.bf16.msra.mxu1 %v5499_v46 }
 0x609   :  { %3673 = vmatpush.bf16.msra.mxu0 %v5627_v48  ;;  %3686 = vmatpush.bf16.msra.mxu2 %v5691_v51 }
 0x651   :  { %v3145_v8 = vpop.xlane.xlu2 %3144 }
 0x652   :  { %v3146_v44 = vmul.f32 %v3145_v8, %v7032_v52  ;;  %v5576_v52 = vld [vmem:[#allocation22 + $0xa8] sm:$0xf0]  ;;  %v3164_v8 = vperm.slane %v3162_v54, 0 }
 0x653   :  { %v5579_v20 = vor.u32 %v6208_v17, %v5576_v52 }
 0x654   :  { %v7139_v28 = vadd.f32 1e-05, %v3146_v44  ;;  %v3167_v44 = vperm.slane %v3162_v54, 3 }
 0x655   :  { %3658 = vmatpush.bf16.msra.mxu3 %v5579_v20 }
 0x656   :  { %6314 = vrsqrt.f32 %v7139_v28  ;;  %vm3154_vm10 = vweird.f32 %v7139_v28 }
 0x659   :  { %3659 = vmatpush.bf16.msra.mxu3 %v5571_v35 }
 0x65c   :  { %v6315_v0 = vpop.eup %6314 }
 0x65d   :  { %v3149_v45 = vmul.f32 %v6315_v0, %v7139_v28  ;;  %3660 = vmatpush.bf16.msra.mxu3 %v5563_v47  ;;  %vm3155_vm9 = vweird.f32 %v6315_v0 }
 0x65e   :  { %vm3156_vm11 = vmor %vm3154_vm10, %vm3155_vm9 }
 0x65f   :  { %v3150_v22 = vmul.f32 %v6315_v0, %v3149_v45 }
 0x661   :  { %v3151_v53 = vmul.f32 0.5, %v3150_v22 }
 0x663   :  { %v3152_v55 = vsub.f32 1.5, %v3151_v53 }
 0x665   :  { %v3153_v56 = vmul.f32 %v6315_v0, %v3152_v55 }
 0x667   :  { %v3157_v2 = vsel %vm3156_vm11, %v6315_v0, %v3153_v56 }
 0x668   :  { %v3158_v12 = vmul.f32 %v3157_v2, %v7121_v57  ;;  %v3159_v10 = vmul.f32 %v3157_v2, %v7124_v11  ;;  %v3160_v13 = vmul.f32 %v3157_v2, %v7126_v58  ;;  %v3161_v15 = vmul.f32 %v3157_v2, %v7128_v14  ;;  %v6257_v2 = vld [vmem:[#allocation25 + $0x28] sm:$0xff] }
 0x66a   :  { %v3172_v27 = vmul.f32 %v3164_v8, %v3158_v12  ;;  %v3173_v28 = vmul.f32 %v3165_v1, %v3159_v10  ;;  %v3174_v34 = vmul.f32 %v3166_v49, %v3160_v13  ;;  %v3175_v16 = vmul.f32 %v3167_v44, %v3161_v15  ;;  %v6267_v1 = vld [vmem:[#allocation25 + $0x78] sm:$0xff]  ;;  %v6258_v49 = vld [vmem:[#allocation25 + $0x30] sm:$0xff] }
 0x66b   :  { %v6266_v44 = vld [vmem:[#allocation25 + $0x70] sm:$0xff]  ;;  %v6255_v12 = vld [vmem:[#allocation25 + $0x18] sm:$0xff] }
 0x66c   :  { %v3186_v17 = vadd.f32 %v3178_v59, %v3172_v27  ;;  %v3187_v18 = vadd.f32 %v3179_v3, %v3173_v28  ;;  %v3188_v52 = vadd.f32 %v3180_v4, %v3174_v34  ;;  %v3189_v37 = vadd.f32 %v3181_v5, %v3175_v16  ;;  %v6259_v59 = vld [vmem:[#allocation25 + $0x38] sm:$0xff]  ;;  %v6265_v3 = vld [vmem:[#allocation25 + $0x68] sm:$0xff]  ;;  %v6256_v4 = vld [vmem:[#allocation25 + $0x20] sm:$0xff] }
 0x66d   :  { %v6264_v5 = vld [vmem:[#allocation25 + $0x60] sm:$0xff]  ;;  %v6263_v10 = vld [vmem:[#allocation25 + $0x58] sm:$0xff]  ;;  %v6254_v13 = vld [vmem:[#allocation25 + $0x10] sm:$0xff] }
 0x66e   :  { %v3190_v19 = vmax.f32 %v3186_v17, 0.0  ;;  %v3191_v20 = vmax.f32 %v3187_v18, 0.0  ;;  %v3192_v21 = vmax.f32 %v3188_v52, 0.0  ;;  %v3193_v60 = vmax.f32 %v3189_v37, 0.0  ;;  %v6262_v15 = vld [vmem:[#allocation25 + $0x50] sm:$0xff]  ;;  %v6253_v27 = vld [vmem:[#allocation25 + $0x8] sm:$0xff] }
 0x66f   :  { %v6261_v28 = vld [vmem:[#allocation25 + $0x48] sm:$0xff]  ;;  %v6252_v34 = vld [vmem:[#allocation25] sm:$0xff] }
 0x670   :  { %v3194_v23 = vpack.c.bf16 %v3190_v19, %v3190_v19  ;;  %v3195_v57 = vpack.c.bf16 %v3191_v20, %v3191_v20  ;;  %v3196_v50 = vpack.c.bf16 %v3192_v21, %v3192_v21  ;;  %v3197_v11 = vpack.c.bf16 %v3193_v60, %v3193_v60  ;;  %v6260_v16 = vld [vmem:[#allocation25 + $0x40] sm:$0xff]  ;;  %v3717_v60 = vld [vmem:[%s7215_s17] sm:$0x3] }
 0x672   :  { %3596 = vmatmul.bf16.vlgmr.msrb.gmra.mxu1 %v3194_v23  ;;  %3609 = vmatmul.bf16.vlgmr.msrb.gmra.mxu3 %v3195_v57 }
 0x673   :  { %3622 = vmatmul.bf16.vlgmr.msrb.gmra.mxu0 %v3196_v50  ;;  %3635 = vmatmul.bf16.vlgmr.msrb.gmra.mxu2 %v3197_v11 }
 0x674   :  { %3869 = vmatpush.bf16.msrb.mxu1 %v6259_v59  ;;  %3882 = vmatpush.bf16.msrb.mxu3 %v6267_v1  ;;  %v6271_v59 = vld [vmem:[#allocation26 + $0x18] sm:$0xff]  ;;  %v6270_v1 = vld [vmem:[#allocation26 + $0x10] sm:$0xff] }
 0x678   :  { %3870 = vmatpush.bf16.msrb.mxu1 %v6258_v49  ;;  %3883 = vmatpush.bf16.msrb.mxu3 %v6266_v44  ;;  %v6269_v49 = vld [vmem:[#allocation26 + $0x8] sm:$0xff]  ;;  %v6268_v44 = vld [vmem:[#allocation26] sm:$0xff] }
 0x67c   :  { %3871 = vmatpush.bf16.msrb.mxu1 %v6257_v2  ;;  %3884 = vmatpush.bf16.msrb.mxu3 %v6265_v3 }
 0x680   :  { %3872 = vmatpush.bf16.msrb.mxu1 %v6256_v4  ;;  %3885 = vmatpush.bf16.msrb.mxu3 %v6264_v5 }
 0x682   :  { %3648 = vmatmul.bf16.vlgmr.msra.gmra.mxu1 %v3194_v23  ;;  %3661 = vmatmul.bf16.vlgmr.msra.gmra.mxu3 %v3195_v57 }
 0x683   :  { %3674 = vmatmul.bf16.vlgmr.msra.gmra.mxu0 %v3196_v50  ;;  %3687 = vmatmul.bf16.vlgmr.msra.gmra.mxu2 %v3197_v11  ;;  %v3725_v50 = vld [vmem:[#allocation23] sm:$0x3]  ;;  %v3719_v11 = vperm.slane %v3717_v60, 0 }
 0x684   :  { %3873 = vmatpush.bf16.msrb.mxu1 %v6255_v12  ;;  %3886 = vmatpush.bf16.msrb.mxu3 %v6263_v10 }
 0x688   :  { %3874 = vmatpush.bf16.msrb.mxu1 %v6254_v13  ;;  %3887 = vmatpush.bf16.msrb.mxu3 %v6262_v15 }
 0x68c   :  { %3875 = vmatpush.bf16.msrb.mxu1 %v6253_v27  ;;  %3888 = vmatpush.bf16.msrb.mxu3 %v6261_v28  ;;  %v6303_v28 = vld [vmem:[%s7248_s14] ss:$0 sm:$0xff] }
 0x690   :  { %3876 = vmatpush.bf16.msrb.mxu1 %v6252_v34  ;;  %3889 = vmatpush.bf16.msrb.mxu3 %v6260_v16 }
 0x6ef   :  { %v3597_v58 = vpop.f32.mrf.mxu1 }
 0x6f0   :  { %v3623_v14 = vpop.f32.mrf.mxu0  ;;  %v3598_v36 = vadd.f32 %v3597_v58, %v3264_v31  ;;  %v3720_v58 = vperm.slane %v3717_v60, 1  ;;  %v6305_v60 = vld [vmem:[%s7250_s12] ss:$0 sm:$0xff] }
 0x6f5   :  { %v3610_v24 = vpop.f32.mrf.mxu3 }
 0x6f6   :  { %v3636_v25 = vpop.f32.mrf.mxu2  ;;  %v3611_v61 = vadd.f32 %v3610_v24, %v3598_v36 }
 0x6f7   :  { %v3599_v26 = vpop.f32.mrf.mxu1 }
 0x6f8   :  { %v3625_v29 = vpop.f32.mrf.mxu0  ;;  %v3624_v41 = vadd.f32 %v3623_v14, %v3611_v61  ;;  %v3728_v26 = vperm.slane %v3725_v50, 1  ;;  %v6302_v61 = vld [vmem:[%s7218_s20] ss:$0 sm:$0xff] }
 0x6fa   :  { %v3637_v45 = vadd.f32 %v3636_v25, %v3624_v41  ;;  %v3727_v25 = vperm.slane %v3725_v50, 0 }
 0x6fd   :  { %v3612_v32 = vpop.f32.mrf.mxu3 }
 0x6fe   :  { %v3638_v33 = vpop.f32.mrf.mxu2 }
 0x6ff   :  { %v3649_v35 = vpop.f32.mrf.mxu1 }
 0x700   :  { %v3675_v39 = vpop.f32.mrf.mxu0  ;;  %v3650_v40 = vadd.f32 %v3649_v35, %v3265_v38 }
 0x705   :  { %v3662_v62 = vpop.f32.mrf.mxu3 }
 0x706   :  { %v3663_v42 = vadd.f32 %v3662_v62, %v3650_v40  ;;  %v3688_v63 = vpop.f32.mrf.mxu2 }
 0x707   :  { %v3651_v0 = vpop.f32.mrf.mxu1 }
 0x708   :  { %v3676_v43 = vadd.f32 %v3675_v39, %v3663_v42  ;;  %v3677_v9 = vpop.f32.mrf.mxu0  ;;  %v6786_v0 = vmov 128.0  }
 0x70a   :  { %v3689_v46 = vadd.f32 %v3688_v63, %v3676_v43 }
 0x70c   :  { %v3692_v47 = vadd.f32 %v3689_v46, %v3637_v45 }
 0x70d   :  { %v3664_v48 = vpop.f32.mrf.mxu3 }
 0x70e   :  { %v3690_v22 = vpop.f32.mrf.mxu2  ;;  %3693 = vadd.xlane.f32.xlu0 %v3692_v47 }
 0x781   :  { %v3694_v51 = vpop.xlane.xlu0 %3693 }
 0x782   :  { %v3695_v53 = vmul.f32 %v3694_v51, %v6989_v6 }
 0x784   :  { %v3696_v54 = vsub.f32 %v3637_v45, %v3695_v53  ;;  %v3697_v55 = vsub.f32 %v3689_v46, %v3695_v53 }
 0x786   :  { %v3698_v7 = vmul.f32 %v3696_v54, %v3696_v54  ;;  %v3699_v56 = vmul.f32 %v3697_v55, %v3697_v55 }
 0x788   :  { %v3700_v8 = vadd.f32 %v3699_v56, %v3698_v7  ;;  %v6274_v7 = vld [vmem:[#allocation26 + $0x30] sm:$0xff]  ;;  %v6273_v56 = vld [vmem:[#allocation26 + $0x28] sm:$0xff] }
 0x78a   :  { %3701 = vadd.xlane.f32.xlu1 %v3700_v8  ;;  %v6272_v8 = vld [vmem:[#allocation26 + $0x20] sm:$0xff] }
 0x7fd   :  { %v3702_v17 = vpop.xlane.xlu1 %3701 }
 0x7fe   :  { %v3703_v18 = vmul.f32 %v3702_v17, %v6989_v6  ;;  %v6304_v17 = vld [vmem:[%s7249_s5] ss:$0 sm:$0xff] }
 0x800   :  { %v3704_v52 = vadd.f32 1e-05, %v3703_v18 }
 0x802   :  { %6316 = vrsqrt.f32 %v3704_v52  ;;  %vm3711_vm13 = vweird.f32 %v3704_v52 }
 0x803   :  { %6318 = vrcp.f32 %v6786_v0 }
 0x808   :  { %v6317_v37 = vpop.eup %6316 }
 0x809   :  { %v3706_v19 = vmul.f32 %v6317_v37, %v3704_v52  ;;  %vm3712_vm12 = vweird.f32 %v6317_v37  ;;  %v6319_v43 = vpop.eup %6318 }
 0x80a   :  { %vm3713_vm14 = vmor %vm3711_vm13, %vm3712_vm12  ;;  %v3898_v9 = vmul.f32 128.0, %v6319_v43  ;;  %vm3902_vm15 = vweird.f32 %v6319_v43 }
 0x80b   :  { %v3707_v20 = vmul.f32 %v6317_v37, %v3706_v19 }
 0x80c   :  { %v3899_v45 = vsub.f32 1.0, %v3898_v9 }
 0x80d   :  { %v3708_v21 = vmul.f32 0.5, %v3707_v20  ;;  %v4015_v20 = vlaneseq }
 0x80e   :  { %v3900_v46 = vmul.f32 %v6319_v43, %v3899_v45 }
 0x80f   :  { %v3709_v23 = vsub.f32 1.5, %v3708_v21  ;;  %v7168_v21 = vand.u32 127, %v4015_v20 }
 0x810   :  { %v3901_v47 = vadd.f32 %v6319_v43, %v3900_v46 }
 0x811   :  { %v3710_v57 = vmul.f32 %v6317_v37, %v3709_v23  ;;  %vm4018_vm3 = vcmp.ge.s32.totalorder %v7168_v21, 4  ;;  %vm4019_vm4 = vcmp.lt.s32.totalorder %v7168_v21, 8  ;;  %vm4017_vm6 = vcmp.lt.s32.totalorder %v7168_v21, 4 }
 0x812   :  { %v3903_v48 = vsel %vm3902_vm15, %v6319_v43, %v3901_v47  ;;  %vm7175_vm5 = vmand %vm4018_vm3, %vm4019_vm4 }
 0x813   :  { %v3714_v14 = vsel %vm3713_vm14, %v6317_v37, %v3710_v57 }
 0x814   :  { %v3715_v6 = vmul.f32 %v3714_v14, %v3696_v54  ;;  %v3716_v24 = vmul.f32 %v3714_v14, %v3697_v55  ;;  %v6275_v55 = vld [vmem:[#allocation26 + $0x38] sm:$0xff] }
 0x815   :  { %4002 = vmatpush.bf16.msrb.mxu0 %v6275_v55 }
 0x816   :  { %v3723_v29 = vmul.f32 %v3719_v11, %v3715_v6  ;;  %v3724_v30 = vmul.f32 %v3720_v58, %v3716_v24 }
 0x818   :  { %v3731_v31 = vadd.f32 %v3727_v25, %v3723_v29  ;;  %v3732_v32 = vadd.f32 %v3728_v26, %v3724_v30 }
 0x819   :  { %4003 = vmatpush.bf16.msrb.mxu0 %v6274_v7 }
 0x81a   :  { %v3733_v33 = vmax.f32 %v3731_v31, 0.0  ;;  %v3734_v35 = vmax.f32 %v3732_v32, 0.0 }
 0x81c   :  { %v3735_v36 = vpack.c.bf16 %v3733_v33, %v3733_v33  ;;  %v3736_v38 = vpack.c.bf16 %v3734_v35, %v3734_v35 }
 0x81d   :  { %4004 = vmatpush.bf16.msrb.mxu0 %v6273_v56 }
 0x81e   :  { %3877 = vmatmul.bf16.vlgmr.msrb.gmra.mxu1 %v3735_v36  ;;  %3890 = vmatmul.bf16.vlgmr.msrb.gmra.mxu3 %v3736_v38 }
 0x821   :  { %4005 = vmatpush.bf16.msrb.mxu0 %v6272_v8 }
 0x825   :  { %4006 = vmatpush.bf16.msrb.mxu0 %v6271_v59 }
 0x829   :  { %4007 = vmatpush.bf16.msrb.mxu0 %v6270_v1 }
 0x82d   :  { %4008 = vmatpush.bf16.msrb.mxu0 %v6269_v49 }
 0x831   :  { %4009 = vmatpush.bf16.msrb.mxu0 %v6268_v44 }
 0x89b   :  { %v3878_v39 = vpop.f32.mrf.mxu1 }
 0x89c   :  { %v3879_v40 = vadd.f32 %v6302_v61, %v3878_v39 }
 0x8a1   :  { %v3891_v62 = vpop.f32.mrf.mxu3 }
 0x8a2   :  { %v3892_v41 = vadd.f32 %v3891_v62, %v3879_v40 }
 0x8a3   :  { %v3880_v42 = vpop.f32.mrf.mxu1 }
 0x8a4   :  { %3895 = vadd.xlane.f32.xlu2 %v3892_v41 }
 0x8a9   :  { %v3893_v63 = vpop.f32.mrf.mxu3 }
 0x917   :  { %v3896_v22 = vpop.xlane.xlu2 %3895 }
 0x918   :  { %v3904_v51 = vmul.f32 %v3903_v48, %v3896_v22 }
 0x91a   :  { %v3905_v53 = vsub.f32 %v3892_v41, %v3904_v51 }
 0x91c   :  { %v3906_v54 = vmul.f32 %v3905_v53, %v3905_v53 }
 0x91e   :  { %3907 = vadd.xlane.f32.xlu0 %v3906_v54 }
 0x991   :  { %v3908_v2 = vpop.xlane.xlu0 %3907 }
 0x992   :  { %v3909_v3 = vmul.f32 %v3908_v2, %v3903_v48 }
 0x994   :  { %v3910_v4 = vadd.f32 1e-05, %v3909_v3 }
 0x996   :  { %6320 = vrsqrt.f32 %v3910_v4  ;;  %vm3917_vm1 = vweird.f32 %v3910_v4 }
 0x99c   :  { %v6321_v5 = vpop.eup %6320 }
 0x99d   :  { %v3912_v12 = vmul.f32 %v6321_v5, %v3910_v4  ;;  %vm3918_vm0 = vweird.f32 %v6321_v5 }
 0x99e   :  { %vm3919_vm2 = vmor %vm3917_vm1, %vm3918_vm0 }
 0x99f   :  { %v3913_v10 = vmul.f32 %v6321_v5, %v3912_v12 }
 0x9a1   :  { %v3914_v13 = vmul.f32 0.5, %v3913_v10 }
 0x9a3   :  { %v3915_v15 = vsub.f32 1.5, %v3914_v13 }
 0x9a5   :  { %v3916_v27 = vmul.f32 %v6321_v5, %v3915_v15 }
 0x9a7   :  { %v3920_v34 = vsel %vm3919_vm2, %v6321_v5, %v3916_v27 }
 0x9a8   :  { %v3921_v16 = vmul.f32 %v3920_v34, %v3905_v53 }
 0x9aa   :  { %v3926_v18 = vmul.f32 %v6303_v28, %v3921_v16 }
 0x9ac   :  { %v3931_v52 = vadd.f32 %v6304_v17, %v3926_v18 }
 0x9ae   :  { %v3932_v37 = vmax.f32 %v3931_v52, 0.0 }
 0x9b0   :  { %v3933_v19 = vpack.c.bf16 %v3932_v37, %v3932_v37 }
 0x9b2   :  { %4010 = vmatmul.bf16.vlgmr.msrb.gmra.mxu0 %v3933_v19 }
 0xa2f   :  { %v4011_v23 = vpop.f32.mrf.mxu0 }
 0xa30   :  { %v4012_v50 = vadd.f32 %v6305_v60, %v4011_v23 }
 0xa32   :  { %v4063_v11 = vsel %vm7175_vm5, %v4012_v50, -1e+30  ;;  %v4040_v58 = vsel %vm4017_vm6, %v4012_v50, -1e+30  ;;  %v4021_v33 = vsub.f32 0.0, %v4012_v50 }
 0xa33   :  { %4064 = vmax.xlane.f32.xlu1 %v4063_v11  ;;  %4041 = vmax.xlane.f32.xlu2 %v4040_v58 }
 0xa34   :  { %v4022_v35 = vmul.f32 1.442695, %v4021_v33 }
 0xa37   :  { %v4013_v14 = vpop.f32.mrf.mxu0 }
 0xaa6   :  { %v4065_v6 = vpop.xlane.xlu1 %4064  ;;  %v4042_v24 = vpop.xlane.xlu2 %4041 }
 0xaa7   :  { %v4066_v25 = vsub.f32 %v4063_v11, %v4065_v6  ;;  %v4043_v26 = vsub.f32 %v4040_v58, %v4042_v24 }
 0xaa9   :  { %v4067_v29 = vmul.f32 1.442695, %v4066_v25  ;;  %v4044_v30 = vmul.f32 1.442695, %v4043_v26 }
 0xaab   :  { %6322 = vpow2.f32 %v4067_v29 }
 0xaac   :  { %6324 = vpow2.f32 %v4044_v30 }
 0xaad   :  { %6326 = vpow2.f32 %v4022_v35 }
 0xab1   :  { %v6323_v31 = vpop.eup %6322 }
 0xab2   :  { %v6325_v32 = vpop.eup %6324  ;;  %4069 = vadd.xlane.f32.xlu0 %v6323_v31 }
 0xab3   :  { %4046 = vadd.xlane.f32.xlu1 %v6325_v32  ;;  %v6327_v36 = vpop.eup %6326 }
 0xab4   :  { %v4024_v38 = vadd.f32 1.0, %v6327_v36 }
 0xab6   :  { %6328 = vrcp.f32 %v4024_v38  ;;  %vm4030_vm7 = vweird.f32 %v4024_v38  ;;  %v4036_v7 = vand.u32 2147483648, %v4024_v38  ;;  %v4034_v59 = vand.u32 2147483647, %v4024_v38 }
 0xab8   :  { %v4037_v12 = vor.u32 1.1754944e-38, %v4036_v7  ;;  %vm4035_vm2 = vcmp.eq.f32.partialorder %v4034_v59, 8.507059e+37 }
 0xabc   :  { %v6329_v39 = vpop.eup %6328 }
 0xabd   :  { %v4026_v61 = vmul.f32 %v6329_v39, %v4024_v38  ;;  %vm4031_vm8 = vweird.f32 %v6329_v39 }
 0xabe   :  { %vm7185_vm12 = vmor %vm4030_vm7, %vm4031_vm8 }
 0xabf   :  { %v4027_v41 = vsub.f32 1.0, %v4026_v61 }
 0xac1   :  { %v4028_v63 = vmul.f32 %v6329_v39, %v4027_v41 }
 0xac3   :  { %v4029_v48 = vadd.f32 %v6329_v39, %v4028_v63 }
 0xac5   :  { %v4033_v3 = vsel %vm7185_vm12, %v6329_v39, %v4029_v48 }
 0xac6   :  { %v4038_v15 = vsel %vm4035_vm2, %v4037_v12, %v4033_v3 }
 0xb25   :  { %v4070_v40 = vpop.xlane.xlu0 %4069 }
 0xb26   :  { %6330 = vrcp.f32 %v4070_v40  ;;  %v4047_v62 = vpop.xlane.xlu1 %4046  ;;  %v4082_v46 = vand.u32 2147483648, %v4070_v40  ;;  %v4080_v51 = vand.u32 2147483647, %v4070_v40  ;;  %vm4076_vm11 = vweird.f32 %v4070_v40 }
 0xb27   :  { %6332 = vrcp.f32 %v4047_v62  ;;  %v4059_v53 = vand.u32 2147483648, %v4047_v62  ;;  %v4057_v55 = vand.u32 2147483647, %v4047_v62  ;;  %vm4053_vm14 = vweird.f32 %v4047_v62 }
 0xb28   :  { %v4083_v1 = vor.u32 1.1754944e-38, %v4082_v46  ;;  %vm4081_vm15 = vcmp.eq.f32.partialorder %v4080_v51, 8.507059e+37 }
 0xb29   :  { %v4060_v2 = vor.u32 1.1754944e-38, %v4059_v53  ;;  %vm4058_vm1 = vcmp.eq.f32.partialorder %v4057_v55, 8.507059e+37 }
 0xb2c   :  { %v6331_v42 = vpop.eup %6330 }
 0xb2d   :  { %v6333_v0 = vpop.eup %6332  ;;  %v4072_v43 = vmul.f32 %v6331_v42, %v4070_v40  ;;  %vm4077_vm9 = vweird.f32 %v6331_v42 }
 0xb2e   :  { %v4049_v9 = vmul.f32 %v6333_v0, %v4047_v62  ;;  %vm4054_vm10 = vweird.f32 %v6333_v0  ;;  %vm4078_vm13 = vmor %vm4076_vm11, %vm4077_vm9 }
 0xb2f   :  { %v4073_v45 = vsub.f32 1.0, %v4072_v43  ;;  %vm4055_vm0 = vmor %vm4053_vm14, %vm4054_vm10 }
 0xb30   :  { %v4050_v47 = vsub.f32 1.0, %v4049_v9 }
 0xb31   :  { %v4074_v22 = vmul.f32 %v6331_v42, %v4073_v45 }
 0xb32   :  { %v4051_v54 = vmul.f32 %v6333_v0, %v4050_v47 }
 0xb33   :  { %v4075_v56 = vadd.f32 %v6331_v42, %v4074_v22 }
 0xb34   :  { %v4052_v49 = vadd.f32 %v6333_v0, %v4051_v54 }
 0xb35   :  { %v4079_v44 = vsel %vm4078_vm13, %v6331_v42, %v4075_v56 }
 0xb36   :  { %v4084_v4 = vsel %vm4081_vm15, %v4083_v1, %v4079_v44  ;;  %v4056_v5 = vsel %vm4055_vm0, %v6333_v0, %v4052_v49 }
 0xb37   :  { %v4085_v10 = vmul.f32 %v6323_v31, %v4084_v4  ;;  %v4061_v13 = vsel %vm4058_vm1, %v4060_v2, %v4056_v5 }
 0xb38   :  { %v4062_v27 = vmul.f32 %v6325_v32, %v4061_v13 }
 0xb39   :  { %v4086_v28 = vsel %vm7175_vm5, %v4085_v10, %v4038_v15 }
 0xb3a   :  { %v4087_v34 = vsel %vm4017_vm6, %v4062_v27, %v4086_v28 }
 0xb3b   :  { %4088 = vst [vmem:[#allocation28] sm:$0xff] %v4087_v34 }
 0xb3c   :  { %4099 = dma.vmem_to_hbm [thread:$0]  %s4095_s22, 128, %s4097_s26, [#allocation4]  }
 0xb3d   :  { %6760 = dma.done.wait [#allocation4], 128  }
 0xb3e   :  { %6761 = vsyncadd [#allocation4], 4294967168 }
 0xb3f   :  { %4104 = vsyncpa [#allocation3], 1 }
 0xb40   :  { %4105 = vsyncpa [#allocation6], 1 }
 0xb41   :  { %4106 = vsyncpa [#allocation9], 1 }
 0xb42   :  { %4107 = vsyncpa [#allocation12], 1 }
 0xb43   :  { %4108 = vsyncpa [#allocation15], 1 }
 0xb44   :  { %4109 = vsyncpa [#allocation18], 1 }
 0xb45   :  { %4110 = vsyncpa [#allocation21], 1 }
 0xb46   :  { %4111 = vsyncpa [#allocation24], 1 }
 0xb47   :  { %4112 = vsyncpa [#allocation27], 1 }
 0xb48   :  { %4113 = vsyncpa [#allocation4], 1 }

</bundles_post_ra>
